<compile_context>
chip_gen: v7x
topology: tpu7x:2x2x1
jax: 0.10.0
libtpu: 0.0.40
codegen_flags: <defaults>
</compile_context>

<pallas_src>
import functools
import math

import jax
import jax.numpy as jnp
from jax.experimental import pallas as pl
from jax.experimental.pallas import tpu as pltpu

# ---- small hyperparameters consistent with the module (orig: 1000/512/8/6/10) ----
VOCAB = 100            # input_dim
D_MODEL = 32           # model_dim
NUM_HEADS = 4          # num_heads
NUM_LAYERS = 2         # num_layers
OUTPUT_DIM = 10        # output_dim
FFN_DIM = 4 * D_MODEL  # TransformerEncoderLayer default 2048 = 4 * 512
HEAD_DIM = D_MODEL // NUM_HEADS
MAX_LEN = 64
LN_EPS = 1e-5
OUT_PAD = 128          # pad final-FC output lanes 10 -> 128 (lane-dense store)


def _layernorm(z, g, b):
    mu = jnp.mean(z, axis=-1, keepdims=True)
    var = jnp.mean((z - mu) ** 2, axis=-1, keepdims=True)
    return (z - mu) * jax.lax.rsqrt(var + LN_EPS) * g + b


# ----------------------------- fused Pallas kernel ----------------------------
def _fused_forward_kernel(
    x_ref,
    in_w_ref, in_b_ref, out_w_ref, out_b_ref,
    ln1_w_ref, ln1_b_ref, ln2_w_ref, ln2_b_ref,
    ff_w1_ref, ff_b1_ref, ff_w2_ref, ff_b2_ref,
    fc_w_ref, fc_b_ref,
    o_ref,
    *, seq_s, batch_b,
):
    D, H, Dh = D_MODEL, NUM_HEADS, HEAD_DIM
    S, B = seq_s, batch_b
    R = S * B

    # Rows are s-major (r = s*B + b): each attention group is a contiguous block
    # of B rows, so no mask is needed anywhere.
    x = x_ref[...]                                                    # (R, D)

    for l in range(NUM_LAYERS):                                       # static unroll
        # ---------------- multi-head self-attention ----------------
        # Fused QKV projection (1/sqrt(Dh) already folded into the Q columns).
        qkv = (jnp.dot(x, in_w_ref[l], preferred_element_type=jnp.float32)
               + in_b_ref[l])                                         # (R, 3D)
        qkv = qkv.reshape(S, B, 3 * D)                                # groups contiguous
        heads = []
        for h in range(H):                                            # static unroll
            q = qkv[:, :, h * Dh:(h + 1) * Dh]                        # (S, B, Dh)
            k = qkv[:, :, D + h * Dh:D + (h + 1) * Dh]                # (S, B, Dh)
            v = qkv[:, :, 2 * D + h * Dh:2 * D + (h + 1) * Dh]        # (S, B, Dh)
            # batched block-diagonal scores: one dot_general over all S groups
            s = jax.lax.dot_general(q, k, (((2,), (2,)), ((0,), (0,))),
                                    preferred_element_type=jnp.float32)   # (S, B, B)
            m = jnp.max(s, axis=-1, keepdims=True)
            p = jnp.exp(s - m)
            p = p * pl.reciprocal(jnp.sum(p, axis=-1, keepdims=True),
                                  approx=False)
            heads.append(jax.lax.dot_general(
                p, v, (((2,), (1,)), ((0,), (0,))),
                preferred_element_type=jnp.float32))                  # (S, B, Dh)
        attn = jnp.concatenate(heads, axis=-1).reshape(R, D)          # (R, D)
        a = (jnp.dot(attn, out_w_ref[l], preferred_element_type=jnp.float32)
             + out_b_ref[l])

        # ---------------- add & layernorm 1 ----------------
        y = _layernorm(x + a, ln1_w_ref[l], ln1_b_ref[l])

        # ---------------- feed-forward (relu, torch default) ----------------
        hdn = jnp.maximum(
            jnp.dot(y, ff_w1_ref[l], preferred_element_type=jnp.float32)
            + ff_b1_ref[l], 0.0)
        f = (jnp.dot(hdn, ff_w2_ref[l], preferred_element_type=jnp.float32)
             + ff_b2_ref[l])

        # ---------------- add & layernorm 2 ----------------
        x = _layernorm(y + f, ln2_w_ref[l], ln2_b_ref[l])

    # ---------------- final FC (lane-dense, padded to 128 output lanes) -------
    o_ref[...] = (jnp.dot(x, fc_w_ref[...], preferred_element_type=jnp.float32)
                  + fc_b_ref[...])


def _full_spec(shape):
    zeros = (0,) * len(shape)
    return pl.BlockSpec(shape, lambda i, _z=zeros: _z)


# --------------------------- forward-pass wrapper -----------------------------
@jax.jit
def transformer_forward(tokens, packed):
    B, S = tokens.shape
    D = D_MODEL
    R = B * S

    # host glue: embedding gather (table already pre-scaled by sqrt(D)) + PE add
    # (PE indexed by the S axis — PyTorch batch_first=False quirk), then reorder
    # rows to s-major (r = s*B + b) so attention groups are contiguous.
    x = jnp.take(packed["emb_scaled"], tokens, axis=0)                # (B, S, D)
    x = x + packed["pe"][:S][None]                                    # (B, S, D)
    x = jnp.transpose(x, (1, 0, 2)).reshape(R, D).astype(jnp.float32)

    inputs = [x,
              packed["in_w"], packed["in_b"], packed["out_w"], packed["out_b"],
              packed["ln1_w"], packed["ln1_b"], packed["ln2_w"], packed["ln2_b"],
              packed["ff_w1"], packed["ff_b1"], packed["ff_w2"], packed["ff_b2"],
              packed["fc_w"], packed["fc_b"]]

    kernel = functools.partial(_fused_forward_kernel, seq_s=S, batch_b=B)

    out_pad = pl.pallas_call(
        kernel,
        grid=(1,),
        in_specs=[_full_spec(a.shape) for a in inputs],
        out_specs=_full_spec((R, OUT_PAD)),
        out_shape=jax.ShapeDtypeStruct((R, OUT_PAD), jnp.float32),
        compiler_params=pltpu.CompilerParams(
            dimension_semantics=("arbitrary",)),
    )(*inputs)

    out = out_pad[:, :OUTPUT_DIM].reshape(S, B, OUTPUT_DIM)
    return jnp.transpose(out, (1, 0, 2))                              # (B, S, OUT)


# ------------------------------ parameters -----------------------------------
def init_params(key):
    keys = jax.random.split(key, 2 + NUM_LAYERS)
    emb = jax.random.normal(keys[0], (VOCAB, D_MODEL), jnp.float32)

    pos = jnp.arange(MAX_LEN, dtype=jnp.float32)[:, None]
    div = jnp.exp(jnp.arange(0, D_MODEL, 2, dtype=jnp.float32)
                  * (-math.log(10000.0) / D_MODEL))
    pe = jnp.zeros((MAX_LEN, D_MODEL), jnp.float32)
    pe = pe.at[:, 0::2].set(jnp.sin(pos * div))
    pe = pe.at[:, 1::2].set(jnp.cos(pos * div))

    def lin(k, fan_in, fan_out):
        kw, kb = jax.random.split(k)
        lim = 1.0 / math.sqrt(fan_in)
        w = jax.random.uniform(kw, (fan_in, fan_out), jnp.float32, -lim, lim)
        b = jax.random.uniform(kb, (fan_out,), jnp.float32, -lim, lim)
        return w, b

    layers = []
    for i in range(NUM_LAYERS):
        k = jax.random.split(keys[2 + i], 4)
        in_w, in_b = lin(k[0], D_MODEL, 3 * D_MODEL)
        out_w, out_b = lin(k[1], D_MODEL, D_MODEL)
        ff_w1, ff_b1 = lin(k[2], D_MODEL, FFN_DIM)
        ff_w2, ff_b2 = lin(k[3], FFN_DIM, D_MODEL)
        layers.append(dict(
            in_w=in_w, in_b=in_b, out_w=out_w, out_b=out_b,
            ln1_w=jnp.ones((D_MODEL,), jnp.float32), ln1_b=jnp.zeros((D_MODEL,), jnp.float32),
            ln2_w=jnp.ones((D_MODEL,), jnp.float32), ln2_b=jnp.zeros((D_MODEL,), jnp.float32),
            ff_w1=ff_w1, ff_b1=ff_b1, ff_w2=ff_w2, ff_b2=ff_b2,
        ))

    fc_w, fc_b = lin(keys[1], D_MODEL, OUTPUT_DIM)
    return dict(emb=emb, pe=pe, layers=layers, fc_w=fc_w, fc_b=fc_b)


def pack_params(params):
    """One-time (outside jit) weight staging: stack layers, fold sqrt(D) into the
    embedding table and 1/sqrt(head_dim) into the Q slice of in-proj, pad final FC."""
    D, L, F = D_MODEL, NUM_LAYERS, FFN_DIM
    qscale = 1.0 / math.sqrt(HEAD_DIM)
    layers = params["layers"]
    return dict(
        emb_scaled=params["emb"] * math.sqrt(D),
        pe=params["pe"],
        in_w=jnp.stack([lp["in_w"].at[:, :D].multiply(qscale) for lp in layers]),
        in_b=jnp.stack([lp["in_b"].at[:D].multiply(qscale)
                        for lp in layers]).reshape(L, 1, 3 * D),
        out_w=jnp.stack([lp["out_w"] for lp in layers]),
        out_b=jnp.stack([lp["out_b"] for lp in layers]).reshape(L, 1, D),
        ln1_w=jnp.stack([lp["ln1_w"] for lp in layers]).reshape(L, 1, D),
        ln1_b=jnp.stack([lp["ln1_b"] for lp in layers]).reshape(L, 1, D),
        ln2_w=jnp.stack([lp["ln2_w"] for lp in layers]).reshape(L, 1, D),
        ln2_b=jnp.stack([lp["ln2_b"] for lp in layers]).reshape(L, 1, D),
        ff_w1=jnp.stack([lp["ff_w1"] for lp in layers]),
        ff_b1=jnp.stack([lp["ff_b1"] for lp in layers]).reshape(L, 1, F),
        ff_w2=jnp.stack([lp["ff_w2"] for lp in layers]),
        ff_b2=jnp.stack([lp["ff_b2"] for lp in layers]).reshape(L, 1, D),
        fc_w=jnp.zeros((D, OUT_PAD), jnp.float32).at[:, :OUTPUT_DIM].set(params["fc_w"]),
        fc_b=jnp.zeros((1, OUT_PAD), jnp.float32).at[:, :OUTPUT_DIM].set(params["fc_b"]),
    )


# ----------------------------- pure-JAX reference -----------------------------
_P_HI = jax.lax.Precision.HIGHEST


def _mm(a, b):
    return jnp.dot(a, b, precision=_P_HI)


def _layernorm_ref(x, g, b):
    mu = jnp.mean(x, -1, keepdims=True)
    var = jnp.mean((x - mu) ** 2, -1, keepdims=True)
    return (x - mu) * jax.lax.rsqrt(var + LN_EPS) * g + b


def reference_forward(tokens, params):
    B, S = tokens.shape
    D, H = D_MODEL, NUM_HEADS
    Dh = D // H
    x = jnp.take(params["emb"], tokens, axis=0) * math.sqrt(D) + params["pe"][:S][None]
    # nn.TransformerEncoder (batch_first=False): axis 0 (=B) is the attention axis.
    for p in params["layers"]:
        Sa, Nb, _ = x.shape
        x2 = x.reshape(Sa * Nb, D)
        qkv = (_mm(x2, p["in_w"]) + p["in_b"]).reshape(Sa, Nb, 3 * D)

        def sh(t):
            return t.reshape(Sa, Nb, H, Dh).transpose(1, 2, 0, 3)

        q, k, v = sh(qkv[..., :D]), sh(qkv[..., D:2 * D]), sh(qkv[..., 2 * D:])
        s = jnp.einsum("nhqd,nhkd->nhqk", q / math.sqrt(Dh), k, precision=_P_HI)
        a = jax.nn.softmax(s, axis=-1)
        a = jnp.einsum("nhqk,nhkd->nhqd", a, v, precision=_P_HI)
        a = a.transpose(2, 0, 1, 3).reshape(Sa * Nb, D)
        a = _mm(a, p["out_w"]) + p["out_b"]
        y = _layernorm_ref(x2 + a, p["ln1_w"], p["ln1_b"])
        f = _mm(jnp.maximum(_mm(y, p["ff_w1"]) + p["ff_b1"], 0.0), p["ff_w2"]) + p["ff_b2"]
        y = _layernorm_ref(y + f, p["ln2_w"], p["ln2_b"])
        x = y.reshape(Sa, Nb, D)
    out = _mm(x.reshape(B * S, D), params["fc_w"]) + params["fc_b"]
    return out.reshape(B, S, OUTPUT_DIM)


# ---------------------------------- main --------------------------------------
if __name__ == "__main__":
    key = jax.random.PRNGKey(0)
    pkey, tkey = jax.random.split(key)
    params = init_params(pkey)
    packed = pack_params(params)          # one-time weight staging, outside jit
    tokens = jax.random.randint(tkey, (4, 8), 0, VOCAB, dtype=jnp.int32)  # (B, S)

    out = transformer_forward(tokens, packed)
    out = jax.block_until_ready(out)

    assert out.shape == (4, 8, OUTPUT_DIM)
    assert bool(jnp.all(jnp.isfinite(out)))

    ref = reference_forward(tokens, params)
    max_diff = float(jnp.max(jnp.abs(out - ref)))
    assert max_diff < 1e-3, f"mismatch vs reference: {max_diff}"

    print("KERNEL_OK")
</pallas_src>

<mosaic_0001>
module attributes {stable_mosaic.version = 11 : i64} {
  func.func @_fused_forward_kernel(%arg0: i32, %arg1: memref<32x32xf32, #tpu.memory_space<vmem>>, %arg2: memref<2x32x96xf32, #tpu.memory_space<vmem>>, %arg3: memref<2x1x96xf32, #tpu.memory_space<vmem>>, %arg4: memref<2x32x32xf32, #tpu.memory_space<vmem>>, %arg5: memref<2x1x32xf32, #tpu.memory_space<vmem>>, %arg6: memref<2x1x32xf32, #tpu.memory_space<vmem>>, %arg7: memref<2x1x32xf32, #tpu.memory_space<vmem>>, %arg8: memref<2x1x32xf32, #tpu.memory_space<vmem>>, %arg9: memref<2x1x32xf32, #tpu.memory_space<vmem>>, %arg10: memref<2x32x128xf32, #tpu.memory_space<vmem>>, %arg11: memref<2x1x128xf32, #tpu.memory_space<vmem>>, %arg12: memref<2x128x32xf32, #tpu.memory_space<vmem>>, %arg13: memref<2x1x32xf32, #tpu.memory_space<vmem>>, %arg14: memref<32x128xf32, #tpu.memory_space<vmem>>, %arg15: memref<1x128xf32, #tpu.memory_space<vmem>>, %arg16: memref<32x128xf32, #tpu.memory_space<vmem>>) attributes {dimension_semantics = [#tpu.dimension_semantics<arbitrary>], iteration_bounds = array<i64: 1>, scalar_prefetch = 0 : i64, scratch_operands = 0 : i64, tpu.core_type = #tpu.core_type<tc>, window_params = [{pipeline_mode = #tpu.pipeline_mode<synchronous>, transform_indices = @transform_0, window_bounds = array<i64: 32, 32>}, {pipeline_mode = #tpu.pipeline_mode<synchronous>, transform_indices = @transform_1, window_bounds = array<i64: 2, 32, 96>}, {pipeline_mode = #tpu.pipeline_mode<synchronous>, transform_indices = @transform_2, window_bounds = array<i64: 2, 1, 96>}, {pipeline_mode = #tpu.pipeline_mode<synchronous>, transform_indices = @transform_3, window_bounds = array<i64: 2, 32, 32>}, {pipeline_mode = #tpu.pipeline_mode<synchronous>, transform_indices = @transform_4, window_bounds = array<i64: 2, 1, 32>}, {pipeline_mode = #tpu.pipeline_mode<synchronous>, transform_indices = @transform_5, window_bounds = array<i64: 2, 1, 32>}, {pipeline_mode = #tpu.pipeline_mode<synchronous>, transform_indices = @transform_6, window_bounds = array<i64: 2, 1, 32>}, {pipeline_mode = #tpu.pipeline_mode<synchronous>, transform_indices = @transform_7, window_bounds = array<i64: 2, 1, 32>}, {pipeline_mode = #tpu.pipeline_mode<synchronous>, transform_indices = @transform_8, window_bounds = array<i64: 2, 1, 32>}, {pipeline_mode = #tpu.pipeline_mode<synchronous>, transform_indices = @transform_9, window_bounds = array<i64: 2, 32, 128>}, {pipeline_mode = #tpu.pipeline_mode<synchronous>, transform_indices = @transform_10, window_bounds = array<i64: 2, 1, 128>}, {pipeline_mode = #tpu.pipeline_mode<synchronous>, transform_indices = @transform_11, window_bounds = array<i64: 2, 128, 32>}, {pipeline_mode = #tpu.pipeline_mode<synchronous>, transform_indices = @transform_12, window_bounds = array<i64: 2, 1, 32>}, {pipeline_mode = #tpu.pipeline_mode<synchronous>, transform_indices = @transform_13, window_bounds = array<i64: 32, 128>}, {pipeline_mode = #tpu.pipeline_mode<synchronous>, transform_indices = @transform_14, window_bounds = array<i64: 1, 128>}, {pipeline_mode = #tpu.pipeline_mode<synchronous>, transform_indices = @transform_15, window_bounds = array<i64: 32, 128>}]} {
    %c0 = arith.constant 0 : index
    %c0_0 = arith.constant 0 : index
    %0 = vector.load %arg1[%c0, %c0_0] : memref<32x32xf32, #tpu.memory_space<vmem>>, vector<32x32xf32>
    %c0_1 = arith.constant 0 : index
    %c0_2 = arith.constant 0 : index
    %c0_3 = arith.constant 0 : index
    %1 = vector.load %arg2[%c0_1, %c0_2, %c0_3] : memref<2x32x96xf32, #tpu.memory_space<vmem>>, vector<1x32x96xf32>
    %2 = vector.shape_cast %1 : vector<1x32x96xf32> to vector<32x96xf32>
    %cst = arith.constant dense<0.000000e+00> : vector<32x96xf32>
    %3 = tpu.matmul %0, %2, %cst {dimension_numbers = #tpu.dot_dimension_numbers<[1], [0], [0], [1], [0, 0, 1, 1], [], []>} : vector<32x32xf32>, vector<32x96xf32>, vector<32x96xf32> -> vector<32x96xf32>
    %c0_4 = arith.constant 0 : index
    %c0_5 = arith.constant 0 : index
    %c0_6 = arith.constant 0 : index
    %4 = vector.load %arg3[%c0_4, %c0_5, %c0_6] : memref<2x1x96xf32, #tpu.memory_space<vmem>>, vector<1x1x96xf32>
    %5 = vector.shape_cast %4 : vector<1x1x96xf32> to vector<1x96xf32>
    %6 = vector.broadcast %5 : vector<1x96xf32> to vector<32x96xf32>
    %7 = arith.addf %3, %6 : vector<32x96xf32>
    %8 = vector.shape_cast %7 : vector<32x96xf32> to vector<8x4x96xf32>
    %9 = vector.extract_strided_slice %8 {offsets = [0, 0, 0], sizes = [8, 4, 8], strides = [1, 1, 1]} : vector<8x4x96xf32> to vector<8x4x8xf32>
    %10 = vector.extract_strided_slice %8 {offsets = [0, 0, 32], sizes = [8, 4, 8], strides = [1, 1, 1]} : vector<8x4x96xf32> to vector<8x4x8xf32>
    %11 = vector.extract_strided_slice %8 {offsets = [0, 0, 64], sizes = [8, 4, 8], strides = [1, 1, 1]} : vector<8x4x96xf32> to vector<8x4x8xf32>
    %cst_7 = arith.constant dense<0.000000e+00> : vector<8x4x4xf32>
    %12 = tpu.matmul %9, %10, %cst_7 {dimension_numbers = #tpu.dot_dimension_numbers<[2], [2], [1], [1], [0, 0, 0, 1, 1, 1], [0], [0]>} : vector<8x4x8xf32>, vector<8x4x8xf32>, vector<8x4x4xf32> -> vector<8x4x4xf32>
    %cst_8 = arith.constant dense<0xFF800000> : vector<8x4xf32>
    %13 = vector.multi_reduction <maximumf>, %12, %cst_8 [2] : vector<8x4x4xf32> to vector<8x4xf32>
    %14 = vector.shape_cast %13 : vector<8x4xf32> to vector<8x4x1xf32>
    %15 = vector.broadcast %14 : vector<8x4x1xf32> to vector<8x4x4xf32>
    %16 = arith.subf %12, %15 : vector<8x4x4xf32>
    %17 = math.exp %16 : vector<8x4x4xf32>
    %cst_9 = arith.constant dense<0.000000e+00> : vector<8x4xf32>
    %18 = vector.multi_reduction <add>, %17, %cst_9 [2] : vector<8x4x4xf32> to vector<8x4xf32>
    %19 = vector.shape_cast %18 : vector<8x4xf32> to vector<8x4x1xf32>
    %20 = tpu.reciprocal %19 : vector<8x4x1xf32> -> vector<8x4x1xf32>
    %21 = vector.broadcast %20 : vector<8x4x1xf32> to vector<8x4x4xf32>
    %22 = arith.mulf %17, %21 : vector<8x4x4xf32>
    %cst_10 = arith.constant dense<0.000000e+00> : vector<8x4x8xf32>
    %23 = tpu.matmul %22, %11, %cst_10 {dimension_numbers = #tpu.dot_dimension_numbers<[2], [1], [1], [2], [0, 0, 0, 1, 1, 2], [0], [0]>} : vector<8x4x4xf32>, vector<8x4x8xf32>, vector<8x4x8xf32> -> vector<8x4x8xf32>
    %24 = vector.extract_strided_slice %8 {offsets = [0, 0, 8], sizes = [8, 4, 8], strides = [1, 1, 1]} : vector<8x4x96xf32> to vector<8x4x8xf32>
    %25 = vector.extract_strided_slice %8 {offsets = [0, 0, 40], sizes = [8, 4, 8], strides = [1, 1, 1]} : vector<8x4x96xf32> to vector<8x4x8xf32>
    %26 = vector.extract_strided_slice %8 {offsets = [0, 0, 72], sizes = [8, 4, 8], strides = [1, 1, 1]} : vector<8x4x96xf32> to vector<8x4x8xf32>
    %cst_11 = arith.constant dense<0.000000e+00> : vector<8x4x4xf32>
    %27 = tpu.matmul %24, %25, %cst_11 {dimension_numbers = #tpu.dot_dimension_numbers<[2], [2], [1], [1], [0, 0, 0, 1, 1, 1], [0], [0]>} : vector<8x4x8xf32>, vector<8x4x8xf32>, vector<8x4x4xf32> -> vector<8x4x4xf32>
    %cst_12 = arith.constant dense<0xFF800000> : vector<8x4xf32>
    %28 = vector.multi_reduction <maximumf>, %27, %cst_12 [2] : vector<8x4x4xf32> to vector<8x4xf32>
    %29 = vector.shape_cast %28 : vector<8x4xf32> to vector<8x4x1xf32>
    %30 = vector.broadcast %29 : vector<8x4x1xf32> to vector<8x4x4xf32>
    %31 = arith.subf %27, %30 : vector<8x4x4xf32>
    %32 = math.exp %31 : vector<8x4x4xf32>
    %cst_13 = arith.constant dense<0.000000e+00> : vector<8x4xf32>
    %33 = vector.multi_reduction <add>, %32, %cst_13 [2] : vector<8x4x4xf32> to vector<8x4xf32>
    %34 = vector.shape_cast %33 : vector<8x4xf32> to vector<8x4x1xf32>
    %35 = tpu.reciprocal %34 : vector<8x4x1xf32> -> vector<8x4x1xf32>
    %36 = vector.broadcast %35 : vector<8x4x1xf32> to vector<8x4x4xf32>
    %37 = arith.mulf %32, %36 : vector<8x4x4xf32>
    %cst_14 = arith.constant dense<0.000000e+00> : vector<8x4x8xf32>
    %38 = tpu.matmul %37, %26, %cst_14 {dimension_numbers = #tpu.dot_dimension_numbers<[2], [1], [1], [2], [0, 0, 0, 1, 1, 2], [0], [0]>} : vector<8x4x4xf32>, vector<8x4x8xf32>, vector<8x4x8xf32> -> vector<8x4x8xf32>
    %39 = vector.extract_strided_slice %8 {offsets = [0, 0, 16], sizes = [8, 4, 8], strides = [1, 1, 1]} : vector<8x4x96xf32> to vector<8x4x8xf32>
    %40 = vector.extract_strided_slice %8 {offsets = [0, 0, 48], sizes = [8, 4, 8], strides = [1, 1, 1]} : vector<8x4x96xf32> to vector<8x4x8xf32>
    %41 = vector.extract_strided_slice %8 {offsets = [0, 0, 80], sizes = [8, 4, 8], strides = [1, 1, 1]} : vector<8x4x96xf32> to vector<8x4x8xf32>
    %cst_15 = arith.constant dense<0.000000e+00> : vector<8x4x4xf32>
    %42 = tpu.matmul %39, %40, %cst_15 {dimension_numbers = #tpu.dot_dimension_numbers<[2], [2], [1], [1], [0, 0, 0, 1, 1, 1], [0], [0]>} : vector<8x4x8xf32>, vector<8x4x8xf32>, vector<8x4x4xf32> -> vector<8x4x4xf32>
    %cst_16 = arith.constant dense<0xFF800000> : vector<8x4xf32>
    %43 = vector.multi_reduction <maximumf>, %42, %cst_16 [2] : vector<8x4x4xf32> to vector<8x4xf32>
    %44 = vector.shape_cast %43 : vector<8x4xf32> to vector<8x4x1xf32>
    %45 = vector.broadcast %44 : vector<8x4x1xf32> to vector<8x4x4xf32>
    %46 = arith.subf %42, %45 : vector<8x4x4xf32>
    %47 = math.exp %46 : vector<8x4x4xf32>
    %cst_17 = arith.constant dense<0.000000e+00> : vector<8x4xf32>
    %48 = vector.multi_reduction <add>, %47, %cst_17 [2] : vector<8x4x4xf32> to vector<8x4xf32>
    %49 = vector.shape_cast %48 : vector<8x4xf32> to vector<8x4x1xf32>
    %50 = tpu.reciprocal %49 : vector<8x4x1xf32> -> vector<8x4x1xf32>
    %51 = vector.broadcast %50 : vector<8x4x1xf32> to vector<8x4x4xf32>
    %52 = arith.mulf %47, %51 : vector<8x4x4xf32>
    %cst_18 = arith.constant dense<0.000000e+00> : vector<8x4x8xf32>
    %53 = tpu.matmul %52, %41, %cst_18 {dimension_numbers = #tpu.dot_dimension_numbers<[2], [1], [1], [2], [0, 0, 0, 1, 1, 2], [0], [0]>} : vector<8x4x4xf32>, vector<8x4x8xf32>, vector<8x4x8xf32> -> vector<8x4x8xf32>
    %54 = vector.extract_strided_slice %8 {offsets = [0, 0, 24], sizes = [8, 4, 8], strides = [1, 1, 1]} : vector<8x4x96xf32> to vector<8x4x8xf32>
    %55 = vector.extract_strided_slice %8 {offsets = [0, 0, 56], sizes = [8, 4, 8], strides = [1, 1, 1]} : vector<8x4x96xf32> to vector<8x4x8xf32>
    %56 = vector.extract_strided_slice %8 {offsets = [0, 0, 88], sizes = [8, 4, 8], strides = [1, 1, 1]} : vector<8x4x96xf32> to vector<8x4x8xf32>
    %cst_19 = arith.constant dense<0.000000e+00> : vector<8x4x4xf32>
    %57 = tpu.matmul %54, %55, %cst_19 {dimension_numbers = #tpu.dot_dimension_numbers<[2], [2], [1], [1], [0, 0, 0, 1, 1, 1], [0], [0]>} : vector<8x4x8xf32>, vector<8x4x8xf32>, vector<8x4x4xf32> -> vector<8x4x4xf32>
    %cst_20 = arith.constant dense<0xFF800000> : vector<8x4xf32>
    %58 = vector.multi_reduction <maximumf>, %57, %cst_20 [2] : vector<8x4x4xf32> to vector<8x4xf32>
    %59 = vector.shape_cast %58 : vector<8x4xf32> to vector<8x4x1xf32>
    %60 = vector.broadcast %59 : vector<8x4x1xf32> to vector<8x4x4xf32>
    %61 = arith.subf %57, %60 : vector<8x4x4xf32>
    %62 = math.exp %61 : vector<8x4x4xf32>
    %cst_21 = arith.constant dense<0.000000e+00> : vector<8x4xf32>
    %63 = vector.multi_reduction <add>, %62, %cst_21 [2] : vector<8x4x4xf32> to vector<8x4xf32>
    %64 = vector.shape_cast %63 : vector<8x4xf32> to vector<8x4x1xf32>
    %65 = tpu.reciprocal %64 : vector<8x4x1xf32> -> vector<8x4x1xf32>
    %66 = vector.broadcast %65 : vector<8x4x1xf32> to vector<8x4x4xf32>
    %67 = arith.mulf %62, %66 : vector<8x4x4xf32>
    %cst_22 = arith.constant dense<0.000000e+00> : vector<8x4x8xf32>
    %68 = tpu.matmul %67, %56, %cst_22 {dimension_numbers = #tpu.dot_dimension_numbers<[2], [1], [1], [2], [0, 0, 0, 1, 1, 2], [0], [0]>} : vector<8x4x4xf32>, vector<8x4x8xf32>, vector<8x4x8xf32> -> vector<8x4x8xf32>
    %69 = tpu.concatenate %23, %38, %53, %68 in 2 : vector<8x4x8xf32>, vector<8x4x8xf32>, vector<8x4x8xf32>, vector<8x4x8xf32> -> vector<8x4x32xf32>
    %70 = vector.shape_cast %69 : vector<8x4x32xf32> to vector<32x32xf32>
    %c0_23 = arith.constant 0 : index
    %c0_24 = arith.constant 0 : index
    %c0_25 = arith.constant 0 : index
    %71 = vector.load %arg4[%c0_23, %c0_24, %c0_25] : memref<2x32x32xf32, #tpu.memory_space<vmem>>, vector<1x32x32xf32>
    %72 = vector.shape_cast %71 : vector<1x32x32xf32> to vector<32x32xf32>
    %cst_26 = arith.constant dense<0.000000e+00> : vector<32x32xf32>
    %73 = tpu.matmul %70, %72, %cst_26 {dimension_numbers = #tpu.dot_dimension_numbers<[1], [0], [0], [1], [0, 0, 1, 1], [], []>} : vector<32x32xf32>, vector<32x32xf32>, vector<32x32xf32> -> vector<32x32xf32>
    %c0_27 = arith.constant 0 : index
    %c0_28 = arith.constant 0 : index
    %c0_29 = arith.constant 0 : index
    %74 = vector.load %arg5[%c0_27, %c0_28, %c0_29] : memref<2x1x32xf32, #tpu.memory_space<vmem>>, vector<1x1x32xf32>
    %75 = vector.shape_cast %74 : vector<1x1x32xf32> to vector<1x32xf32>
    %76 = vector.broadcast %75 : vector<1x32xf32> to vector<32x32xf32>
    %77 = arith.addf %73, %76 : vector<32x32xf32>
    %78 = arith.addf %0, %77 : vector<32x32xf32>
    %c0_30 = arith.constant 0 : index
    %c0_31 = arith.constant 0 : index
    %c0_32 = arith.constant 0 : index
    %79 = vector.load %arg6[%c0_30, %c0_31, %c0_32] : memref<2x1x32xf32, #tpu.memory_space<vmem>>, vector<1x1x32xf32>
    %80 = vector.shape_cast %79 : vector<1x1x32xf32> to vector<1x32xf32>
    %c0_33 = arith.constant 0 : index
    %c0_34 = arith.constant 0 : index
    %c0_35 = arith.constant 0 : index
    %81 = vector.load %arg7[%c0_33, %c0_34, %c0_35] : memref<2x1x32xf32, #tpu.memory_space<vmem>>, vector<1x1x32xf32>
    %82 = vector.shape_cast %81 : vector<1x1x32xf32> to vector<1x32xf32>
    %cst_36 = arith.constant dense<0.000000e+00> : vector<32xf32>
    %83 = vector.multi_reduction <add>, %78, %cst_36 [1] : vector<32x32xf32> to vector<32xf32>
    %84 = vector.shape_cast %83 : vector<32xf32> to vector<32x1xf32>
    %cst_37 = arith.constant 3.200000e+01 : f32
    %85 = vector.broadcast %cst_37 : f32 to vector<32x1xf32>
    %86 = arith.divf %84, %85 : vector<32x1xf32>
    %87 = vector.broadcast %86 : vector<32x1xf32> to vector<32x32xf32>
    %88 = arith.subf %78, %87 : vector<32x32xf32>
    %89 = arith.mulf %88, %88 : vector<32x32xf32>
    %cst_38 = arith.constant dense<0.000000e+00> : vector<32xf32>
    %90 = vector.multi_reduction <add>, %89, %cst_38 [1] : vector<32x32xf32> to vector<32xf32>
    %91 = vector.shape_cast %90 : vector<32xf32> to vector<32x1xf32>
    %cst_39 = arith.constant 3.200000e+01 : f32
    %92 = vector.broadcast %cst_39 : f32 to vector<32x1xf32>
    %93 = arith.divf %91, %92 : vector<32x1xf32>
    %94 = vector.broadcast %86 : vector<32x1xf32> to vector<32x32xf32>
    %95 = arith.subf %78, %94 : vector<32x32xf32>
    %cst_40 = arith.constant 9.99999974E-6 : f32
    %96 = vector.broadcast %cst_40 : f32 to vector<32x1xf32>
    %97 = arith.addf %93, %96 : vector<32x1xf32>
    %98 = math.rsqrt %97 : vector<32x1xf32>
    %99 = vector.broadcast %98 : vector<32x1xf32> to vector<32x32xf32>
    %100 = arith.mulf %95, %99 : vector<32x32xf32>
    %101 = vector.broadcast %80 : vector<1x32xf32> to vector<32x32xf32>
    %102 = arith.mulf %100, %101 : vector<32x32xf32>
    %103 = vector.broadcast %82 : vector<1x32xf32> to vector<32x32xf32>
    %104 = arith.addf %102, %103 : vector<32x32xf32>
    %c0_41 = arith.constant 0 : index
    %c0_42 = arith.constant 0 : index
    %c0_43 = arith.constant 0 : index
    %105 = vector.load %arg10[%c0_41, %c0_42, %c0_43] : memref<2x32x128xf32, #tpu.memory_space<vmem>>, vector<1x32x128xf32>
    %106 = vector.shape_cast %105 : vector<1x32x128xf32> to vector<32x128xf32>
    %cst_44 = arith.constant dense<0.000000e+00> : vector<32x128xf32>
    %107 = tpu.matmul %104, %106, %cst_44 {dimension_numbers = #tpu.dot_dimension_numbers<[1], [0], [0], [1], [0, 0, 1, 1], [], []>} : vector<32x32xf32>, vector<32x128xf32>, vector<32x128xf32> -> vector<32x128xf32>
    %c0_45 = arith.constant 0 : index
    %c0_46 = arith.constant 0 : index
    %c0_47 = arith.constant 0 : index
    %108 = vector.load %arg11[%c0_45, %c0_46, %c0_47] : memref<2x1x128xf32, #tpu.memory_space<vmem>>, vector<1x1x128xf32>
    %109 = vector.shape_cast %108 : vector<1x1x128xf32> to vector<1x128xf32>
    %110 = vector.broadcast %109 : vector<1x128xf32> to vector<32x128xf32>
    %111 = arith.addf %107, %110 : vector<32x128xf32>
    %cst_48 = arith.constant 0.000000e+00 : f32
    %112 = vector.broadcast %cst_48 : f32 to vector<32x128xf32>
    %113 = arith.maximumf %111, %112 : vector<32x128xf32>
    %c0_49 = arith.constant 0 : index
    %c0_50 = arith.constant 0 : index
    %c0_51 = arith.constant 0 : index
    %114 = vector.load %arg12[%c0_49, %c0_50, %c0_51] : memref<2x128x32xf32, #tpu.memory_space<vmem>>, vector<1x128x32xf32>
    %115 = vector.shape_cast %114 : vector<1x128x32xf32> to vector<128x32xf32>
    %cst_52 = arith.constant dense<0.000000e+00> : vector<32x32xf32>
    %116 = tpu.matmul %113, %115, %cst_52 {dimension_numbers = #tpu.dot_dimension_numbers<[1], [0], [0], [1], [0, 0, 1, 1], [], []>} : vector<32x128xf32>, vector<128x32xf32>, vector<32x32xf32> -> vector<32x32xf32>
    %c0_53 = arith.constant 0 : index
    %c0_54 = arith.constant 0 : index
    %c0_55 = arith.constant 0 : index
    %117 = vector.load %arg13[%c0_53, %c0_54, %c0_55] : memref<2x1x32xf32, #tpu.memory_space<vmem>>, vector<1x1x32xf32>
    %118 = vector.shape_cast %117 : vector<1x1x32xf32> to vector<1x32xf32>
    %119 = vector.broadcast %118 : vector<1x32xf32> to vector<32x32xf32>
    %120 = arith.addf %116, %119 : vector<32x32xf32>
    %121 = arith.addf %104, %120 : vector<32x32xf32>
    %c0_56 = arith.constant 0 : index
    %c0_57 = arith.constant 0 : index
    %c0_58 = arith.constant 0 : index
    %122 = vector.load %arg8[%c0_56, %c0_57, %c0_58] : memref<2x1x32xf32, #tpu.memory_space<vmem>>, vector<1x1x32xf32>
    %123 = vector.shape_cast %122 : vector<1x1x32xf32> to vector<1x32xf32>
    %c0_59 = arith.constant 0 : index
    %c0_60 = arith.constant 0 : index
    %c0_61 = arith.constant 0 : index
    %124 = vector.load %arg9[%c0_59, %c0_60, %c0_61] : memref<2x1x32xf32, #tpu.memory_space<vmem>>, vector<1x1x32xf32>
    %125 = vector.shape_cast %124 : vector<1x1x32xf32> to vector<1x32xf32>
    %cst_62 = arith.constant dense<0.000000e+00> : vector<32xf32>
    %126 = vector.multi_reduction <add>, %121, %cst_62 [1] : vector<32x32xf32> to vector<32xf32>
    %127 = vector.shape_cast %126 : vector<32xf32> to vector<32x1xf32>
    %cst_63 = arith.constant 3.200000e+01 : f32
    %128 = vector.broadcast %cst_63 : f32 to vector<32x1xf32>
    %129 = arith.divf %127, %128 : vector<32x1xf32>
    %130 = vector.broadcast %129 : vector<32x1xf32> to vector<32x32xf32>
    %131 = arith.subf %121, %130 : vector<32x32xf32>
    %132 = arith.mulf %131, %131 : vector<32x32xf32>
    %cst_64 = arith.constant dense<0.000000e+00> : vector<32xf32>
    %133 = vector.multi_reduction <add>, %132, %cst_64 [1] : vector<32x32xf32> to vector<32xf32>
    %134 = vector.shape_cast %133 : vector<32xf32> to vector<32x1xf32>
    %cst_65 = arith.constant 3.200000e+01 : f32
    %135 = vector.broadcast %cst_65 : f32 to vector<32x1xf32>
    %136 = arith.divf %134, %135 : vector<32x1xf32>
    %137 = vector.broadcast %129 : vector<32x1xf32> to vector<32x32xf32>
    %138 = arith.subf %121, %137 : vector<32x32xf32>
    %cst_66 = arith.constant 9.99999974E-6 : f32
    %139 = vector.broadcast %cst_66 : f32 to vector<32x1xf32>
    %140 = arith.addf %136, %139 : vector<32x1xf32>
    %141 = math.rsqrt %140 : vector<32x1xf32>
    %142 = vector.broadcast %141 : vector<32x1xf32> to vector<32x32xf32>
    %143 = arith.mulf %138, %142 : vector<32x32xf32>
    %144 = vector.broadcast %123 : vector<1x32xf32> to vector<32x32xf32>
    %145 = arith.mulf %143, %144 : vector<32x32xf32>
    %146 = vector.broadcast %125 : vector<1x32xf32> to vector<32x32xf32>
    %147 = arith.addf %145, %146 : vector<32x32xf32>
    %c1 = arith.constant 1 : index
    %c0_67 = arith.constant 0 : index
    %c0_68 = arith.constant 0 : index
    %148 = vector.load %arg2[%c1, %c0_67, %c0_68] : memref<2x32x96xf32, #tpu.memory_space<vmem>>, vector<1x32x96xf32>
    %149 = vector.shape_cast %148 : vector<1x32x96xf32> to vector<32x96xf32>
    %cst_69 = arith.constant dense<0.000000e+00> : vector<32x96xf32>
    %150 = tpu.matmul %147, %149, %cst_69 {dimension_numbers = #tpu.dot_dimension_numbers<[1], [0], [0], [1], [0, 0, 1, 1], [], []>} : vector<32x32xf32>, vector<32x96xf32>, vector<32x96xf32> -> vector<32x96xf32>
    %c1_70 = arith.constant 1 : index
    %c0_71 = arith.constant 0 : index
    %c0_72 = arith.constant 0 : index
    %151 = vector.load %arg3[%c1_70, %c0_71, %c0_72] : memref<2x1x96xf32, #tpu.memory_space<vmem>>, vector<1x1x96xf32>
    %152 = vector.shape_cast %151 : vector<1x1x96xf32> to vector<1x96xf32>
    %153 = vector.broadcast %152 : vector<1x96xf32> to vector<32x96xf32>
    %154 = arith.addf %150, %153 : vector<32x96xf32>
    %155 = vector.shape_cast %154 : vector<32x96xf32> to vector<8x4x96xf32>
    %156 = vector.extract_strided_slice %155 {offsets = [0, 0, 0], sizes = [8, 4, 8], strides = [1, 1, 1]} : vector<8x4x96xf32> to vector<8x4x8xf32>
    %157 = vector.extract_strided_slice %155 {offsets = [0, 0, 32], sizes = [8, 4, 8], strides = [1, 1, 1]} : vector<8x4x96xf32> to vector<8x4x8xf32>
    %158 = vector.extract_strided_slice %155 {offsets = [0, 0, 64], sizes = [8, 4, 8], strides = [1, 1, 1]} : vector<8x4x96xf32> to vector<8x4x8xf32>
    %cst_73 = arith.constant dense<0.000000e+00> : vector<8x4x4xf32>
    %159 = tpu.matmul %156, %157, %cst_73 {dimension_numbers = #tpu.dot_dimension_numbers<[2], [2], [1], [1], [0, 0, 0, 1, 1, 1], [0], [0]>} : vector<8x4x8xf32>, vector<8x4x8xf32>, vector<8x4x4xf32> -> vector<8x4x4xf32>
    %cst_74 = arith.constant dense<0xFF800000> : vector<8x4xf32>
    %160 = vector.multi_reduction <maximumf>, %159, %cst_74 [2] : vector<8x4x4xf32> to vector<8x4xf32>
    %161 = vector.shape_cast %160 : vector<8x4xf32> to vector<8x4x1xf32>
    %162 = vector.broadcast %161 : vector<8x4x1xf32> to vector<8x4x4xf32>
    %163 = arith.subf %159, %162 : vector<8x4x4xf32>
    %164 = math.exp %163 : vector<8x4x4xf32>
    %cst_75 = arith.constant dense<0.000000e+00> : vector<8x4xf32>
    %165 = vector.multi_reduction <add>, %164, %cst_75 [2] : vector<8x4x4xf32> to vector<8x4xf32>
    %166 = vector.shape_cast %165 : vector<8x4xf32> to vector<8x4x1xf32>
    %167 = tpu.reciprocal %166 : vector<8x4x1xf32> -> vector<8x4x1xf32>
    %168 = vector.broadcast %167 : vector<8x4x1xf32> to vector<8x4x4xf32>
    %169 = arith.mulf %164, %168 : vector<8x4x4xf32>
    %cst_76 = arith.constant dense<0.000000e+00> : vector<8x4x8xf32>
    %170 = tpu.matmul %169, %158, %cst_76 {dimension_numbers = #tpu.dot_dimension_numbers<[2], [1], [1], [2], [0, 0, 0, 1, 1, 2], [0], [0]>} : vector<8x4x4xf32>, vector<8x4x8xf32>, vector<8x4x8xf32> -> vector<8x4x8xf32>
    %171 = vector.extract_strided_slice %155 {offsets = [0, 0, 8], sizes = [8, 4, 8], strides = [1, 1, 1]} : vector<8x4x96xf32> to vector<8x4x8xf32>
    %172 = vector.extract_strided_slice %155 {offsets = [0, 0, 40], sizes = [8, 4, 8], strides = [1, 1, 1]} : vector<8x4x96xf32> to vector<8x4x8xf32>
    %173 = vector.extract_strided_slice %155 {offsets = [0, 0, 72], sizes = [8, 4, 8], strides = [1, 1, 1]} : vector<8x4x96xf32> to vector<8x4x8xf32>
    %cst_77 = arith.constant dense<0.000000e+00> : vector<8x4x4xf32>
    %174 = tpu.matmul %171, %172, %cst_77 {dimension_numbers = #tpu.dot_dimension_numbers<[2], [2], [1], [1], [0, 0, 0, 1, 1, 1], [0], [0]>} : vector<8x4x8xf32>, vector<8x4x8xf32>, vector<8x4x4xf32> -> vector<8x4x4xf32>
    %cst_78 = arith.constant dense<0xFF800000> : vector<8x4xf32>
    %175 = vector.multi_reduction <maximumf>, %174, %cst_78 [2] : vector<8x4x4xf32> to vector<8x4xf32>
    %176 = vector.shape_cast %175 : vector<8x4xf32> to vector<8x4x1xf32>
    %177 = vector.broadcast %176 : vector<8x4x1xf32> to vector<8x4x4xf32>
    %178 = arith.subf %174, %177 : vector<8x4x4xf32>
    %179 = math.exp %178 : vector<8x4x4xf32>
    %cst_79 = arith.constant dense<0.000000e+00> : vector<8x4xf32>
    %180 = vector.multi_reduction <add>, %179, %cst_79 [2] : vector<8x4x4xf32> to vector<8x4xf32>
    %181 = vector.shape_cast %180 : vector<8x4xf32> to vector<8x4x1xf32>
    %182 = tpu.reciprocal %181 : vector<8x4x1xf32> -> vector<8x4x1xf32>
    %183 = vector.broadcast %182 : vector<8x4x1xf32> to vector<8x4x4xf32>
    %184 = arith.mulf %179, %183 : vector<8x4x4xf32>
    %cst_80 = arith.constant dense<0.000000e+00> : vector<8x4x8xf32>
    %185 = tpu.matmul %184, %173, %cst_80 {dimension_numbers = #tpu.dot_dimension_numbers<[2], [1], [1], [2], [0, 0, 0, 1, 1, 2], [0], [0]>} : vector<8x4x4xf32>, vector<8x4x8xf32>, vector<8x4x8xf32> -> vector<8x4x8xf32>
    %186 = vector.extract_strided_slice %155 {offsets = [0, 0, 16], sizes = [8, 4, 8], strides = [1, 1, 1]} : vector<8x4x96xf32> to vector<8x4x8xf32>
    %187 = vector.extract_strided_slice %155 {offsets = [0, 0, 48], sizes = [8, 4, 8], strides = [1, 1, 1]} : vector<8x4x96xf32> to vector<8x4x8xf32>
    %188 = vector.extract_strided_slice %155 {offsets = [0, 0, 80], sizes = [8, 4, 8], strides = [1, 1, 1]} : vector<8x4x96xf32> to vector<8x4x8xf32>
    %cst_81 = arith.constant dense<0.000000e+00> : vector<8x4x4xf32>
    %189 = tpu.matmul %186, %187, %cst_81 {dimension_numbers = #tpu.dot_dimension_numbers<[2], [2], [1], [1], [0, 0, 0, 1, 1, 1], [0], [0]>} : vector<8x4x8xf32>, vector<8x4x8xf32>, vector<8x4x4xf32> -> vector<8x4x4xf32>
    %cst_82 = arith.constant dense<0xFF800000> : vector<8x4xf32>
    %190 = vector.multi_reduction <maximumf>, %189, %cst_82 [2] : vector<8x4x4xf32> to vector<8x4xf32>
    %191 = vector.shape_cast %190 : vector<8x4xf32> to vector<8x4x1xf32>
    %192 = vector.broadcast %191 : vector<8x4x1xf32> to vector<8x4x4xf32>
    %193 = arith.subf %189, %192 : vector<8x4x4xf32>
    %194 = math.exp %193 : vector<8x4x4xf32>
    %cst_83 = arith.constant dense<0.000000e+00> : vector<8x4xf32>
    %195 = vector.multi_reduction <add>, %194, %cst_83 [2] : vector<8x4x4xf32> to vector<8x4xf32>
    %196 = vector.shape_cast %195 : vector<8x4xf32> to vector<8x4x1xf32>
    %197 = tpu.reciprocal %196 : vector<8x4x1xf32> -> vector<8x4x1xf32>
    %198 = vector.broadcast %197 : vector<8x4x1xf32> to vector<8x4x4xf32>
    %199 = arith.mulf %194, %198 : vector<8x4x4xf32>
    %cst_84 = arith.constant dense<0.000000e+00> : vector<8x4x8xf32>
    %200 = tpu.matmul %199, %188, %cst_84 {dimension_numbers = #tpu.dot_dimension_numbers<[2], [1], [1], [2], [0, 0, 0, 1, 1, 2], [0], [0]>} : vector<8x4x4xf32>, vector<8x4x8xf32>, vector<8x4x8xf32> -> vector<8x4x8xf32>
    %201 = vector.extract_strided_slice %155 {offsets = [0, 0, 24], sizes = [8, 4, 8], strides = [1, 1, 1]} : vector<8x4x96xf32> to vector<8x4x8xf32>
    %202 = vector.extract_strided_slice %155 {offsets = [0, 0, 56], sizes = [8, 4, 8], strides = [1, 1, 1]} : vector<8x4x96xf32> to vector<8x4x8xf32>
    %203 = vector.extract_strided_slice %155 {offsets = [0, 0, 88], sizes = [8, 4, 8], strides = [1, 1, 1]} : vector<8x4x96xf32> to vector<8x4x8xf32>
    %cst_85 = arith.constant dense<0.000000e+00> : vector<8x4x4xf32>
    %204 = tpu.matmul %201, %202, %cst_85 {dimension_numbers = #tpu.dot_dimension_numbers<[2], [2], [1], [1], [0, 0, 0, 1, 1, 1], [0], [0]>} : vector<8x4x8xf32>, vector<8x4x8xf32>, vector<8x4x4xf32> -> vector<8x4x4xf32>
    %cst_86 = arith.constant dense<0xFF800000> : vector<8x4xf32>
    %205 = vector.multi_reduction <maximumf>, %204, %cst_86 [2] : vector<8x4x4xf32> to vector<8x4xf32>
    %206 = vector.shape_cast %205 : vector<8x4xf32> to vector<8x4x1xf32>
    %207 = vector.broadcast %206 : vector<8x4x1xf32> to vector<8x4x4xf32>
    %208 = arith.subf %204, %207 : vector<8x4x4xf32>
    %209 = math.exp %208 : vector<8x4x4xf32>
    %cst_87 = arith.constant dense<0.000000e+00> : vector<8x4xf32>
    %210 = vector.multi_reduction <add>, %209, %cst_87 [2] : vector<8x4x4xf32> to vector<8x4xf32>
    %211 = vector.shape_cast %210 : vector<8x4xf32> to vector<8x4x1xf32>
    %212 = tpu.reciprocal %211 : vector<8x4x1xf32> -> vector<8x4x1xf32>
    %213 = vector.broadcast %212 : vector<8x4x1xf32> to vector<8x4x4xf32>
    %214 = arith.mulf %209, %213 : vector<8x4x4xf32>
    %cst_88 = arith.constant dense<0.000000e+00> : vector<8x4x8xf32>
    %215 = tpu.matmul %214, %203, %cst_88 {dimension_numbers = #tpu.dot_dimension_numbers<[2], [1], [1], [2], [0, 0, 0, 1, 1, 2], [0], [0]>} : vector<8x4x4xf32>, vector<8x4x8xf32>, vector<8x4x8xf32> -> vector<8x4x8xf32>
    %216 = tpu.concatenate %170, %185, %200, %215 in 2 : vector<8x4x8xf32>, vector<8x4x8xf32>, vector<8x4x8xf32>, vector<8x4x8xf32> -> vector<8x4x32xf32>
    %217 = vector.shape_cast %216 : vector<8x4x32xf32> to vector<32x32xf32>
    %c1_89 = arith.constant 1 : index
    %c0_90 = arith.constant 0 : index
    %c0_91 = arith.constant 0 : index
    %218 = vector.load %arg4[%c1_89, %c0_90, %c0_91] : memref<2x32x32xf32, #tpu.memory_space<vmem>>, vector<1x32x32xf32>
    %219 = vector.shape_cast %218 : vector<1x32x32xf32> to vector<32x32xf32>
    %cst_92 = arith.constant dense<0.000000e+00> : vector<32x32xf32>
    %220 = tpu.matmul %217, %219, %cst_92 {dimension_numbers = #tpu.dot_dimension_numbers<[1], [0], [0], [1], [0, 0, 1, 1], [], []>} : vector<32x32xf32>, vector<32x32xf32>, vector<32x32xf32> -> vector<32x32xf32>
    %c1_93 = arith.constant 1 : index
    %c0_94 = arith.constant 0 : index
    %c0_95 = arith.constant 0 : index
    %221 = vector.load %arg5[%c1_93, %c0_94, %c0_95] : memref<2x1x32xf32, #tpu.memory_space<vmem>>, vector<1x1x32xf32>
    %222 = vector.shape_cast %221 : vector<1x1x32xf32> to vector<1x32xf32>
    %223 = vector.broadcast %222 : vector<1x32xf32> to vector<32x32xf32>
    %224 = arith.addf %220, %223 : vector<32x32xf32>
    %225 = arith.addf %147, %224 : vector<32x32xf32>
    %c1_96 = arith.constant 1 : index
    %c0_97 = arith.constant 0 : index
    %c0_98 = arith.constant 0 : index
    %226 = vector.load %arg6[%c1_96, %c0_97, %c0_98] : memref<2x1x32xf32, #tpu.memory_space<vmem>>, vector<1x1x32xf32>
    %227 = vector.shape_cast %226 : vector<1x1x32xf32> to vector<1x32xf32>
    %c1_99 = arith.constant 1 : index
    %c0_100 = arith.constant 0 : index
    %c0_101 = arith.constant 0 : index
    %228 = vector.load %arg7[%c1_99, %c0_100, %c0_101] : memref<2x1x32xf32, #tpu.memory_space<vmem>>, vector<1x1x32xf32>
    %229 = vector.shape_cast %228 : vector<1x1x32xf32> to vector<1x32xf32>
    %cst_102 = arith.constant dense<0.000000e+00> : vector<32xf32>
    %230 = vector.multi_reduction <add>, %225, %cst_102 [1] : vector<32x32xf32> to vector<32xf32>
    %231 = vector.shape_cast %230 : vector<32xf32> to vector<32x1xf32>
    %cst_103 = arith.constant 3.200000e+01 : f32
    %232 = vector.broadcast %cst_103 : f32 to vector<32x1xf32>
    %233 = arith.divf %231, %232 : vector<32x1xf32>
    %234 = vector.broadcast %233 : vector<32x1xf32> to vector<32x32xf32>
    %235 = arith.subf %225, %234 : vector<32x32xf32>
    %236 = arith.mulf %235, %235 : vector<32x32xf32>
    %cst_104 = arith.constant dense<0.000000e+00> : vector<32xf32>
    %237 = vector.multi_reduction <add>, %236, %cst_104 [1] : vector<32x32xf32> to vector<32xf32>
    %238 = vector.shape_cast %237 : vector<32xf32> to vector<32x1xf32>
    %cst_105 = arith.constant 3.200000e+01 : f32
    %239 = vector.broadcast %cst_105 : f32 to vector<32x1xf32>
    %240 = arith.divf %238, %239 : vector<32x1xf32>
    %241 = vector.broadcast %233 : vector<32x1xf32> to vector<32x32xf32>
    %242 = arith.subf %225, %241 : vector<32x32xf32>
    %cst_106 = arith.constant 9.99999974E-6 : f32
    %243 = vector.broadcast %cst_106 : f32 to vector<32x1xf32>
    %244 = arith.addf %240, %243 : vector<32x1xf32>
    %245 = math.rsqrt %244 : vector<32x1xf32>
    %246 = vector.broadcast %245 : vector<32x1xf32> to vector<32x32xf32>
    %247 = arith.mulf %242, %246 : vector<32x32xf32>
    %248 = vector.broadcast %227 : vector<1x32xf32> to vector<32x32xf32>
    %249 = arith.mulf %247, %248 : vector<32x32xf32>
    %250 = vector.broadcast %229 : vector<1x32xf32> to vector<32x32xf32>
    %251 = arith.addf %249, %250 : vector<32x32xf32>
    %c1_107 = arith.constant 1 : index
    %c0_108 = arith.constant 0 : index
    %c0_109 = arith.constant 0 : index
    %252 = vector.load %arg10[%c1_107, %c0_108, %c0_109] : memref<2x32x128xf32, #tpu.memory_space<vmem>>, vector<1x32x128xf32>
    %253 = vector.shape_cast %252 : vector<1x32x128xf32> to vector<32x128xf32>
    %cst_110 = arith.constant dense<0.000000e+00> : vector<32x128xf32>
    %254 = tpu.matmul %251, %253, %cst_110 {dimension_numbers = #tpu.dot_dimension_numbers<[1], [0], [0], [1], [0, 0, 1, 1], [], []>} : vector<32x32xf32>, vector<32x128xf32>, vector<32x128xf32> -> vector<32x128xf32>
    %c1_111 = arith.constant 1 : index
    %c0_112 = arith.constant 0 : index
    %c0_113 = arith.constant 0 : index
    %255 = vector.load %arg11[%c1_111, %c0_112, %c0_113] : memref<2x1x128xf32, #tpu.memory_space<vmem>>, vector<1x1x128xf32>
    %256 = vector.shape_cast %255 : vector<1x1x128xf32> to vector<1x128xf32>
    %257 = vector.broadcast %256 : vector<1x128xf32> to vector<32x128xf32>
    %258 = arith.addf %254, %257 : vector<32x128xf32>
    %cst_114 = arith.constant 0.000000e+00 : f32
    %259 = vector.broadcast %cst_114 : f32 to vector<32x128xf32>
    %260 = arith.maximumf %258, %259 : vector<32x128xf32>
    %c1_115 = arith.constant 1 : index
    %c0_116 = arith.constant 0 : index
    %c0_117 = arith.constant 0 : index
    %261 = vector.load %arg12[%c1_115, %c0_116, %c0_117] : memref<2x128x32xf32, #tpu.memory_space<vmem>>, vector<1x128x32xf32>
    %262 = vector.shape_cast %261 : vector<1x128x32xf32> to vector<128x32xf32>
    %cst_118 = arith.constant dense<0.000000e+00> : vector<32x32xf32>
    %263 = tpu.matmul %260, %262, %cst_118 {dimension_numbers = #tpu.dot_dimension_numbers<[1], [0], [0], [1], [0, 0, 1, 1], [], []>} : vector<32x128xf32>, vector<128x32xf32>, vector<32x32xf32> -> vector<32x32xf32>
    %c1_119 = arith.constant 1 : index
    %c0_120 = arith.constant 0 : index
    %c0_121 = arith.constant 0 : index
    %264 = vector.load %arg13[%c1_119, %c0_120, %c0_121] : memref<2x1x32xf32, #tpu.memory_space<vmem>>, vector<1x1x32xf32>
    %265 = vector.shape_cast %264 : vector<1x1x32xf32> to vector<1x32xf32>
    %266 = vector.broadcast %265 : vector<1x32xf32> to vector<32x32xf32>
    %267 = arith.addf %263, %266 : vector<32x32xf32>
    %268 = arith.addf %251, %267 : vector<32x32xf32>
    %c1_122 = arith.constant 1 : index
    %c0_123 = arith.constant 0 : index
    %c0_124 = arith.constant 0 : index
    %269 = vector.load %arg8[%c1_122, %c0_123, %c0_124] : memref<2x1x32xf32, #tpu.memory_space<vmem>>, vector<1x1x32xf32>
    %270 = vector.shape_cast %269 : vector<1x1x32xf32> to vector<1x32xf32>
    %c1_125 = arith.constant 1 : index
    %c0_126 = arith.constant 0 : index
    %c0_127 = arith.constant 0 : index
    %271 = vector.load %arg9[%c1_125, %c0_126, %c0_127] : memref<2x1x32xf32, #tpu.memory_space<vmem>>, vector<1x1x32xf32>
    %272 = vector.shape_cast %271 : vector<1x1x32xf32> to vector<1x32xf32>
    %cst_128 = arith.constant dense<0.000000e+00> : vector<32xf32>
    %273 = vector.multi_reduction <add>, %268, %cst_128 [1] : vector<32x32xf32> to vector<32xf32>
    %274 = vector.shape_cast %273 : vector<32xf32> to vector<32x1xf32>
    %cst_129 = arith.constant 3.200000e+01 : f32
    %275 = vector.broadcast %cst_129 : f32 to vector<32x1xf32>
    %276 = arith.divf %274, %275 : vector<32x1xf32>
    %277 = vector.broadcast %276 : vector<32x1xf32> to vector<32x32xf32>
    %278 = arith.subf %268, %277 : vector<32x32xf32>
    %279 = arith.mulf %278, %278 : vector<32x32xf32>
    %cst_130 = arith.constant dense<0.000000e+00> : vector<32xf32>
    %280 = vector.multi_reduction <add>, %279, %cst_130 [1] : vector<32x32xf32> to vector<32xf32>
    %281 = vector.shape_cast %280 : vector<32xf32> to vector<32x1xf32>
    %cst_131 = arith.constant 3.200000e+01 : f32
    %282 = vector.broadcast %cst_131 : f32 to vector<32x1xf32>
    %283 = arith.divf %281, %282 : vector<32x1xf32>
    %284 = vector.broadcast %276 : vector<32x1xf32> to vector<32x32xf32>
    %285 = arith.subf %268, %284 : vector<32x32xf32>
    %cst_132 = arith.constant 9.99999974E-6 : f32
    %286 = vector.broadcast %cst_132 : f32 to vector<32x1xf32>
    %287 = arith.addf %283, %286 : vector<32x1xf32>
    %288 = math.rsqrt %287 : vector<32x1xf32>
    %289 = vector.broadcast %288 : vector<32x1xf32> to vector<32x32xf32>
    %290 = arith.mulf %285, %289 : vector<32x32xf32>
    %291 = vector.broadcast %270 : vector<1x32xf32> to vector<32x32xf32>
    %292 = arith.mulf %290, %291 : vector<32x32xf32>
    %293 = vector.broadcast %272 : vector<1x32xf32> to vector<32x32xf32>
    %294 = arith.addf %292, %293 : vector<32x32xf32>
    %c0_133 = arith.constant 0 : index
    %c0_134 = arith.constant 0 : index
    %295 = vector.load %arg14[%c0_133, %c0_134] : memref<32x128xf32, #tpu.memory_space<vmem>>, vector<32x128xf32>
    %cst_135 = arith.constant dense<0.000000e+00> : vector<32x128xf32>
    %296 = tpu.matmul %294, %295, %cst_135 {dimension_numbers = #tpu.dot_dimension_numbers<[1], [0], [0], [1], [0, 0, 1, 1], [], []>} : vector<32x32xf32>, vector<32x128xf32>, vector<32x128xf32> -> vector<32x128xf32>
    %c0_136 = arith.constant 0 : index
    %c0_137 = arith.constant 0 : index
    %297 = vector.load %arg15[%c0_136, %c0_137] : memref<1x128xf32, #tpu.memory_space<vmem>>, vector<1x128xf32>
    %298 = vector.broadcast %297 : vector<1x128xf32> to vector<32x128xf32>
    %299 = arith.addf %296, %298 : vector<32x128xf32>
    %c0_138 = arith.constant 0 : index
    %c0_139 = arith.constant 0 : index
    %300 = vector.load %arg16[%c0_138, %c0_139] : memref<32x128xf32, #tpu.memory_space<vmem>>, vector<32x128xf32>
    tpu.vector_store %arg16[%c0_138, %c0_139], %299 {strides = array<i32>} : memref<32x128xf32, #tpu.memory_space<vmem>>, vector<32x128xf32>,
    return
  }
  func.func @transform_0(%arg0: i32) -> (i32, i32) {
    %c0_i32 = arith.constant 0 : i32
    %c0_i32_0 = arith.constant 0 : i32
    %c0_i32_1 = arith.constant 0 : i32
    return %c0_i32, %c0_i32_0 : i32, i32
  }
  func.func @transform_1(%arg0: i32) -> (i32, i32, i32) {
    %c0_i32 = arith.constant 0 : i32
    %c0_i32_0 = arith.constant 0 : i32
    %c0_i32_1 = arith.constant 0 : i32
    %c0_i32_2 = arith.constant 0 : i32
    return %c0_i32, %c0_i32_0, %c0_i32_1 : i32, i32, i32
  }
  func.func @transform_2(%arg0: i32) -> (i32, i32, i32) {
    %c0_i32 = arith.constant 0 : i32
    %c0_i32_0 = arith.constant 0 : i32
    %c0_i32_1 = arith.constant 0 : i32
    %c0_i32_2 = arith.constant 0 : i32
    return %c0_i32, %c0_i32_0, %c0_i32_1 : i32, i32, i32
  }
  func.func @transform_3(%arg0: i32) -> (i32, i32, i32) {
    %c0_i32 = arith.constant 0 : i32
    %c0_i32_0 = arith.constant 0 : i32
    %c0_i32_1 = arith.constant 0 : i32
    %c0_i32_2 = arith.constant 0 : i32
    return %c0_i32, %c0_i32_0, %c0_i32_1 : i32, i32, i32
  }
  func.func @transform_4(%arg0: i32) -> (i32, i32, i32) {
    %c0_i32 = arith.constant 0 : i32
    %c0_i32_0 = arith.constant 0 : i32
    %c0_i32_1 = arith.constant 0 : i32
    %c0_i32_2 = arith.constant 0 : i32
    return %c0_i32, %c0_i32_0, %c0_i32_1 : i32, i32, i32
  }
  func.func @transform_5(%arg0: i32) -> (i32, i32, i32) {
    %c0_i32 = arith.constant 0 : i32
    %c0_i32_0 = arith.constant 0 : i32
    %c0_i32_1 = arith.constant 0 : i32
    %c0_i32_2 = arith.constant 0 : i32
    return %c0_i32, %c0_i32_0, %c0_i32_1 : i32, i32, i32
  }
  func.func @transform_6(%arg0: i32) -> (i32, i32, i32) {
    %c0_i32 = arith.constant 0 : i32
    %c0_i32_0 = arith.constant 0 : i32
    %c0_i32_1 = arith.constant 0 : i32
    %c0_i32_2 = arith.constant 0 : i32
    return %c0_i32, %c0_i32_0, %c0_i32_1 : i32, i32, i32
  }
  func.func @transform_7(%arg0: i32) -> (i32, i32, i32) {
    %c0_i32 = arith.constant 0 : i32
    %c0_i32_0 = arith.constant 0 : i32
    %c0_i32_1 = arith.constant 0 : i32
    %c0_i32_2 = arith.constant 0 : i32
    return %c0_i32, %c0_i32_0, %c0_i32_1 : i32, i32, i32
  }
  func.func @transform_8(%arg0: i32) -> (i32, i32, i32) {
    %c0_i32 = arith.constant 0 : i32
    %c0_i32_0 = arith.constant 0 : i32
    %c0_i32_1 = arith.constant 0 : i32
    %c0_i32_2 = arith.constant 0 : i32
    return %c0_i32, %c0_i32_0, %c0_i32_1 : i32, i32, i32
  }
  func.func @transform_9(%arg0: i32) -> (i32, i32, i32) {
    %c0_i32 = arith.constant 0 : i32
    %c0_i32_0 = arith.constant 0 : i32
    %c0_i32_1 = arith.constant 0 : i32
    %c0_i32_2 = arith.constant 0 : i32
    return %c0_i32, %c0_i32_0, %c0_i32_1 : i32, i32, i32
  }
  func.func @transform_10(%arg0: i32) -> (i32, i32, i32) {
    %c0_i32 = arith.constant 0 : i32
    %c0_i32_0 = arith.constant 0 : i32
    %c0_i32_1 = arith.constant 0 : i32
    %c0_i32_2 = arith.constant 0 : i32
    return %c0_i32, %c0_i32_0, %c0_i32_1 : i32, i32, i32
  }
  func.func @transform_11(%arg0: i32) -> (i32, i32, i32) {
    %c0_i32 = arith.constant 0 : i32
    %c0_i32_0 = arith.constant 0 : i32
    %c0_i32_1 = arith.constant 0 : i32
    %c0_i32_2 = arith.constant 0 : i32
    return %c0_i32, %c0_i32_0, %c0_i32_1 : i32, i32, i32
  }
  func.func @transform_12(%arg0: i32) -> (i32, i32, i32) {
    %c0_i32 = arith.constant 0 : i32
    %c0_i32_0 = arith.constant 0 : i32
    %c0_i32_1 = arith.constant 0 : i32
    %c0_i32_2 = arith.constant 0 : i32
    return %c0_i32, %c0_i32_0, %c0_i32_1 : i32, i32, i32
  }
  func.func @transform_13(%arg0: i32) -> (i32, i32) {
    %c0_i32 = arith.constant 0 : i32
    %c0_i32_0 = arith.constant 0 : i32
    %c0_i32_1 = arith.constant 0 : i32
    return %c0_i32, %c0_i32_0 : i32, i32
  }
  func.func @transform_14(%arg0: i32) -> (i32, i32) {
    %c0_i32 = arith.constant 0 : i32
    %c0_i32_0 = arith.constant 0 : i32
    %c0_i32_1 = arith.constant 0 : i32
    return %c0_i32, %c0_i32_0 : i32, i32
  }
  func.func @transform_15(%arg0: i32) -> (i32, i32) {
    %c0_i32 = arith.constant 0 : i32
    %c0_i32_0 = arith.constant 0 : i32
    %c0_i32_1 = arith.constant 0 : i32
    return %c0_i32, %c0_i32_0 : i32, i32
  }
}

</mosaic_0001>

<bundles_post_ra>
// kernel: transformer_forward.1
= control target key start
LH: loop header
LB: loop body
LE: loop exit
PB: predicated region body
PF: predicated region fallthrough
CT: control target
= control target key end

     0   :  { %vm65_vm0 = vcmask 261120   ;;  %v14169_v10 = vmov 0.0   ;;  %vm14170_vm1 = vmmov 0   ;;  %s14171_s21 = smov 96   ;;  %s14172_s22 = smov 64   ;;  %vm173_vm2 = vcmask 64512   ;;  %s16515_s1 = inlined_call_operand.vmem [shape: f32[2,32,96], index: 1, kind: input, shape index: {}]   ;;  %s16516_s0 = inlined_call_operand.vmem [shape: f32[32,32], index: 0, kind: input, shape index: {}]   ;;  %s16517_s2 = inlined_call_operand.vmem [shape: f32[2,1,96], index: 2, kind: input, shape index: {}]   ;;  %s16518_s3 = inlined_call_operand.vmem [shape: f32[2,32,32], index: 3, kind: input, shape index: {}]   ;;  %s16519_s4 = inlined_call_operand.vmem [shape: f32[2,1,32], index: 4, kind: input, shape index: {}]   ;;  %s16520_s9 = inlined_call_operand.vmem [shape: f32[2,32,128], index: 9, kind: input, shape index: {}]   ;;  %s16521_s11 = inlined_call_operand.vmem [shape: f32[2,128,32], index: 11, kind: input, shape index: {}]   ;;  %s16522_s5 = inlined_call_operand.vmem [shape: f32[2,1,32], index: 5, kind: input, shape index: {}]   ;;  %s16523_s6 = inlined_call_operand.vmem [shape: f32[2,1,32], index: 6, kind: input, shape index: {}]   ;;  %s16524_s10 = inlined_call_operand.vmem [shape: f32[2,1,128], index: 10, kind: input, shape index: {}]   ;;  %s16525_s12 = inlined_call_operand.vmem [shape: f32[2,1,32], index: 12, kind: input, shape index: {}]   ;;  %s16526_s7 = inlined_call_operand.vmem [shape: f32[2,1,32], index: 7, kind: input, shape index: {}]   ;;  %s16527_s8 = inlined_call_operand.vmem [shape: f32[2,1,32], index: 8, kind: input, shape index: {}]   ;;  %s16528_s13 = inlined_call_operand.vmem [shape: f32[32,128], index: 13, kind: input, shape index: {}]   ;;  %s16529_s14 = inlined_call_operand.vmem [shape: f32[1,128], index: 14, kind: input, shape index: {}]   ;;  %s16530_s15 = inlined_call_operand.vmem [shape: f32[32,128], index: 15, kind: output, shape index: {}]  }
   0x1   :  { %v54_v0 = vld [vmem:[%s16515_s1] sm:$0xff]  ;;  %v55_v1 = vld [vmem:[%s16515_s1 + $0x8] sm:$0xff]  ;;  %v56_v2 = vld [vmem:[%s16515_s1 + $0x10] sm:$0xff]  ;;  %12941 = vmatprep.subr.mxu1 %v14169_v10  ;;  %12943 = vmatprep.mubr.msk.f32.mxu1 %vm14170_vm1, %v14169_v10  ;;  %s14173_s23 = smov 88   ;;  %vm875_vm3 = vcmask 1043456   ;;  %vm780_vm4 = vcmask 27648  }
   0x2   :  { %v13741_v3 = vpack.c.bf16 %v55_v1, %v54_v0  ;;  %v57_v4 = vld [vmem:[%s16515_s1 + $0x18] sm:$0xff]  ;;  %v50_v5 = vld [vmem:[%s16516_s0] sm:$0xff]  ;;  %v51_v7 = vld [vmem:[%s16516_s0 + $0x8] sm:$0xff]  ;;  %s14174_s24 = smov 120   ;;  %vm871_vm5 = vcmask 31744   ;;  %s14175_s25 = smov 56  }
   0x3   :  { %v13745_v6 = vpack.c.bf16 %v57_v4, %v56_v2  ;;  %12935 = vmatprep.mubr.msk.f32.mxu0 %vm65_vm0, %v50_v5  ;;  %v52_v8 = vld [vmem:[%s16516_s0 + $0x10] sm:$0xff]  ;;  %v53_v9 = vld [vmem:[%s16516_s0 + $0x18] sm:$0xff]  ;;  %v12238_v11 = vld [vmem:[%s16517_s2] ss:$0 sm:$0xff]  ;;  %s14176_s26 = smov 80   ;;  %s16541_s27 = smov 112  }
   0x4   :  { %13742 = vmatprep.subr.bf16.mxu0 %v13741_v3  ;;  %s16539_s28 = smov 48   ;;  %s16537_s29 = smov 72   ;;  %vm5575_vm6 = vcmask 130048   ;;  %vm5584_vm7 = vcmask 195584  }
   0x5   :  { %13744 = vmatpush3.bf16.msra.mxu0 %v13741_v3  ;;  %s16535_s30 = smov 104   ;;  %s16533_s16 = smov 40  }
   0x6   :  { %13746 = vmatprep.subr.bf16.mxu0 %v13745_v6  ;;  %s16531_s17 = smov 8   ;;  %s16545_s18 = smov 16  }
   0x7   :  { %s16543_s19 = smov 24  }
   0x9   :  { %13748 = vmatpush3.bf16.msra.mxu0 %v13745_v6 }
   0xa   :  { %12956 = vmatprep.subr.mxu0 %v14169_v10 }
   0xc   :  { %12936 = vmatmul.mubr.msk.f32.vlgmr.msra.gmra.mrb[0].mxu0 %vm65_vm0, %v51_v7 }
   0xd   :  { %12938 = vmatprep.mubr.msk.f32.mxu0 %vm65_vm0, %v52_v8 }
  0x10   :  { %12939 = vmatmul.mubr.msk.f32.gmra.mrb[2].mxu0 %vm65_vm0, %v53_v9 }
  0x11   :  { %12958 = vmatprep.mubr.msk.f32.mxu0 %vm14170_vm1, %v14169_v10 }
  0xdf   :  { %v12937_v12 = vpop.f32.mrb[0].mxu0 }
  0xe0   :  { %v14302_v13 = vadd.f32 %v12937_v12, %v12238_v11  ;;  %v144_v14 = vpop.f32.mrb[1].mxu0 }
  0xe1   :  { %v14304_v15 = vadd.f32 %v12238_v11, %v144_v14 }
  0xe2   :  { %324 = vrot.lane.b32.xlu1 %v14302_v13, %s14171_s21  ;;  %v14312_v18 = vcombine.high %v14302_v13, %v14302_v13 }
  0xe3   :  { %171 = vrot.lane.b32.xlu0 %v14304_v15, %s14171_s21  ;;  %v12940_v16 = vpop.f32.mrb[2].mxu0  ;;  %v14318_v20 = vcombine.high %v14304_v15, %v14304_v15 }
  0xe4   :  { %v154_v17 = vpop.f32.mrb[3].mxu0  ;;  %v14320_v21 = vadd.f32 %v12940_v16, %v12238_v11 }
  0xe5   :  { %v14314_v19 = vadd.f32 %v12238_v11, %v154_v17 }
  0xe6   :  { %400 = vrot.lane.b32.xlu1 %v14312_v18, %s14171_s21  ;;  %v14334_v23 = vcombine.high %v14320_v21, %v14320_v21 }
  0xe7   :  { %248 = vrot.lane.b32.xlu0 %v14318_v20, %s14171_s21  ;;  %v14328_v22 = vcombine.high %v14314_v19, %v14314_v19 }
  0xea   :  { %552 = vrot.lane.b32.xlu1 %v14328_v22, %s14171_s21 }
  0xeb   :  { %476 = vrot.lane.b32.xlu0 %v14314_v19, %s14171_s21 }
  0xee   :  { %704 = vrot.lane.b32.xlu1 %v14334_v23, %s14171_s21 }
  0xef   :  { %628 = vrot.lane.b32.xlu0 %v14320_v21, %s14171_s21 }
  0xf2   :  { %869 = vrot.lane.b32.xlu1 %v14304_v15, %s14172_s22 }
  0xf3   :  { %948 = vrot.lane.b32.xlu0 %v14318_v20, %s14172_s22 }
  0xf6   :  { %1025 = vrot.lane.b32.xlu1 %v14302_v13, %s14172_s22 }
  0xf7   :  { %1179 = vrot.lane.b32.xlu0 %v14314_v19, %s14172_s22 }
  0xfa   :  { %1102 = vrot.lane.b32.xlu1 %v14312_v18, %s14172_s22 }
  0xfb   :  { %1333 = vrot.lane.b32.xlu0 %v14320_v21, %s14172_s22 }
  0xfe   :  { %1410 = vrot.lane.b32.xlu1 %v14334_v23, %s14172_s22 }
  0xff   :  { %1489 = vrot.lane.b32.xlu0 %v14304_v15, %s14173_s23 }
 0x102   :  { %1567 = vrot.lane.b32.xlu1 %v14318_v20, %s14173_s23 }
 0x106   :  { %1256 = vrot.lane.b32.xlu1 %v14328_v22, %s14172_s22 }
 0x154   :  { %v325_v24 = vpop.permute.xlu1 %324 }
 0x155   :  { %v172_v25 = vpop.permute.xlu0 %171 }
 0x156   :  { %12942 = vmatpush3.xpose.msk.msra.mxu1 %vm173_vm2, %v172_v25 }
 0x157   :  { %12946 = vmatprep.subr.mxu1 %v14169_v10 }
 0x158   :  { %v401_v26 = vpop.permute.xlu1 %400 }
 0x159   :  { %12944 = vmatmul.mubr.msk.f32.vlgmr.msra.gmra.mrb[0].mxu1 %vm173_vm2, %v14304_v15  ;;  %12957 = vmatpush3.xpose.msk.msra.mxu0 %vm173_vm2, %v401_v26  ;;  %v249_v27 = vpop.permute.xlu0 %248 }
 0x15a   :  { %12947 = vmatpush3.xpose.msk.msra.mxu1 %vm173_vm2, %v249_v27  ;;  %12966 = vmatprep.subr.mxu0 %v14169_v10 }
 0x15b   :  { %12948 = vmatprep.mubr.msk.f32.mxu1 %vm14170_vm1, %v14169_v10  ;;  %12951 = vmatprep.subr.mxu1 %v14169_v10 }
 0x15c   :  { %12959 = vmatmul.mubr.msk.f32.vlgmr.msra.gmra.mrb[4].mxu0 %vm173_vm2, %v14312_v18  ;;  %v553_v28 = vpop.permute.xlu1 %552 }
 0x15d   :  { %12949 = vmatmul.mubr.msk.f32.vlgmr.msra.gmra.mrb[2].mxu1 %vm173_vm2, %v14318_v20  ;;  %12967 = vmatpush3.xpose.msk.msra.mxu0 %vm173_vm2, %v553_v28  ;;  %v477_v29 = vpop.permute.xlu0 %476 }
 0x15e   :  { %12952 = vmatpush3.xpose.msk.msra.mxu1 %vm173_vm2, %v325_v24  ;;  %12968 = vmatprep.mubr.msk.f32.mxu0 %vm14170_vm1, %v14169_v10 }
 0x15f   :  { %12976 = vmatprep.subr.mxu0 %v14169_v10  ;;  %12953 = vmatprep.mubr.msk.f32.mxu1 %vm14170_vm1, %v14169_v10 }
 0x160   :  { %12969 = vmatmul.mubr.msk.f32.vlgmr.msra.gmra.mrb[6].mxu0 %vm173_vm2, %v14328_v22  ;;  %v705_v30 = vpop.permute.xlu1 %704  ;;  %12961 = vmatprep.subr.mxu1 %v14169_v10 }
 0x161   :  { %12954 = vmatmul.mubr.msk.f32.vlgmr.msra.gmra.mrb[4].mxu1 %vm173_vm2, %v14302_v13  ;;  %12977 = vmatpush3.xpose.msk.msra.mxu0 %vm173_vm2, %v705_v30  ;;  %v629_v31 = vpop.permute.xlu0 %628 }
 0x162   :  { %12962 = vmatpush3.xpose.msk.msra.mxu1 %vm173_vm2, %v477_v29  ;;  %12978 = vmatprep.mubr.msk.f32.mxu0 %vm14170_vm1, %v14169_v10 }
 0x163   :  { %12963 = vmatprep.mubr.msk.f32.mxu1 %vm14170_vm1, %v14169_v10  ;;  %12971 = vmatprep.subr.mxu1 %v14169_v10 }
 0x164   :  { %12979 = vmatmul.mubr.msk.f32.vlgmr.msra.gmra.mrb[8].mxu0 %vm173_vm2, %v14334_v23  ;;  %12986 = vmatprep.subr.mxu0 %v14169_v10  ;;  %v870_v33 = vpop.permute.xlu1 %869 }
 0x165   :  { %12964 = vmatmul.mubr.msk.f32.vlgmr.msra.gmra.mrb[6].mxu1 %vm173_vm2, %v14314_v19  ;;  %v949_v32 = vpop.permute.xlu0 %948  ;;  %12988 = vmatprep.mubr.msk.f32.mxu0 %vm14170_vm1, %v14169_v10 }
 0x166   :  { %12972 = vmatpush3.xpose.msk.msra.mxu1 %vm173_vm2, %v629_v31  ;;  %12987 = vmatpush3.msk.msra.mxu0 %vm875_vm3, %v949_v32 }
 0x167   :  { %12973 = vmatprep.mubr.msk.f32.mxu1 %vm14170_vm1, %v14169_v10  ;;  %12981 = vmatprep.subr.mxu1 %v14169_v10 }
 0x168   :  { %12996 = vmatprep.subr.mxu0 %v14169_v10  ;;  %v14432_v58 = vpop.permute.xlu1 %1025 }
 0x169   :  { %12974 = vmatmul.mubr.msk.f32.vlgmr.msra.gmra.mrb[8].mxu1 %vm173_vm2, %v14320_v21  ;;  %v14434_v59 = vpop.permute.xlu0 %1179 }
 0x16a   :  { %12982 = vmatpush3.msk.msra.mxu1 %vm875_vm3, %v870_v33  ;;  %12983 = vmatprep.mubr.msk.f32.mxu1 %vm14170_vm1, %v14169_v10 }
 0x16b   :  { %12991 = vmatprep.subr.mxu1 %v14169_v10 }
 0x16c   :  { %v14436_v60 = vpop.permute.xlu1 %1102 }
 0x16d   :  { %v14438_v61 = vpop.permute.xlu0 %1333 }
 0x170   :  { %v14440_v62 = vpop.permute.xlu1 %1410 }
 0x171   :  { %v14442_v63 = vpop.permute.xlu0 %1489 }
 0x174   :  { %v14444_v0 = vpop.permute.xlu1 %1567 }
 0x178   :  { %v14446_v1 = vpop.permute.xlu1 %1256 }
 0x22c   :  { %v244_v34 = vpop.f32.mrb[0].mxu1 }
 0x22d   :  { %v12945_v35 = vpop.f32.mrb[1].mxu1  ;;  %v781_v36 = vsel %vm780_vm4, %v244_v34, -inf }
 0x22e   :  { %782 = vmax.xlane.f32.xlu0 %v781_v36 }
 0x22f   :  { %v472_v37 = vpop.f32.mrb[4].mxu0 }
 0x230   :  { %v320_v38 = vpop.f32.mrb[2].mxu1  ;;  %v12960_v39 = vpop.f32.mrb[5].mxu0  ;;  %v790_v40 = vsel %vm780_vm4, %v472_v37, -inf }
 0x231   :  { %v12950_v41 = vpop.f32.mrb[3].mxu1  ;;  %v784_v42 = vsel %vm780_vm4, %v320_v38, -inf }
 0x232   :  { %791 = vmax.xlane.f32.xlu0 %v790_v40  ;;  %785 = vmax.xlane.f32.xlu1 %v784_v42 }
 0x233   :  { %v624_v43 = vpop.f32.mrb[6].mxu0 }
 0x234   :  { %v396_v44 = vpop.f32.mrb[4].mxu1  ;;  %v12970_v45 = vpop.f32.mrb[7].mxu0  ;;  %v796_v46 = vsel %vm780_vm4, %v624_v43, -inf }
 0x235   :  { %v12955_v47 = vpop.f32.mrb[5].mxu1  ;;  %v787_v52 = vsel %vm780_vm4, %v396_v44, -inf }
 0x236   :  { %797 = vmax.xlane.f32.xlu0 %v796_v46 }
 0x237   :  { %v776_v48 = vpop.f32.mrb[8].mxu0 }
 0x238   :  { %v14418_v49 = vpop.f32.mrb[6].mxu1  ;;  %v12980_v50 = vpop.f32.mrb[9].mxu0  ;;  %v802_v55 = vsel %vm780_vm4, %v776_v48, -inf }
 0x239   :  { %v12965_v51 = vpop.f32.mrb[7].mxu1  ;;  %v793_v56 = vsel %vm780_vm4, %v14418_v49, -inf }
 0x23a   :  { %788 = vmax.xlane.f32.xlu0 %v787_v52 }
 0x23c   :  { %v14421_v53 = vpop.f32.mrb[8].mxu1 }
 0x23d   :  { %v12975_v54 = vpop.f32.mrb[9].mxu1  ;;  %v799_v57 = vsel %vm780_vm4, %v14421_v53, -inf }
 0x23e   :  { %803 = vmax.xlane.f32.xlu0 %v802_v55 }
 0x243   :  { %1565 = vrot.lane.b32.xlu1 %v14318_v20, %s14174_s24 }
 0x254   :  { %1487 = vrot.lane.b32.xlu0 %v14304_v15, %s14174_s24 }
 0x267   :  { %794 = vmax.xlane.f32.xlu1 %v793_v56 }
 0x26b   :  { %800 = vmax.xlane.f32.xlu1 %v799_v57 }
 0x2bb   :  { %v783_v2 = vpop.xlane.xlu0 %782 }
 0x2bc   :  { %v805_v3 = vsub.f32 %v244_v34, %v783_v2 }
 0x2be   :  { %v813_v4 = vmul.f32 1.442695, %v805_v3 }
 0x2bf   :  { %v786_v5 = vpop.xlane.xlu1 %785  ;;  %v792_v6 = vpop.xlane.xlu0 %791 }
 0x2c0   :  { %13877 = vpow2.f32 %v813_v4  ;;  %v806_v7 = vsub.f32 %v320_v38, %v786_v5  ;;  %v808_v8 = vsub.f32 %v472_v37, %v792_v6 }
 0x2c2   :  { %v819_v9 = vmul.f32 1.442695, %v808_v8  ;;  %v815_v11 = vmul.f32 1.442695, %v806_v7 }
 0x2c3   :  { %v798_v26 = vpop.xlane.xlu0 %797  ;;  %v14478_v41 = vpop.permute.xlu1 %1565 }
 0x2c4   :  { %13879 = vpow2.f32 %v819_v9  ;;  %v810_v30 = vsub.f32 %v624_v43, %v798_v26 }
 0x2c5   :  { %13881 = vpow2.f32 %v815_v11 }
 0x2c6   :  { %v823_v32 = vmul.f32 1.442695, %v810_v30 }
 0x2c7   :  { %v789_v27 = vpop.xlane.xlu0 %788 }
 0x2c8   :  { %v807_v28 = vsub.f32 %v396_v44, %v789_v27 }
 0x2ca   :  { %v14448_v12 = vpop.eup %13877  ;;  %v817_v29 = vmul.f32 1.442695, %v807_v28 }
 0x2cb   :  { %v829_v14 = vsel %vm780_vm4, %v14448_v12, 0.0  ;;  %v804_v31 = vpop.xlane.xlu0 %803 }
 0x2cc   :  { %830 = vadd.xlane.f32.xlu1 %v829_v14  ;;  %13883 = vpow2.f32 %v817_v29  ;;  %v812_v33 = vsub.f32 %v776_v48, %v804_v31 }
 0x2cd   :  { %13885 = vpow2.f32 %v823_v32 }
 0x2ce   :  { %v14452_v16 = vpop.eup %13879  ;;  %v827_v34 = vmul.f32 1.442695, %v812_v33 }
 0x2cf   :  { %v838_v17 = vsel %vm780_vm4, %v14452_v16, 0.0  ;;  %v14456_v24 = vpop.eup %13881 }
 0x2d0   :  { %839 = vadd.xlane.f32.xlu0 %v838_v17  ;;  %v832_v25 = vsel %vm780_vm4, %v14456_v24, 0.0  ;;  %13887 = vpow2.f32 %v827_v34 }
 0x2d4   :  { %833 = vadd.xlane.f32.xlu0 %v832_v25 }
 0x2d6   :  { %v14464_v35 = vpop.eup %13883 }
 0x2d7   :  { %v835_v36 = vsel %vm780_vm4, %v14464_v35, 0.0  ;;  %v14468_v37 = vpop.eup %13885 }
 0x2d8   :  { %v844_v38 = vsel %vm780_vm4, %v14468_v37, 0.0 }
 0x2da   :  { %v14472_v39 = vpop.eup %13887 }
 0x2db   :  { %v850_v40 = vsel %vm780_vm4, %v14472_v39, 0.0 }
 0x2dd   :  { %1723 = vrot.lane.b32.xlu1 %v14312_v18, %s14173_s23 }
 0x2ea   :  { %1645 = vrot.lane.b32.xlu0 %v14302_v13, %s14173_s23 }
 0x2f4   :  { %v795_v42 = vpop.xlane.xlu1 %794 }
 0x2f5   :  { %v809_v43 = vsub.f32 %v14418_v49, %v795_v42 }
 0x2f7   :  { %v821_v45 = vmul.f32 1.442695, %v809_v43 }
 0x2f8   :  { %v801_v44 = vpop.xlane.xlu1 %800 }
 0x2f9   :  { %v811_v46 = vsub.f32 %v14421_v53, %v801_v44  ;;  %13889 = vpow2.f32 %v821_v45  ;;  %v14508_v53 = vpop.permute.xlu0 %1487 }
 0x2fb   :  { %v825_v47 = vmul.f32 1.442695, %v811_v46 }
 0x2fd   :  { %13891 = vpow2.f32 %v825_v47 }
 0x301   :  { %836 = vadd.xlane.f32.xlu1 %v835_v36 }
 0x303   :  { %v14490_v48 = vpop.eup %13889 }
 0x304   :  { %v841_v49 = vsel %vm780_vm4, %v14490_v48, 0.0 }
 0x307   :  { %v14496_v50 = vpop.eup %13891 }
 0x308   :  { %v847_v51 = vsel %vm780_vm4, %v14496_v50, 0.0 }
 0x309   :  { %845 = vadd.xlane.f32.xlu0 %v844_v38 }
 0x30d   :  { %851 = vadd.xlane.f32.xlu0 %v850_v40 }
 0x312   :  { %1721 = vrot.lane.b32.xlu1 %v14312_v18, %s14174_s24 }
 0x323   :  { %1643 = vrot.lane.b32.xlu0 %v14302_v13, %s14174_s24 }
 0x327   :  { %1801 = vrot.lane.b32.xlu0 %v14314_v19, %s14173_s23 }
 0x32b   :  { %1799 = vrot.lane.b32.xlu0 %v14314_v19, %s14174_s24 }
 0x32f   :  { %1957 = vrot.lane.b32.xlu0 %v14320_v21, %s14173_s23 }
 0x333   :  { %1955 = vrot.lane.b32.xlu0 %v14320_v21, %s14174_s24 }
 0x336   :  { %842 = vadd.xlane.f32.xlu1 %v841_v49 }
 0x33a   :  { %848 = vadd.xlane.f32.xlu1 %v847_v51 }
 0x34b   :  { %1879 = vrot.lane.b32.xlu1 %v14328_v22, %s14173_s23 }
 0x34f   :  { %1877 = vrot.lane.b32.xlu1 %v14328_v22, %s14174_s24 }
 0x353   :  { %2035 = vrot.lane.b32.xlu1 %v14334_v23, %s14173_s23 }
 0x357   :  { %2033 = vrot.lane.b32.xlu1 %v14334_v23, %s14174_s24 }
 0x359   :  { %v831_v52 = vpop.xlane.xlu1 %830 }
 0x35a   :  { %13893 = vrcp.f32 %v831_v52 }
 0x35d   :  { %v840_v54 = vpop.xlane.xlu0 %839  ;;  %v1724_v5 = vpop.permute.xlu1 %1723 }
 0x361   :  { %v834_v55 = vpop.xlane.xlu0 %833 }
 0x362   :  { %13895 = vrcp.f32 %v834_v55 }
 0x363   :  { %13897 = vrcp.f32 %v840_v54 }
 0x364   :  { %v13894_v56 = vpop.eup %13893 }
 0x365   :  { %v861_v57 = vmul.f32 %v13894_v56, %v14448_v12 }
 0x367   :  { %12984 = vmatmul.mubr.msk.f32.vlgmr.msra.gmra.mrb[10].mxu1 %vm871_vm5, %v861_v57 }
 0x368   :  { %12992 = vmatpush3.msk.msra.mxu1 %vm875_vm3, %v14432_v58  ;;  %12993 = vmatprep.mubr.msk.f32.mxu1 %vm14170_vm1, %v14169_v10 }
 0x369   :  { %13001 = vmatprep.subr.mxu1 %v14169_v10 }
 0x36c   :  { %v13896_v2 = vpop.eup %13895 }
 0x36d   :  { %v862_v3 = vmul.f32 %v13896_v2, %v14456_v24  ;;  %v13898_v4 = vpop.eup %13897 }
 0x36e   :  { %v864_v58 = vmul.f32 %v13898_v4, %v14452_v16 }
 0x36f   :  { %12989 = vmatmul.mubr.msk.f32.vlgmr.msra.gmra.mrb[10].mxu0 %vm871_vm5, %v862_v3 }
 0x370   :  { %12997 = vmatpush3.msk.msra.mxu0 %vm875_vm3, %v14436_v60  ;;  %12998 = vmatprep.mubr.msk.f32.mxu0 %vm14170_vm1, %v14169_v10  ;;  %v1646_v60 = vpop.permute.xlu0 %1645 }
 0x371   :  { %13006 = vmatprep.subr.mxu0 %v14169_v10 }
 0x373   :  { %12999 = vmatmul.mubr.msk.f32.vlgmr.msra.gmra.mrb[12].mxu0 %vm871_vm5, %v864_v58 }
 0x374   :  { %13007 = vmatpush3.msk.msra.mxu0 %vm875_vm3, %v14446_v1  ;;  %13008 = vmatprep.mubr.msk.f32.mxu0 %vm14170_vm1, %v14169_v10 }
 0x375   :  { %13016 = vmatprep.subr.mxu0 %v14169_v10 }
 0x38e   :  { %v837_v6 = vpop.xlane.xlu1 %836 }
 0x38f   :  { %13899 = vrcp.f32 %v837_v6 }
 0x396   :  { %v846_v7 = vpop.xlane.xlu0 %845 }
 0x397   :  { %13901 = vrcp.f32 %v846_v7 }
 0x399   :  { %v13900_v8 = vpop.eup %13899 }
 0x39a   :  { %v863_v9 = vmul.f32 %v13900_v8, %v14464_v35  ;;  %v852_v11 = vpop.xlane.xlu0 %851 }
 0x39b   :  { %13903 = vrcp.f32 %v852_v11 }
 0x39c   :  { %12994 = vmatmul.mubr.msk.f32.vlgmr.msra.gmra.mrb[12].mxu1 %vm871_vm5, %v863_v9 }
 0x39d   :  { %13002 = vmatpush3.msk.msra.mxu1 %vm875_vm3, %v14434_v59  ;;  %13003 = vmatprep.mubr.msk.f32.mxu1 %vm14170_vm1, %v14169_v10  ;;  %v1722_v59 = vpop.permute.xlu1 %1721 }
 0x39e   :  { %13011 = vmatprep.subr.mxu1 %v14169_v10  ;;  %v1644_v25 = vpop.permute.xlu0 %1643 }
 0x3a1   :  { %v13902_v1 = vpop.eup %13901 }
 0x3a2   :  { %v866_v12 = vmul.f32 %v13902_v1, %v14468_v37  ;;  %v1802_v31 = vpop.permute.xlu0 %1801 }
 0x3a4   :  { %13009 = vmatmul.mubr.msk.f32.vlgmr.msra.gmra.mrb[14].mxu0 %vm871_vm5, %v866_v12 }
 0x3a5   :  { %v13904_v14 = vpop.eup %13903  ;;  %13017 = vmatpush3.msk.msra.mxu0 %vm875_vm3, %v14440_v62  ;;  %13018 = vmatprep.mubr.msk.f32.mxu0 %vm14170_vm1, %v14169_v10 }
 0x3a6   :  { %v868_v16 = vmul.f32 %v13904_v14, %v14472_v39  ;;  %13026 = vmatprep.subr.mxu0 %v14169_v10 }
 0x3a8   :  { %13019 = vmatmul.mubr.msk.f32.vlgmr.msra.gmra.mrb[16].mxu0 %vm871_vm5, %v868_v16 }
 0x3a9   :  { %13028 = vmatprep.mubr.msk.f32.mxu0 %vm14170_vm1, %v14169_v10 }
 0x3ac   :  { %13027 = vmatpush3.xpose.msk.msra.mxu0 %vm173_vm2, %v14444_v0 }
 0x3ad   :  { %13036 = vmatprep.subr.mxu0 %v14169_v10 }
 0x3af   :  { %13029 = vmatmul.mubr.msk.f32.vlgmr.msra.gmra.mrb[18].mxu0 %vm173_vm2, %v14478_v41 }
 0x3b0   :  { %13037 = vmatpush3.xpose.msk.msra.mxu0 %vm173_vm2, %v1724_v5  ;;  %13038 = vmatprep.mubr.msk.f32.mxu0 %vm14170_vm1, %v14169_v10 }
 0x3b1   :  { %13046 = vmatprep.subr.mxu0 %v14169_v10 }
 0x3b3   :  { %13039 = vmatmul.mubr.msk.f32.vlgmr.msra.gmra.mrb[20].mxu0 %vm173_vm2, %v1722_v59 }
 0x3b4   :  { %13048 = vmatprep.mubr.msk.f32.mxu0 %vm14170_vm1, %v14169_v10 }
 0x3c3   :  { %v843_v62 = vpop.xlane.xlu1 %842 }
 0x3c4   :  { %13905 = vrcp.f32 %v843_v62 }
 0x3c7   :  { %v849_v0 = vpop.xlane.xlu1 %848 }
 0x3c8   :  { %13907 = vrcp.f32 %v849_v0 }
 0x3cb   :  { %v1880_v17 = vpop.permute.xlu1 %1879 }
 0x3cc   :  { %13047 = vmatpush3.xpose.msk.msra.mxu0 %vm173_vm2, %v1880_v17 }
 0x3cd   :  { %13056 = vmatprep.subr.mxu0 %v14169_v10 }
 0x3ce   :  { %v13906_v24 = vpop.eup %13905 }
 0x3cf   :  { %v1878_v26 = vpop.permute.xlu1 %1877  ;;  %v865_v27 = vmul.f32 %v13906_v24, %v14490_v48 }
 0x3d0   :  { %13049 = vmatmul.mubr.msk.f32.vlgmr.msra.gmra.mrb[22].mxu0 %vm173_vm2, %v1878_v26 }
 0x3d1   :  { %13004 = vmatmul.mubr.msk.f32.vlgmr.msra.gmra.mrb[14].mxu1 %vm871_vm5, %v865_v27  ;;  %13058 = vmatprep.mubr.msk.f32.mxu0 %vm14170_vm1, %v14169_v10 }
 0x3d2   :  { %v13908_v28 = vpop.eup %13907  ;;  %13012 = vmatpush3.msk.msra.mxu1 %vm875_vm3, %v14438_v61  ;;  %13013 = vmatprep.mubr.msk.f32.mxu1 %vm14170_vm1, %v14169_v10  ;;  %v1800_v61 = vpop.permute.xlu0 %1799 }
 0x3d3   :  { %v2036_v29 = vpop.permute.xlu1 %2035  ;;  %v867_v30 = vmul.f32 %v13908_v28, %v14496_v50  ;;  %13021 = vmatprep.subr.mxu1 %v14169_v10 }
 0x3d4   :  { %13057 = vmatpush3.xpose.msk.msra.mxu0 %vm173_vm2, %v2036_v29 }
 0x3d5   :  { %13014 = vmatmul.mubr.msk.f32.vlgmr.msra.gmra.mrb[16].mxu1 %vm871_vm5, %v867_v30  ;;  %13066 = vmatprep.subr.mxu0 %v14169_v10 }
 0x3d6   :  { %13023 = vmatprep.mubr.msk.f32.mxu1 %vm14170_vm1, %v14169_v10  ;;  %v1958_v33 = vpop.permute.xlu0 %1957 }
 0x3d7   :  { %v2034_v32 = vpop.permute.xlu1 %2033 }
 0x3d8   :  { %13059 = vmatmul.mubr.msk.f32.vlgmr.msra.gmra.mrb[24].mxu0 %vm173_vm2, %v2034_v32 }
 0x3d9   :  { %13022 = vmatpush3.xpose.msk.msra.mxu1 %vm173_vm2, %v14442_v63  ;;  %13068 = vmatprep.mubr.msk.f32.mxu0 %vm14170_vm1, %v14169_v10 }
 0x3da   :  { %13031 = vmatprep.subr.mxu1 %v14169_v10  ;;  %v1956_v63 = vpop.permute.xlu0 %1955 }
 0x3dc   :  { %13024 = vmatmul.mubr.msk.f32.vlgmr.msra.gmra.mrb[18].mxu1 %vm173_vm2, %v14508_v53 }
 0x3dd   :  { %13032 = vmatpush3.xpose.msk.msra.mxu1 %vm173_vm2, %v1646_v60  ;;  %13033 = vmatprep.mubr.msk.f32.mxu1 %vm14170_vm1, %v14169_v10 }
 0x3de   :  { %13041 = vmatprep.subr.mxu1 %v14169_v10 }
 0x3e0   :  { %13034 = vmatmul.mubr.msk.f32.vlgmr.msra.gmra.mrb[20].mxu1 %vm173_vm2, %v1644_v25 }
 0x3e1   :  { %13042 = vmatpush3.xpose.msk.msra.mxu1 %vm173_vm2, %v1802_v31  ;;  %13043 = vmatprep.mubr.msk.f32.mxu1 %vm14170_vm1, %v14169_v10 }
 0x3e2   :  { %13051 = vmatprep.subr.mxu1 %v14169_v10 }
 0x3e4   :  { %13044 = vmatmul.mubr.msk.f32.vlgmr.msra.gmra.mrb[22].mxu1 %vm173_vm2, %v1800_v61 }
 0x3e5   :  { %13052 = vmatpush3.xpose.msk.msra.mxu1 %vm173_vm2, %v1958_v33  ;;  %13053 = vmatprep.mubr.msk.f32.mxu1 %vm14170_vm1, %v14169_v10 }
 0x3e6   :  { %13061 = vmatprep.subr.mxu1 %v14169_v10 }
 0x3e8   :  { %13054 = vmatmul.mubr.msk.f32.vlgmr.msra.gmra.mrb[24].mxu1 %vm173_vm2, %v1956_v63 }
 0x3e9   :  { %13063 = vmatprep.mubr.msk.f32.mxu1 %vm14170_vm1, %v14169_v10 }
 0x43a   :  { %v14604_v34 = vpop.f32.mrb[10].mxu1 }
 0x43b   :  { %v12985_v35 = vpop.f32.mrb[11].mxu1 }
 0x442   :  { %v14606_v36 = vpop.f32.mrb[10].mxu0 }
 0x443   :  { %v12990_v37 = vpop.f32.mrb[11].mxu0 }
 0x446   :  { %v14608_v38 = vpop.f32.mrb[12].mxu0 }
 0x447   :  { %v13000_v39 = vpop.f32.mrb[13].mxu0 }
 0x46f   :  { %v14610_v40 = vpop.f32.mrb[12].mxu1 }
 0x470   :  { %v12995_v41 = vpop.f32.mrb[13].mxu1 }
 0x477   :  { %v14612_v42 = vpop.f32.mrb[14].mxu0 }
 0x478   :  { %v13010_v43 = vpop.f32.mrb[15].mxu0 }
 0x47b   :  { %v14614_v44 = vpop.f32.mrb[16].mxu0 }
 0x47c   :  { %v13020_v45 = vpop.f32.mrb[17].mxu0 }
 0x482   :  { %v1639_v46 = vpop.f32.mrb[18].mxu0 }
 0x483   :  { %v13030_v47 = vpop.f32.mrb[19].mxu0  ;;  %v2114_v48 = vsel %vm780_vm4, %v1639_v46, -inf }
 0x484   :  { %2115 = vmax.xlane.f32.xlu1 %v2114_v48 }
 0x486   :  { %v14617_v49 = vpop.f32.mrb[20].mxu0 }
 0x487   :  { %v13040_v50 = vpop.f32.mrb[21].mxu0  ;;  %v2120_v9 = vsel %vm780_vm4, %v14617_v49, -inf }
 0x4a3   :  { %v14619_v51 = vpop.f32.mrb[22].mxu0 }
 0x4a4   :  { %v14621_v52 = vpop.f32.mrb[14].mxu1  ;;  %v13050_v53 = vpop.f32.mrb[23].mxu0  ;;  %v2126_v14 = vsel %vm780_vm4, %v14619_v51, -inf }
 0x4a5   :  { %v13005_v54 = vpop.f32.mrb[15].mxu1 }
 0x4a8   :  { %v14623_v55 = vpop.f32.mrb[16].mxu1 }
 0x4a9   :  { %v13015_v56 = vpop.f32.mrb[17].mxu1 }
 0x4ab   :  { %v14625_v57 = vpop.f32.mrb[24].mxu0 }
 0x4ac   :  { %v13060_v2 = vpop.f32.mrb[25].mxu0  ;;  %v2132_v59 = vsel %vm780_vm4, %v14625_v57, -inf }
 0x4af   :  { %v1561_v3 = vpop.f32.mrb[18].mxu1 }
 0x4b0   :  { %v13025_v4 = vpop.f32.mrb[19].mxu1  ;;  %v2111_v58 = vsel %vm780_vm4, %v1561_v3, -inf }
 0x4b1   :  { %2112 = vmax.xlane.f32.xlu0 %v2111_v58 }
 0x4b3   :  { %v1717_v5 = vpop.f32.mrb[20].mxu1 }
 0x4b4   :  { %v13035_v6 = vpop.f32.mrb[21].mxu1  ;;  %v2117_v60 = vsel %vm780_vm4, %v1717_v5, -inf }
 0x4b5   :  { %2118 = vmax.xlane.f32.xlu0 %v2117_v60 }
 0x4b7   :  { %v1873_v7 = vpop.f32.mrb[22].mxu1 }
 0x4b8   :  { %v13045_v8 = vpop.f32.mrb[23].mxu1  ;;  %v2123_v11 = vsel %vm780_vm4, %v1873_v7, -inf }
 0x4b9   :  { %2121 = vmax.xlane.f32.xlu0 %v2120_v9  ;;  %2124 = vmax.xlane.f32.xlu1 %v2123_v11 }
 0x4bb   :  { %v2029_v1 = vpop.f32.mrb[24].mxu1 }
 0x4bc   :  { %v13055_v12 = vpop.f32.mrb[25].mxu1  ;;  %v2129_v16 = vsel %vm780_vm4, %v2029_v1, -inf }
 0x4bd   :  { %2127 = vmax.xlane.f32.xlu0 %v2126_v14  ;;  %2130 = vmax.xlane.f32.xlu1 %v2129_v16 }
 0x4c1   :  { %2133 = vmax.xlane.f32.xlu0 %v2132_v59 }
 0x4ce   :  { %2199 = vrot.lane.b32.xlu1 %v14304_v15, %s14175_s25 }
 0x4d2   :  { %2353 = vrot.lane.b32.xlu1 %v14302_v13, %s14175_s25 }
 0x4d6   :  { %2430 = vrot.lane.b32.xlu1 %v14312_v18, %s14175_s25 }
 0x4d7   :  { %2276 = vrot.lane.b32.xlu0 %v14318_v20, %s14175_s25 }
 0x4da   :  { %2584 = vrot.lane.b32.xlu1 %v14328_v22, %s14175_s25 }
 0x4db   :  { %2507 = vrot.lane.b32.xlu0 %v14314_v19, %s14175_s25 }
 0x4de   :  { %2738 = vrot.lane.b32.xlu1 %v14334_v23, %s14175_s25 }
 0x4df   :  { %2661 = vrot.lane.b32.xlu0 %v14320_v21, %s14175_s25 }
 0x4e2   :  { %2895 = vrot.lane.b32.xlu1 %v14318_v20, %s14176_s26 }
 0x4e3   :  { %2817 = vrot.lane.b32.xlu0 %v14304_v15, %s14176_s26 }
 0x4e6   :  { %2893 = vrot.lane.b32.xlu1 %v14318_v20, %s16541_s27 }
 0x4e7   :  { %2815 = vrot.lane.b32.xlu0 %v14304_v15, %s16541_s27 }
 0x4ea   :  { %3051 = vrot.lane.b32.xlu1 %v14312_v18, %s14176_s26 }
 0x4eb   :  { %2973 = vrot.lane.b32.xlu0 %v14302_v13, %s14176_s26 }
 0x511   :  { %v2116_v62 = vpop.xlane.xlu1 %2115 }
 0x512   :  { %v2136_v0 = vsub.f32 %v1639_v46, %v2116_v62 }
 0x514   :  { %v2145_v17 = vmul.f32 1.442695, %v2136_v0 }
 0x516   :  { %13909 = vpow2.f32 %v2145_v17 }
 0x520   :  { %v14665_v24 = vpop.eup %13909 }
 0x521   :  { %v2162_v25 = vsel %vm780_vm4, %v14665_v24, 0.0 }
 0x522   :  { %2163 = vadd.xlane.f32.xlu0 %v2162_v25 }
 0x53e   :  { %v2113_v26 = vpop.xlane.xlu0 %2112 }
 0x53f   :  { %v2135_v27 = vsub.f32 %v1561_v3, %v2113_v26 }
 0x541   :  { %v2143_v28 = vmul.f32 1.442695, %v2135_v27 }
 0x542   :  { %v2119_v29 = vpop.xlane.xlu0 %2118 }
 0x543   :  { %13911 = vpow2.f32 %v2143_v28  ;;  %v2137_v30 = vsub.f32 %v1717_v5, %v2119_v29 }
 0x545   :  { %v2147_v31 = vmul.f32 1.442695, %v2137_v30 }
 0x546   :  { %v2125_v32 = vpop.xlane.xlu1 %2124  ;;  %v2122_v61 = vpop.xlane.xlu0 %2121 }
 0x547   :  { %13913 = vpow2.f32 %v2147_v31  ;;  %v2139_v33 = vsub.f32 %v1873_v7, %v2125_v32  ;;  %v2138_v63 = vsub.f32 %v14617_v49, %v2122_v61 }
 0x549   :  { %v2151_v35 = vmul.f32 1.442695, %v2139_v33  ;;  %v2149_v37 = vmul.f32 1.442695, %v2138_v63 }
 0x54a   :  { %v2131_v39 = vpop.xlane.xlu1 %2130  ;;  %v2128_v41 = vpop.xlane.xlu0 %2127 }
 0x54b   :  { %13915 = vpow2.f32 %v2151_v35  ;;  %v2141_v43 = vsub.f32 %v2029_v1, %v2131_v39  ;;  %v2140_v45 = vsub.f32 %v14619_v51, %v2128_v41 }
 0x54c   :  { %13917 = vpow2.f32 %v2149_v37 }
 0x54d   :  { %v14671_v46 = vpop.eup %13911  ;;  %v2155_v47 = vmul.f32 1.442695, %v2141_v43  ;;  %v2153_v48 = vmul.f32 1.442695, %v2140_v45 }
 0x54e   :  { %v2200_v50 = vpop.permute.xlu1 %2199  ;;  %v2134_v53 = vpop.xlane.xlu0 %2133  ;;  %v2159_v54 = vsel %vm780_vm4, %v14671_v46, 0.0 }
 0x54f   :  { %13919 = vpow2.f32 %v2155_v47  ;;  %v2142_v49 = vsub.f32 %v14625_v57, %v2134_v53  ;;  %13062 = vmatpush3.msk.msra.mxu1 %vm875_vm3, %v2200_v50  ;;  %2160 = vadd.xlane.f32.xlu1 %v2159_v54 }
 0x550   :  { %13921 = vpow2.f32 %v2153_v48  ;;  %13071 = vmatprep.subr.mxu1 %v14169_v10 }
 0x551   :  { %v14678_v51 = vpop.eup %13913  ;;  %v2157_v56 = vmul.f32 1.442695, %v2142_v49 }
 0x552   :  { %v2277_v2 = vpop.permute.xlu0 %2276  ;;  %v2165_v3 = vsel %vm780_vm4, %v14678_v51, 0.0  ;;  %v2354_v0 = vpop.permute.xlu1 %2353 }
 0x553   :  { %13923 = vpow2.f32 %v2157_v56  ;;  %2166 = vadd.xlane.f32.xlu1 %v2165_v3  ;;  %13067 = vmatpush3.msk.msra.mxu0 %vm875_vm3, %v2277_v2 }
 0x554   :  { %13076 = vmatprep.subr.mxu0 %v14169_v10 }
 0x555   :  { %v14684_v57 = vpop.eup %13915 }
 0x556   :  { %v14686_v4 = vpop.eup %13917  ;;  %v2171_v58 = vsel %vm780_vm4, %v14684_v57, 0.0  ;;  %v2508_v1 = vpop.permute.xlu0 %2507 }
 0x557   :  { %2172 = vadd.xlane.f32.xlu1 %v2171_v58  ;;  %v2168_v5 = vsel %vm780_vm4, %v14686_v4, 0.0  ;;  %v2431_v17 = vpop.permute.xlu1 %2430 }
 0x558   :  { %2169 = vadd.xlane.f32.xlu0 %v2168_v5 }
 0x559   :  { %v14692_v6 = vpop.eup %13919 }
 0x55a   :  { %v14694_v60 = vpop.eup %13921  ;;  %v2177_v7 = vsel %vm780_vm4, %v14692_v6, 0.0  ;;  %v2662_v12 = vpop.permute.xlu0 %2661 }
 0x55b   :  { %2178 = vadd.xlane.f32.xlu1 %v2177_v7  ;;  %v2174_v8 = vsel %vm780_vm4, %v14694_v60, 0.0  ;;  %v2585_v27 = vpop.permute.xlu1 %2584 }
 0x55c   :  { %2175 = vadd.xlane.f32.xlu0 %v2174_v8 }
 0x55d   :  { %v14700_v9 = vpop.eup %13923 }
 0x55e   :  { %v2180_v11 = vsel %vm780_vm4, %v14700_v9, 0.0  ;;  %v14740_v14 = vpop.permute.xlu0 %2817 }
 0x55f   :  { %v2739_v28 = vpop.permute.xlu1 %2738 }
 0x560   :  { %2181 = vadd.xlane.f32.xlu0 %v2180_v11 }
 0x562   :  { %v14742_v16 = vpop.permute.xlu0 %2815 }
 0x563   :  { %v14752_v29 = vpop.permute.xlu1 %2895 }
 0x566   :  { %v14744_v59 = vpop.permute.xlu0 %2973 }
 0x567   :  { %v14754_v30 = vpop.permute.xlu1 %2893 }
 0x56b   :  { %v14756_v31 = vpop.permute.xlu1 %3051 }
 0x56c   :  { %3049 = vrot.lane.b32.xlu1 %v14312_v18, %s16541_s27 }
 0x570   :  { %3207 = vrot.lane.b32.xlu1 %v14328_v22, %s14176_s26 }
 0x574   :  { %3205 = vrot.lane.b32.xlu1 %v14328_v22, %s16541_s27 }
 0x576   :  { %2971 = vrot.lane.b32.xlu0 %v14302_v13, %s16541_s27 }
 0x578   :  { %3363 = vrot.lane.b32.xlu1 %v14334_v23, %s14176_s26 }
 0x57a   :  { %3129 = vrot.lane.b32.xlu0 %v14314_v19, %s14176_s26 }
 0x57c   :  { %3361 = vrot.lane.b32.xlu1 %v14334_v23, %s16541_s27 }
 0x57e   :  { %3127 = vrot.lane.b32.xlu0 %v14314_v19, %s16541_s27 }
 0x580   :  { %3527 = vrot.lane.b32.xlu1 %v14304_v15, %s16539_s28 }
 0x582   :  { %3285 = vrot.lane.b32.xlu0 %v14320_v21, %s14176_s26 }
 0x584   :  { %3681 = vrot.lane.b32.xlu1 %v14302_v13, %s16539_s28 }
 0x586   :  { %3283 = vrot.lane.b32.xlu0 %v14320_v21, %s16541_s27 }
 0x588   :  { %3758 = vrot.lane.b32.xlu1 %v14312_v18, %s16539_s28 }
 0x58a   :  { %3604 = vrot.lane.b32.xlu0 %v14318_v20, %s16539_s28 }
 0x58c   :  { %3912 = vrot.lane.b32.xlu1 %v14328_v22, %s16539_s28 }
 0x58e   :  { %3835 = vrot.lane.b32.xlu0 %v14314_v19, %s16539_s28 }
 0x590   :  { %4066 = vrot.lane.b32.xlu1 %v14334_v23, %s16539_s28 }
 0x592   :  { %3989 = vrot.lane.b32.xlu0 %v14320_v21, %s16539_s28 }
 0x5af   :  { %v2164_v62 = vpop.xlane.xlu0 %2163 }
 0x5b0   :  { %13925 = vrcp.f32 %v2164_v62 }
 0x5ba   :  { %v13926_v25 = vpop.eup %13925 }
 0x5bb   :  { %v2192_v26 = vmul.f32 %v13926_v25, %v14665_v24 }
 0x5bd   :  { %13069 = vmatmul.mubr.msk.f32.vlgmr.msra.gmra.mrb[26].mxu0 %vm871_vm5, %v2192_v26 }
 0x5be   :  { %13077 = vmatpush3.msk.msra.mxu0 %vm875_vm3, %v2431_v17  ;;  %13078 = vmatprep.mubr.msk.f32.mxu0 %vm14170_vm1, %v14169_v10 }
 0x5bf   :  { %13086 = vmatprep.subr.mxu0 %v14169_v10 }
 0x5dc   :  { %v2161_v32 = vpop.xlane.xlu1 %2160 }
 0x5dd   :  { %13927 = vrcp.f32 %v2161_v32 }
 0x5e0   :  { %v2167_v24 = vpop.xlane.xlu1 %2166 }
 0x5e1   :  { %13929 = vrcp.f32 %v2167_v24 }
 0x5e4   :  { %v2173_v61 = vpop.xlane.xlu1 %2172 }
 0x5e5   :  { %13931 = vrcp.f32 %v2173_v61  ;;  %v2170_v33 = vpop.xlane.xlu0 %2169 }
 0x5e6   :  { %13933 = vrcp.f32 %v2170_v33 }
 0x5e7   :  { %v13928_v63 = vpop.eup %13927 }
 0x5e8   :  { %v2179_v35 = vpop.xlane.xlu1 %2178  ;;  %v2191_v37 = vmul.f32 %v13928_v63, %v14671_v46 }
 0x5e9   :  { %13935 = vrcp.f32 %v2179_v35  ;;  %v2176_v39 = vpop.xlane.xlu0 %2175 }
 0x5ea   :  { %13937 = vrcp.f32 %v2176_v39  ;;  %13064 = vmatmul.mubr.msk.f32.vlgmr.msra.gmra.mrb[26].mxu1 %vm871_vm5, %v2191_v37 }
 0x5eb   :  { %v13930_v41 = vpop.eup %13929  ;;  %13072 = vmatpush3.msk.msra.mxu1 %vm875_vm3, %v2354_v0  ;;  %13073 = vmatprep.mubr.msk.f32.mxu1 %vm14170_vm1, %v14169_v10 }
 0x5ec   :  { %v3050_v43 = vpop.permute.xlu1 %3049  ;;  %13081 = vmatprep.subr.mxu1 %v14169_v10  ;;  %v2193_v45 = vmul.f32 %v13930_v41, %v14678_v51 }
 0x5ed   :  { %v2182_v47 = vpop.xlane.xlu0 %2181 }
 0x5ee   :  { %13939 = vrcp.f32 %v2182_v47  ;;  %13074 = vmatmul.mubr.msk.f32.vlgmr.msra.gmra.mrb[28].mxu1 %vm871_vm5, %v2193_v45 }
 0x5ef   :  { %v13932_v46 = vpop.eup %13931  ;;  %13082 = vmatpush3.msk.msra.mxu1 %vm875_vm3, %v2508_v1  ;;  %13083 = vmatprep.mubr.msk.f32.mxu1 %vm14170_vm1, %v14169_v10 }
 0x5f0   :  { %v13934_v48 = vpop.eup %13933  ;;  %13091 = vmatprep.subr.mxu1 %v14169_v10  ;;  %v2195_v50 = vmul.f32 %v13932_v46, %v14684_v57  ;;  %v3208_v53 = vpop.permute.xlu1 %3207 }
 0x5f1   :  { %v2972_v54 = vpop.permute.xlu0 %2971  ;;  %v2194_v49 = vmul.f32 %v13934_v48, %v14686_v4 }
 0x5f2   :  { %13084 = vmatmul.mubr.msk.f32.vlgmr.msra.gmra.mrb[30].mxu1 %vm871_vm5, %v2195_v50 }
 0x5f3   :  { %v13936_v51 = vpop.eup %13935  ;;  %13079 = vmatmul.mubr.msk.f32.vlgmr.msra.gmra.mrb[28].mxu0 %vm871_vm5, %v2194_v49  ;;  %13092 = vmatpush3.msk.msra.mxu1 %vm875_vm3, %v2662_v12 }
 0x5f4   :  { %v13938_v56 = vpop.eup %13937  ;;  %13087 = vmatpush3.msk.msra.mxu0 %vm875_vm3, %v2585_v27  ;;  %13088 = vmatprep.mubr.msk.f32.mxu0 %vm14170_vm1, %v14169_v10  ;;  %v2197_v2 = vmul.f32 %v13936_v51, %v14692_v6  ;;  %v3206_v4 = vpop.permute.xlu1 %3205 }
 0x5f5   :  { %13093 = vmatprep.mubr.msk.f32.mxu1 %vm14170_vm1, %v14169_v10  ;;  %13096 = vmatprep.subr.mxu0 %v14169_v10  ;;  %v2196_v3 = vmul.f32 %v13938_v56, %v14694_v60  ;;  %v3130_v57 = vpop.permute.xlu0 %3129 }
 0x5f6   :  { %13094 = vmatmul.mubr.msk.f32.vlgmr.msra.gmra.mrb[32].mxu1 %vm871_vm5, %v2197_v2  ;;  %13101 = vmatprep.subr.mxu1 %v14169_v10 }
 0x5f7   :  { %13089 = vmatmul.mubr.msk.f32.vlgmr.msra.gmra.mrb[30].mxu0 %vm871_vm5, %v2196_v3  ;;  %13103 = vmatprep.mubr.msk.f32.mxu1 %vm14170_vm1, %v14169_v10 }
 0x5f8   :  { %v13940_v58 = vpop.eup %13939  ;;  %13097 = vmatpush3.msk.msra.mxu0 %vm875_vm3, %v2739_v28  ;;  %13098 = vmatprep.mubr.msk.f32.mxu0 %vm14170_vm1, %v14169_v10  ;;  %v3364_v60 = vpop.permute.xlu1 %3363 }
 0x5f9   :  { %v2198_v5 = vmul.f32 %v13940_v58, %v14700_v9  ;;  %13106 = vmatprep.subr.mxu0 %v14169_v10  ;;  %v3128_v6 = vpop.permute.xlu0 %3127 }
 0x5fa   :  { %13102 = vmatpush3.xpose.msk.msra.mxu1 %vm173_vm2, %v14740_v14 }
 0x5fb   :  { %13099 = vmatmul.mubr.msk.f32.vlgmr.msra.gmra.mrb[32].mxu0 %vm871_vm5, %v2198_v5  ;;  %13111 = vmatprep.subr.mxu1 %v14169_v10 }
 0x5fc   :  { %13108 = vmatprep.mubr.msk.f32.mxu0 %vm14170_vm1, %v14169_v10  ;;  %v3362_v8 = vpop.permute.xlu1 %3361 }
 0x5fd   :  { %13104 = vmatmul.mubr.msk.f32.vlgmr.msra.gmra.mrb[34].mxu1 %vm173_vm2, %v14742_v16  ;;  %v3286_v7 = vpop.permute.xlu0 %3285 }
 0x5fe   :  { %13112 = vmatpush3.xpose.msk.msra.mxu1 %vm173_vm2, %v14744_v59  ;;  %13113 = vmatprep.mubr.msk.f32.mxu1 %vm14170_vm1, %v14169_v10 }
 0x5ff   :  { %13107 = vmatpush3.xpose.msk.msra.mxu0 %vm173_vm2, %v14752_v29  ;;  %13121 = vmatprep.subr.mxu1 %v14169_v10 }
 0x600   :  { %13116 = vmatprep.subr.mxu0 %v14169_v10  ;;  %v3528_v11 = vpop.permute.xlu1 %3527 }
 0x601   :  { %13114 = vmatmul.mubr.msk.f32.vlgmr.msra.gmra.mrb[36].mxu1 %vm173_vm2, %v2972_v54  ;;  %v3284_v9 = vpop.permute.xlu0 %3283 }
 0x602   :  { %13109 = vmatmul.mubr.msk.f32.vlgmr.msra.gmra.mrb[34].mxu0 %vm173_vm2, %v14754_v30  ;;  %13122 = vmatpush3.xpose.msk.msra.mxu1 %vm173_vm2, %v3130_v57 }
 0x603   :  { %13117 = vmatpush3.xpose.msk.msra.mxu0 %vm173_vm2, %v14756_v31  ;;  %13118 = vmatprep.mubr.msk.f32.mxu0 %vm14170_vm1, %v14169_v10 }
 0x604   :  { %13123 = vmatprep.mubr.msk.f32.mxu1 %vm14170_vm1, %v14169_v10  ;;  %13126 = vmatprep.subr.mxu0 %v14169_v10 }
 0x605   :  { %13124 = vmatmul.mubr.msk.f32.vlgmr.msra.gmra.mrb[38].mxu1 %vm173_vm2, %v3128_v6  ;;  %13131 = vmatprep.subr.mxu1 %v14169_v10  ;;  %v3605_v1 = vpop.permute.xlu0 %3604  ;;  %v14880_v6 = vpop.permute.xlu1 %3681 }
 0x606   :  { %13119 = vmatmul.mubr.msk.f32.vlgmr.msra.gmra.mrb[36].mxu0 %vm173_vm2, %v3050_v43  ;;  %13132 = vmatpush3.xpose.msk.msra.mxu1 %vm173_vm2, %v3286_v7 }
 0x607   :  { %13127 = vmatpush3.xpose.msk.msra.mxu0 %vm173_vm2, %v3208_v53  ;;  %13128 = vmatprep.mubr.msk.f32.mxu0 %vm14170_vm1, %v14169_v10 }
 0x608   :  { %13133 = vmatprep.mubr.msk.f32.mxu1 %vm14170_vm1, %v14169_v10  ;;  %13136 = vmatprep.subr.mxu0 %v14169_v10 }
 0x609   :  { %13134 = vmatmul.mubr.msk.f32.vlgmr.msra.gmra.mrb[40].mxu1 %vm173_vm2, %v3284_v9  ;;  %13141 = vmatprep.subr.mxu1 %v14169_v10  ;;  %v14884_v7 = vpop.permute.xlu0 %3835 }
 0x60a   :  { %13129 = vmatmul.mubr.msk.f32.vlgmr.msra.gmra.mrb[38].mxu0 %vm173_vm2, %v3206_v4  ;;  %13142 = vmatpush3.msk.msra.mxu1 %vm875_vm3, %v3528_v11 }
 0x60b   :  { %13137 = vmatpush3.xpose.msk.msra.mxu0 %vm173_vm2, %v3364_v60  ;;  %13138 = vmatprep.mubr.msk.f32.mxu0 %vm14170_vm1, %v14169_v10  ;;  %v14882_v60 = vpop.permute.xlu1 %3758 }
 0x60c   :  { %13146 = vmatprep.subr.mxu0 %v14169_v10  ;;  %13143 = vmatprep.mubr.msk.f32.mxu1 %vm14170_vm1, %v14169_v10 }
 0x60d   :  { %13151 = vmatprep.subr.mxu1 %v14169_v10  ;;  %v14888_v9 = vpop.permute.xlu0 %3989 }
 0x60e   :  { %13139 = vmatmul.mubr.msk.f32.vlgmr.msra.gmra.mrb[40].mxu0 %vm173_vm2, %v3362_v8 }
 0x60f   :  { %13147 = vmatpush3.msk.msra.mxu0 %vm875_vm3, %v3605_v1  ;;  %13148 = vmatprep.mubr.msk.f32.mxu0 %vm14170_vm1, %v14169_v10  ;;  %v14886_v8 = vpop.permute.xlu1 %3912 }
 0x610   :  { %13156 = vmatprep.subr.mxu0 %v14169_v10 }
 0x613   :  { %v14890_v1 = vpop.permute.xlu1 %4066 }
 0x690   :  { %v14846_v12 = vpop.f32.mrb[26].mxu0 }
 0x691   :  { %v13070_v14 = vpop.f32.mrb[27].mxu0 }
 0x6bd   :  { %v14848_v16 = vpop.f32.mrb[26].mxu1 }
 0x6be   :  { %v13065_v59 = vpop.f32.mrb[27].mxu1 }
 0x6c1   :  { %v14850_v62 = vpop.f32.mrb[28].mxu1 }
 0x6c2   :  { %v13075_v0 = vpop.f32.mrb[29].mxu1 }
 0x6c5   :  { %v14852_v17 = vpop.f32.mrb[30].mxu1 }
 0x6c6   :  { %v14854_v25 = vpop.f32.mrb[28].mxu0  ;;  %v13085_v26 = vpop.f32.mrb[31].mxu1 }
 0x6c7   :  { %v13080_v27 = vpop.f32.mrb[29].mxu0 }
 0x6c9   :  { %v14856_v28 = vpop.f32.mrb[32].mxu1 }
 0x6ca   :  { %v14858_v29 = vpop.f32.mrb[30].mxu0  ;;  %v13095_v30 = vpop.f32.mrb[33].mxu1 }
 0x6cb   :  { %v13090_v31 = vpop.f32.mrb[31].mxu0 }
 0x6ce   :  { %v14860_v32 = vpop.f32.mrb[32].mxu0 }
 0x6cf   :  { %v13100_v24 = vpop.f32.mrb[33].mxu0 }
 0x6d0   :  { %v2889_v61 = vpop.f32.mrb[34].mxu1 }
 0x6d1   :  { %v13105_v33 = vpop.f32.mrb[35].mxu1  ;;  %v3439_v63 = vsel %vm780_vm4, %v2889_v61, -inf }
 0x6d2   :  { %3440 = vmax.xlane.f32.xlu0 %v3439_v63 }
 0x6d4   :  { %v3045_v35 = vpop.f32.mrb[36].mxu1 }
 0x6d5   :  { %v2967_v37 = vpop.f32.mrb[34].mxu0  ;;  %v13115_v39 = vpop.f32.mrb[37].mxu1  ;;  %v3445_v41 = vsel %vm780_vm4, %v3045_v35, -inf }
 0x6d6   :  { %v13110_v43 = vpop.f32.mrb[35].mxu0  ;;  %v3442_v45 = vsel %vm780_vm4, %v2967_v37, -inf  ;;  %3446 = vmax.xlane.f32.xlu0 %v3445_v41 }
 0x6d7   :  { %3443 = vmax.xlane.f32.xlu1 %v3442_v45 }
 0x6d8   :  { %v3201_v47 = vpop.f32.mrb[38].mxu1 }
 0x6d9   :  { %v3123_v46 = vpop.f32.mrb[36].mxu0  ;;  %v13125_v48 = vpop.f32.mrb[39].mxu1  ;;  %v3451_v50 = vsel %vm780_vm4, %v3201_v47, -inf }
 0x6da   :  { %v13120_v53 = vpop.f32.mrb[37].mxu0  ;;  %v3448_v54 = vsel %vm780_vm4, %v3123_v46, -inf }
 0x6db   :  { %3449 = vmax.xlane.f32.xlu0 %v3448_v54  ;;  %3452 = vmax.xlane.f32.xlu1 %v3451_v50 }
 0x6dc   :  { %v14867_v49 = vpop.f32.mrb[40].mxu1 }
 0x6dd   :  { %v3279_v51 = vpop.f32.mrb[38].mxu0  ;;  %v13135_v56 = vpop.f32.mrb[41].mxu1  ;;  %v3457_v2 = vsel %vm780_vm4, %v14867_v49, -inf }
 0x6de   :  { %v13130_v3 = vpop.f32.mrb[39].mxu0  ;;  %v3454_v57 = vsel %vm780_vm4, %v3279_v51, -inf }
 0x6df   :  { %3455 = vmax.xlane.f32.xlu0 %v3454_v57  ;;  %3458 = vmax.xlane.f32.xlu1 %v3457_v2 }
 0x6e1   :  { %v14872_v4 = vpop.f32.mrb[40].mxu0 }
 0x6e2   :  { %v13140_v58 = vpop.f32.mrb[41].mxu0  ;;  %v3460_v5 = vsel %vm780_vm4, %v14872_v4, -inf }
 0x6e3   :  { %3461 = vmax.xlane.f32.xlu0 %v3460_v5 }
 0x6f0   :  { %4223 = vrot.lane.b32.xlu1 %v14318_v20, %s16537_s29 }
 0x6f9   :  { %4145 = vrot.lane.b32.xlu0 %v14304_v15, %s16537_s29 }
 0x75f   :  { %v3441_v11 = vpop.xlane.xlu0 %3440 }
 0x760   :  { %v3463_v14 = vsub.f32 %v2889_v61, %v3441_v11 }
 0x762   :  { %v3471_v59 = vmul.f32 1.442695, %v3463_v14 }
 0x763   :  { %v3447_v0 = vpop.xlane.xlu0 %3446 }
 0x764   :  { %13941 = vpow2.f32 %v3471_v59  ;;  %v3444_v26 = vpop.xlane.xlu1 %3443  ;;  %v3465_v27 = vsub.f32 %v3045_v35, %v3447_v0 }
 0x765   :  { %v3464_v30 = vsub.f32 %v2967_v37, %v3444_v26 }
 0x766   :  { %v3475_v31 = vmul.f32 1.442695, %v3465_v27 }
 0x767   :  { %v3473_v24 = vmul.f32 1.442695, %v3464_v30 }
 0x768   :  { %13943 = vpow2.f32 %v3475_v31  ;;  %v3453_v33 = vpop.xlane.xlu1 %3452  ;;  %v3450_v63 = vpop.xlane.xlu0 %3449 }
 0x769   :  { %13945 = vpow2.f32 %v3473_v24  ;;  %v3467_v39 = vsub.f32 %v3201_v47, %v3453_v33  ;;  %v3466_v41 = vsub.f32 %v3123_v46, %v3450_v63 }
 0x76b   :  { %v3479_v43 = vmul.f32 1.442695, %v3467_v39  ;;  %v3477_v45 = vmul.f32 1.442695, %v3466_v41 }
 0x76c   :  { %v3456_v48 = vpop.xlane.xlu0 %3455  ;;  %v3459_v5 = vpop.xlane.xlu1 %3458 }
 0x76d   :  { %13947 = vpow2.f32 %v3479_v43  ;;  %v3468_v50 = vsub.f32 %v3279_v51, %v3456_v48  ;;  %v3469_v11 = vsub.f32 %v14867_v49, %v3459_v5 }
 0x76e   :  { %v14892_v61 = vpop.eup %13941  ;;  %13949 = vpow2.f32 %v3477_v45 }
 0x76f   :  { %v3481_v53 = vmul.f32 1.442695, %v3468_v50  ;;  %v3487_v35 = vsel %vm780_vm4, %v14892_v61, 0.0  ;;  %v3483_v59 = vmul.f32 1.442695, %v3469_v11 }
 0x770   :  { %3488 = vadd.xlane.f32.xlu1 %v3487_v35  ;;  %v3462_v14 = vpop.xlane.xlu0 %3461  ;;  %v14956_v49 = vpop.permute.xlu1 %4223 }
 0x771   :  { %13951 = vpow2.f32 %v3481_v53  ;;  %v3470_v0 = vsub.f32 %v14872_v4, %v3462_v14 }
 0x772   :  { %v14896_v37 = vpop.eup %13943  ;;  %13953 = vpow2.f32 %v3483_v59 }
 0x773   :  { %v14898_v54 = vpop.eup %13945  ;;  %v3493_v47 = vsel %vm780_vm4, %v14896_v37, 0.0  ;;  %v3485_v26 = vmul.f32 1.442695, %v3470_v0 }
 0x774   :  { %v3490_v46 = vsel %vm780_vm4, %v14898_v54, 0.0  ;;  %3494 = vadd.xlane.f32.xlu1 %v3493_v47  ;;  %v4146_v33 = vpop.permute.xlu0 %4145 }
 0x775   :  { %3491 = vadd.xlane.f32.xlu0 %v3490_v46  ;;  %13955 = vpow2.f32 %v3485_v26 }
 0x777   :  { %v14904_v51 = vpop.eup %13947 }
 0x778   :  { %v14906_v56 = vpop.eup %13949  ;;  %v3499_v2 = vsel %vm780_vm4, %v14904_v51, 0.0 }
 0x779   :  { %3500 = vadd.xlane.f32.xlu1 %v3499_v2  ;;  %v3496_v3 = vsel %vm780_vm4, %v14906_v56, 0.0 }
 0x77a   :  { %3497 = vadd.xlane.f32.xlu0 %v3496_v3 }
 0x77b   :  { %v14912_v57 = vpop.eup %13951 }
 0x77c   :  { %v3502_v58 = vsel %vm780_vm4, %v14912_v57, 0.0  ;;  %v14922_v27 = vpop.eup %13953 }
 0x77d   :  { %v3505_v30 = vsel %vm780_vm4, %v14922_v27, 0.0 }
 0x77e   :  { %3503 = vadd.xlane.f32.xlu0 %v3502_v58 }
 0x77f   :  { %v14926_v31 = vpop.eup %13955 }
 0x780   :  { %v3508_v24 = vsel %vm780_vm4, %v14926_v31, 0.0 }
 0x78a   :  { %4221 = vrot.lane.b32.xlu1 %v14318_v20, %s16535_s30 }
 0x794   :  { %4143 = vrot.lane.b32.xlu0 %v14304_v15, %s16535_s30 }
 0x7ae   :  { %3506 = vadd.xlane.f32.xlu1 %v3505_v30 }
 0x7b3   :  { %3509 = vadd.xlane.f32.xlu0 %v3508_v24 }
 0x7bf   :  { %4379 = vrot.lane.b32.xlu1 %v14312_v18, %s16537_s29 }
 0x7c3   :  { %4377 = vrot.lane.b32.xlu1 %v14312_v18, %s16535_s30 }
 0x7c7   :  { %4535 = vrot.lane.b32.xlu1 %v14328_v22, %s16537_s29 }
 0x7c9   :  { %4301 = vrot.lane.b32.xlu0 %v14302_v13, %s16537_s29 }
 0x7cb   :  { %4533 = vrot.lane.b32.xlu1 %v14328_v22, %s16535_s30 }
 0x7cd   :  { %4299 = vrot.lane.b32.xlu0 %v14302_v13, %s16535_s30 }
 0x7cf   :  { %4691 = vrot.lane.b32.xlu1 %v14334_v23, %s16537_s29 }
 0x7d1   :  { %4457 = vrot.lane.b32.xlu0 %v14314_v19, %s16537_s29 }
 0x7d3   :  { %4689 = vrot.lane.b32.xlu1 %v14334_v23, %s16535_s30 }
 0x7d5   :  { %4455 = vrot.lane.b32.xlu0 %v14314_v19, %s16535_s30 }
 0x7d7   :  { %4855 = vrot.lane.b32.xlu1 %v14304_v15, %s16533_s16 }
 0x7d9   :  { %4613 = vrot.lane.b32.xlu0 %v14320_v21, %s16537_s29 }
 0x7dd   :  { %4611 = vrot.lane.b32.xlu0 %v14320_v21, %s16535_s30 }
 0x7fd   :  { %v3489_v4 = vpop.xlane.xlu1 %3488 }
 0x7fe   :  { %13957 = vrcp.f32 %v3489_v4 }
 0x801   :  { %v3495_v63 = vpop.xlane.xlu1 %3494 }
 0x802   :  { %13959 = vrcp.f32 %v3495_v63  ;;  %v3492_v39 = vpop.xlane.xlu0 %3491 }
 0x803   :  { %13961 = vrcp.f32 %v3492_v39 }
 0x806   :  { %v3501_v41 = vpop.xlane.xlu1 %3500 }
 0x807   :  { %13963 = vrcp.f32 %v3501_v41  ;;  %v3498_v43 = vpop.xlane.xlu0 %3497 }
 0x808   :  { %v13958_v45 = vpop.eup %13957  ;;  %13965 = vrcp.f32 %v3498_v43 }
 0x809   :  { %v3519_v15 = vmul.f32 %v13958_v45, %v14892_v61 }
 0x80b   :  { %v3504_v48 = vpop.xlane.xlu0 %3503  ;;  %13144 = vmatmul.mubr.msk.f32.vlgmr.msra.gmra.mrb[42].mxu1 %vm871_vm5, %v3519_v15 }
 0x80c   :  { %v13960_v50 = vpop.eup %13959  ;;  %13967 = vrcp.f32 %v3504_v48  ;;  %13152 = vmatpush3.msk.msra.mxu1 %vm875_vm3, %v14880_v6  ;;  %13153 = vmatprep.mubr.msk.f32.mxu1 %vm14170_vm1, %v14169_v10 }
 0x80d   :  { %v13962_v53 = vpop.eup %13961  ;;  %13161 = vmatprep.subr.mxu1 %v14169_v10  ;;  %v3521_v35 = vmul.f32 %v13960_v50, %v14896_v37 }
 0x80e   :  { %v3520_v47 = vmul.f32 %v13962_v53, %v14898_v54 }
 0x80f   :  { %13154 = vmatmul.mubr.msk.f32.vlgmr.msra.gmra.mrb[44].mxu1 %vm871_vm5, %v3521_v35  ;;  %v4144_v46 = vpop.permute.xlu0 %4143 }
 0x810   :  { %13149 = vmatmul.mubr.msk.f32.vlgmr.msra.gmra.mrb[42].mxu0 %vm871_vm5, %v3520_v47  ;;  %13162 = vmatpush3.msk.msra.mxu1 %vm875_vm3, %v14884_v7 }
 0x811   :  { %v13964_v61 = vpop.eup %13963  ;;  %13157 = vmatpush3.msk.msra.mxu0 %vm875_vm3, %v14882_v60  ;;  %13158 = vmatprep.mubr.msk.f32.mxu0 %vm14170_vm1, %v14169_v10 }
 0x812   :  { %v13966_v6 = vpop.eup %13965  ;;  %13163 = vmatprep.mubr.msk.f32.mxu1 %vm14170_vm1, %v14169_v10  ;;  %13166 = vmatprep.subr.mxu0 %v14169_v10  ;;  %v3523_v37 = vmul.f32 %v13964_v61, %v14904_v51 }
 0x813   :  { %13171 = vmatprep.subr.mxu1 %v14169_v10  ;;  %v3522_v54 = vmul.f32 %v13966_v6, %v14906_v56 }
 0x814   :  { %13164 = vmatmul.mubr.msk.f32.vlgmr.msra.gmra.mrb[46].mxu1 %vm871_vm5, %v3523_v37 }
 0x815   :  { %13159 = vmatmul.mubr.msk.f32.vlgmr.msra.gmra.mrb[44].mxu0 %vm871_vm5, %v3522_v54  ;;  %13172 = vmatpush3.msk.msra.mxu1 %vm875_vm3, %v14888_v9 }
 0x816   :  { %v13968_v60 = vpop.eup %13967  ;;  %13167 = vmatpush3.msk.msra.mxu0 %vm875_vm3, %v14886_v8  ;;  %13168 = vmatprep.mubr.msk.f32.mxu0 %vm14170_vm1, %v14169_v10  ;;  %v4222_v8 = vpop.permute.xlu1 %4221 }
 0x817   :  { %13176 = vmatprep.subr.mxu0 %v14169_v10  ;;  %v3524_v7 = vmul.f32 %v13968_v60, %v14912_v57  ;;  %13173 = vmatprep.mubr.msk.f32.mxu1 %vm14170_vm1, %v14169_v10 }
 0x818   :  { %13181 = vmatprep.subr.mxu1 %v14169_v10 }
 0x819   :  { %13169 = vmatmul.mubr.msk.f32.vlgmr.msra.gmra.mrb[46].mxu0 %vm871_vm5, %v3524_v7 }
 0x81a   :  { %13177 = vmatpush3.msk.msra.mxu0 %vm875_vm3, %v14890_v1  ;;  %13178 = vmatprep.mubr.msk.f32.mxu0 %vm14170_vm1, %v14169_v10 }
 0x81b   :  { %13186 = vmatprep.subr.mxu0 %v14169_v10 }
 0x83b   :  { %v3507_v9 = vpop.xlane.xlu1 %3506 }
 0x83c   :  { %13969 = vrcp.f32 %v3507_v9 }
 0x83f   :  { %v4380_v51 = vpop.permute.xlu1 %4379 }
 0x840   :  { %v3510_v56 = vpop.xlane.xlu0 %3509 }
 0x841   :  { %13971 = vrcp.f32 %v3510_v56 }
 0x843   :  { %v4378_v2 = vpop.permute.xlu1 %4377 }
 0x844   :  { %v4302_v3 = vpop.permute.xlu0 %4301 }
 0x846   :  { %v13970_v57 = vpop.eup %13969 }
 0x847   :  { %v4536_v58 = vpop.permute.xlu1 %4535  ;;  %v3525_v5 = vmul.f32 %v13970_v57, %v14922_v27 }
 0x848   :  { %v4300_v11 = vpop.permute.xlu0 %4299 }
 0x849   :  { %13174 = vmatmul.mubr.msk.f32.vlgmr.msra.gmra.mrb[48].mxu1 %vm871_vm5, %v3525_v5 }
 0x84a   :  { %13182 = vmatpush3.xpose.msk.msra.mxu1 %vm173_vm2, %v4146_v33  ;;  %13183 = vmatprep.mubr.msk.f32.mxu1 %vm14170_vm1, %v14169_v10 }
 0x84b   :  { %v13972_v1 = vpop.eup %13971  ;;  %v4534_v14 = vpop.permute.xlu1 %4533  ;;  %13191 = vmatprep.subr.mxu1 %v14169_v10 }
 0x84c   :  { %v4458_v59 = vpop.permute.xlu0 %4457  ;;  %v3526_v0 = vmul.f32 %v13972_v1, %v14926_v31 }
 0x84d   :  { %13184 = vmatmul.mubr.msk.f32.vlgmr.msra.gmra.mrb[50].mxu1 %vm173_vm2, %v4144_v46 }
 0x84e   :  { %13179 = vmatmul.mubr.msk.f32.vlgmr.msra.gmra.mrb[48].mxu0 %vm871_vm5, %v3526_v0  ;;  %13192 = vmatpush3.xpose.msk.msra.mxu1 %vm173_vm2, %v4302_v3 }
 0x84f   :  { %13187 = vmatpush3.xpose.msk.msra.mxu0 %vm173_vm2, %v14956_v49  ;;  %v4692_v26 = vpop.permute.xlu1 %4691  ;;  %13188 = vmatprep.mubr.msk.f32.mxu0 %vm14170_vm1, %v14169_v10 }
 0x850   :  { %v4456_v27 = vpop.permute.xlu0 %4455  ;;  %13193 = vmatprep.mubr.msk.f32.mxu1 %vm14170_vm1, %v14169_v10  ;;  %13196 = vmatprep.subr.mxu0 %v14169_v10 }
 0x851   :  { %13201 = vmatprep.subr.mxu1 %v14169_v10  ;;  %13194 = vmatmul.mubr.msk.f32.vlgmr.msra.gmra.mrb[52].mxu1 %vm173_vm2, %v4300_v11 }
 0x852   :  { %13189 = vmatmul.mubr.msk.f32.vlgmr.msra.gmra.mrb[50].mxu0 %vm173_vm2, %v4222_v8  ;;  %13202 = vmatpush3.xpose.msk.msra.mxu1 %vm173_vm2, %v4458_v59 }
 0x853   :  { %13197 = vmatpush3.xpose.msk.msra.mxu0 %vm173_vm2, %v4380_v51  ;;  %v4690_v30 = vpop.permute.xlu1 %4689  ;;  %13198 = vmatprep.mubr.msk.f32.mxu0 %vm14170_vm1, %v14169_v10 }
 0x854   :  { %v4614_v31 = vpop.permute.xlu0 %4613  ;;  %13203 = vmatprep.mubr.msk.f32.mxu1 %vm14170_vm1, %v14169_v10  ;;  %13206 = vmatprep.subr.mxu0 %v14169_v10 }
 0x855   :  { %13211 = vmatprep.subr.mxu1 %v14169_v10  ;;  %13204 = vmatmul.mubr.msk.f32.vlgmr.msra.gmra.mrb[54].mxu1 %vm173_vm2, %v4456_v27 }
 0x856   :  { %13199 = vmatmul.mubr.msk.f32.vlgmr.msra.gmra.mrb[52].mxu0 %vm173_vm2, %v4378_v2  ;;  %13212 = vmatpush3.xpose.msk.msra.mxu1 %vm173_vm2, %v4614_v31 }
 0x857   :  { %13207 = vmatpush3.xpose.msk.msra.mxu0 %vm173_vm2, %v4536_v58  ;;  %v4856_v24 = vpop.permute.xlu1 %4855  ;;  %13208 = vmatprep.mubr.msk.f32.mxu0 %vm14170_vm1, %v14169_v10 }
 0x858   :  { %v4612_v49 = vpop.permute.xlu0 %4611  ;;  %13213 = vmatprep.mubr.msk.f32.mxu1 %vm14170_vm1, %v14169_v10  ;;  %13216 = vmatprep.subr.mxu0 %v14169_v10 }
 0x859   :  { %13221 = vmatprep.subr.mxu1 %v14169_v10  ;;  %13214 = vmatmul.mubr.msk.f32.vlgmr.msra.gmra.mrb[56].mxu1 %vm173_vm2, %v4612_v49 }
 0x85a   :  { %13209 = vmatmul.mubr.msk.f32.vlgmr.msra.gmra.mrb[54].mxu0 %vm173_vm2, %v4534_v14  ;;  %13222 = vmatpush3.msk.msra.mxu1 %vm875_vm3, %v4856_v24 }
 0x85b   :  { %13217 = vmatpush3.xpose.msk.msra.mxu0 %vm173_vm2, %v4692_v26  ;;  %13218 = vmatprep.mubr.msk.f32.mxu0 %vm14170_vm1, %v14169_v10 }
 0x85c   :  { %13226 = vmatprep.subr.mxu0 %v14169_v10  ;;  %13223 = vmatprep.mubr.msk.f32.mxu1 %vm14170_vm1, %v14169_v10 }
 0x85d   :  { %13231 = vmatprep.subr.mxu1 %v14169_v10 }
 0x85e   :  { %13219 = vmatmul.mubr.msk.f32.vlgmr.msra.gmra.mrb[56].mxu0 %vm173_vm2, %v4690_v30 }
 0x85f   :  { %13228 = vmatprep.mubr.msk.f32.mxu0 %vm14170_vm1, %v14169_v10 }
 0x8de   :  { %v15051_v4 = vpop.f32.mrb[42].mxu1 }
 0x8df   :  { %v13145_v33 = vpop.f32.mrb[43].mxu1 }
 0x8e2   :  { %v15053_v63 = vpop.f32.mrb[44].mxu1 }
 0x8e3   :  { %v15055_v39 = vpop.f32.mrb[42].mxu0  ;;  %v13155_v41 = vpop.f32.mrb[45].mxu1 }
 0x8e4   :  { %v13150_v43 = vpop.f32.mrb[43].mxu0 }
 0x8e7   :  { %v15057_v45 = vpop.f32.mrb[46].mxu1 }
 0x8e8   :  { %v15059_v15 = vpop.f32.mrb[44].mxu0  ;;  %v13165_v48 = vpop.f32.mrb[47].mxu1 }
 0x8e9   :  { %v13160_v50 = vpop.f32.mrb[45].mxu0 }
 0x8ec   :  { %v15061_v53 = vpop.f32.mrb[46].mxu0 }
 0x8ed   :  { %v13170_v35 = vpop.f32.mrb[47].mxu0 }
 0x91c   :  { %v15063_v47 = vpop.f32.mrb[48].mxu1 }
 0x91d   :  { %v13175_v61 = vpop.f32.mrb[49].mxu1 }
 0x920   :  { %v4217_v6 = vpop.f32.mrb[50].mxu1 }
 0x921   :  { %v15065_v37 = vpop.f32.mrb[48].mxu0  ;;  %v13185_v54 = vpop.f32.mrb[51].mxu1  ;;  %v4767_v60 = vsel %vm780_vm4, %v4217_v6, -inf }
 0x922   :  { %v13180_v7 = vpop.f32.mrb[49].mxu0  ;;  %4768 = vmax.xlane.f32.xlu0 %v4767_v60 }
 0x924   :  { %v4373_v8 = vpop.f32.mrb[52].mxu1 }
 0x925   :  { %v4295_v9 = vpop.f32.mrb[50].mxu0  ;;  %v13195_v46 = vpop.f32.mrb[53].mxu1  ;;  %v4773_v51 = vsel %vm780_vm4, %v4373_v8, -inf }
 0x926   :  { %v13190_v56 = vpop.f32.mrb[51].mxu0  ;;  %v4770_v2 = vsel %vm780_vm4, %v4295_v9, -inf  ;;  %4774 = vmax.xlane.f32.xlu0 %v4773_v51 }
 0x927   :  { %4771 = vmax.xlane.f32.xlu1 %v4770_v2 }
 0x928   :  { %v4529_v3 = vpop.f32.mrb[54].mxu1 }
 0x929   :  { %v4451_v57 = vpop.f32.mrb[52].mxu0  ;;  %v13205_v58 = vpop.f32.mrb[55].mxu1  ;;  %v4779_v5 = vsel %vm780_vm4, %v4529_v3, -inf }
 0x92a   :  { %v13200_v11 = vpop.f32.mrb[53].mxu0  ;;  %v4776_v1 = vsel %vm780_vm4, %v4451_v57, -inf }
 0x92b   :  { %4777 = vmax.xlane.f32.xlu0 %v4776_v1  ;;  %4780 = vmax.xlane.f32.xlu1 %v4779_v5 }
 0x92c   :  { %v4685_v14 = vpop.f32.mrb[56].mxu1 }
 0x92d   :  { %v4607_v59 = vpop.f32.mrb[54].mxu0  ;;  %v13215_v0 = vpop.f32.mrb[57].mxu1  ;;  %v4785_v26 = vsel %vm780_vm4, %v4685_v14, -inf }
 0x92e   :  { %v13210_v27 = vpop.f32.mrb[55].mxu0  ;;  %v4782_v30 = vsel %vm780_vm4, %v4607_v59, -inf }
 0x92f   :  { %4783 = vmax.xlane.f32.xlu0 %v4782_v30  ;;  %4786 = vmax.xlane.f32.xlu1 %v4785_v26 }
 0x931   :  { %v4763_v31 = vpop.f32.mrb[56].mxu0 }
 0x932   :  { %v13220_v24 = vpop.f32.mrb[57].mxu0  ;;  %v4788_v49 = vsel %vm780_vm4, %v4763_v31, -inf }
 0x933   :  { %4789 = vmax.xlane.f32.xlu0 %v4788_v49 }
 0x940   :  { %5009 = vrot.lane.b32.xlu1 %v14302_v13, %s16533_s16 }
 0x944   :  { %5086 = vrot.lane.b32.xlu1 %v14312_v18, %s16533_s16 }
 0x949   :  { %4932 = vrot.lane.b32.xlu0 %v14318_v20, %s16533_s16 }
 0x9af   :  { %v4769_v33 = vpop.xlane.xlu0 %4768 }
 0x9b0   :  { %v4791_v41 = vsub.f32 %v4217_v6, %v4769_v33 }
 0x9b2   :  { %v4799_v43 = vmul.f32 1.442695, %v4791_v41 }
 0x9b3   :  { %v4775_v48 = vpop.xlane.xlu0 %4774 }
 0x9b4   :  { %13973 = vpow2.f32 %v4799_v43  ;;  %v4772_v50 = vpop.xlane.xlu1 %4771  ;;  %v4793_v35 = vsub.f32 %v4373_v8, %v4775_v48 }
 0x9b5   :  { %v4792_v61 = vsub.f32 %v4295_v9, %v4772_v50 }
 0x9b6   :  { %v4803_v54 = vmul.f32 1.442695, %v4793_v35 }
 0x9b7   :  { %v4801_v60 = vmul.f32 1.442695, %v4792_v61 }
 0x9b8   :  { %13975 = vpow2.f32 %v4803_v54  ;;  %v4778_v7 = vpop.xlane.xlu0 %4777  ;;  %v4781_v11 = vpop.xlane.xlu1 %4780 }
 0x9b9   :  { %13977 = vpow2.f32 %v4801_v60  ;;  %v4794_v13 = vsub.f32 %v4451_v57, %v4778_v7  ;;  %v4795_v1 = vsub.f32 %v4529_v3, %v4781_v11  ;;  %v5595_v11 = vld [vmem:[%s16518_s3 + $0x10] sm:$0xff] }
 0x9bb   :  { %v4805_v46 = vmul.f32 1.442695, %v4794_v13  ;;  %v4807_v26 = vmul.f32 1.442695, %v4795_v1  ;;  %v5596_v1 = vld [vmem:[%s16518_s3 + $0x18] sm:$0xff] }
 0x9bc   :  { %v4784_v51 = vpop.xlane.xlu0 %4783  ;;  %v4787_v0 = vpop.xlane.xlu1 %4786 }
 0x9bd   :  { %13979 = vpow2.f32 %v4805_v46  ;;  %v4797_v27 = vsub.f32 %v4685_v14, %v4787_v0  ;;  %v4796_v30 = vsub.f32 %v4607_v59, %v4784_v51  ;;  %v13753_v0 = vpack.c.bf16 %v5596_v1, %v5595_v11 }
 0x9be   :  { %v15081_v18 = vpop.eup %13973  ;;  %13981 = vpow2.f32 %v4807_v26 }
 0x9bf   :  { %v4815_v20 = vsel %vm780_vm4, %v15081_v18, 0.0  ;;  %v4811_v24 = vmul.f32 1.442695, %v4797_v27  ;;  %v4809_v49 = vmul.f32 1.442695, %v4796_v30 }
 0x9c0   :  { %v4790_v6 = vpop.xlane.xlu0 %4789  ;;  %4816 = vadd.xlane.f32.xlu1 %v4815_v20 }
 0x9c1   :  { %v4798_v33 = vsub.f32 %v4763_v31, %v4790_v6  ;;  %13983 = vpow2.f32 %v4811_v24 }
 0x9c2   :  { %v15085_v56 = vpop.eup %13975  ;;  %13985 = vpow2.f32 %v4809_v49 }
 0x9c3   :  { %v15087_v8 = vpop.eup %13977  ;;  %v4821_v9 = vsel %vm780_vm4, %v15085_v56, 0.0  ;;  %v4813_v41 = vmul.f32 1.442695, %v4798_v33 }
 0x9c4   :  { %v4933_v2 = vpop.permute.xlu0 %4932  ;;  %v4818_v57 = vsel %vm780_vm4, %v15087_v8, 0.0  ;;  %4822 = vadd.xlane.f32.xlu1 %v4821_v9 }
 0x9c5   :  { %4819 = vadd.xlane.f32.xlu0 %v4818_v57  ;;  %13227 = vmatpush3.msk.msra.mxu0 %vm875_vm3, %v4933_v2  ;;  %13987 = vpow2.f32 %v4813_v41  ;;  %v5593_v57 = vld [vmem:[%s16518_s3] sm:$0xff] }
 0x9c6   :  { %13236 = vmatprep.subr.mxu0 %v14169_v10 }
 0x9c7   :  { %v15095_v58 = vpop.eup %13979 }
 0x9c8   :  { %v4824_v5 = vsel %vm780_vm4, %v15095_v58, 0.0  ;;  %v15103_v43 = vpop.eup %13981 }
 0x9c9   :  { %4825 = vadd.xlane.f32.xlu0 %v4824_v5 }
 0x9cb   :  { %v15107_v48 = vpop.eup %13983 }
 0x9cc   :  { %v4833_v3 = vsel %vm780_vm4, %v15107_v48, 0.0 }
 0x9d5   :  { %5240 = vrot.lane.b32.xlu1 %v14328_v22, %s16533_s16  ;;  %v4827_v22 = vsel %vm780_vm4, %v15103_v43, 0.0 }
 0x9df   :  { %5163 = vrot.lane.b32.xlu0 %v14314_v19, %s16533_s16  ;;  %v15109_v19 = vpop.eup %13985 }
 0x9e0   :  { %v4830_v14 = vsel %vm780_vm4, %v15109_v19, 0.0  ;;  %v15115_v59 = vpop.eup %13987 }
 0x9e1   :  { %v4836_v31 = vsel %vm780_vm4, %v15115_v59, 0.0 }
 0x9f9   :  { %4828 = vadd.xlane.f32.xlu1 %v4827_v22 }
 0x9fd   :  { %4834 = vadd.xlane.f32.xlu1 %v4833_v3 }
 0x9fe   :  { %4831 = vadd.xlane.f32.xlu0 %v4830_v14 }
 0xa02   :  { %4837 = vadd.xlane.f32.xlu0 %v4836_v31 }
 0xa0e   :  { %5394 = vrot.lane.b32.xlu1 %v14334_v23, %s16533_s16 }
 0xa12   :  { %5481 = vrot.lane.b32.xlu1 %v14846_v12, %s16531_s17 }
 0xa16   :  { %5485 = vrot.lane.b32.xlu1 %v14854_v25, %s16531_s17 }
 0xa18   :  { %5317 = vrot.lane.b32.xlu0 %v14320_v21, %s16533_s16  ;;  %v5010_v21 = vpop.permute.xlu1 %5009 }
 0xa1a   :  { %5513 = vrot.lane.b32.xlu1 %v15055_v39, %s16545_s18 }
 0xa1c   :  { %5479 = vrot.lane.b32.xlu0 %v14848_v16, %s16531_s17  ;;  %v5087_v23 = vpop.permute.xlu1 %5086 }
 0xa1e   :  { %5517 = vrot.lane.b32.xlu1 %v15059_v15, %s16545_s18 }
 0xa20   :  { %5483 = vrot.lane.b32.xlu0 %v14850_v62, %s16531_s17 }
 0xa22   :  { %5489 = vrot.lane.b32.xlu1 %v14858_v29, %s16531_s17 }
 0xa24   :  { %5511 = vrot.lane.b32.xlu0 %v15051_v4, %s16545_s18 }
 0xa26   :  { %5493 = vrot.lane.b32.xlu1 %v14860_v32, %s16531_s17 }
 0xa28   :  { %5515 = vrot.lane.b32.xlu0 %v15053_v63, %s16545_s18 }
 0xa2c   :  { %5487 = vrot.lane.b32.xlu0 %v14852_v17, %s16531_s17 }
 0xa30   :  { %5491 = vrot.lane.b32.xlu0 %v14856_v28, %s16531_s17 }
 0xa4d   :  { %v4817_v12 = vpop.xlane.xlu1 %4816 }
 0xa4e   :  { %13989 = vrcp.f32 %v4817_v12 }
 0xa51   :  { %v4823_v16 = vpop.xlane.xlu1 %4822 }
 0xa52   :  { %13991 = vrcp.f32 %v4823_v16  ;;  %v4820_v62 = vpop.xlane.xlu0 %4819 }
 0xa53   :  { %13993 = vrcp.f32 %v4820_v62 }
 0xa55   :  { %v5241_v35 = vpop.permute.xlu1 %5240 }
 0xa56   :  { %v4826_v25 = vpop.xlane.xlu0 %4825 }
 0xa57   :  { %13995 = vrcp.f32 %v4826_v25 }
 0xa58   :  { %v13990_v29 = vpop.eup %13989 }
 0xa59   :  { %v4847_v32 = vmul.f32 %v13990_v29, %v15081_v18 }
 0xa5a   :  { %v5164_v39 = vpop.permute.xlu0 %5163 }
 0xa5b   :  { %13224 = vmatmul.mubr.msk.f32.vlgmr.msra.gmra.mrb[58].mxu1 %vm871_vm5, %v4847_v32 }
 0xa5c   :  { %v13992_v4 = vpop.eup %13991  ;;  %13232 = vmatpush3.msk.msra.mxu1 %vm875_vm3, %v5010_v21  ;;  %13233 = vmatprep.mubr.msk.f32.mxu1 %vm14170_vm1, %v14169_v10 }
 0xa5d   :  { %v13994_v17 = vpop.eup %13993  ;;  %13241 = vmatprep.subr.mxu1 %v14169_v10  ;;  %v4849_v28 = vmul.f32 %v13992_v4, %v15085_v56 }
 0xa5e   :  { %v4848_v63 = vmul.f32 %v13994_v17, %v15087_v8 }
 0xa5f   :  { %13234 = vmatmul.mubr.msk.f32.vlgmr.msra.gmra.mrb[60].mxu1 %vm871_vm5, %v4849_v28 }
 0xa60   :  { %13229 = vmatmul.mubr.msk.f32.vlgmr.msra.gmra.mrb[58].mxu0 %vm871_vm5, %v4848_v63  ;;  %13242 = vmatpush3.msk.msra.mxu1 %vm875_vm3, %v5164_v39 }
 0xa61   :  { %13237 = vmatpush3.msk.msra.mxu0 %vm875_vm3, %v5087_v23  ;;  %13238 = vmatprep.mubr.msk.f32.mxu0 %vm14170_vm1, %v14169_v10  ;;  %v13996_v15 = vpop.eup %13995 }
 0xa62   :  { %13246 = vmatprep.subr.mxu0 %v14169_v10  ;;  %13243 = vmatprep.mubr.msk.f32.mxu1 %vm14170_vm1, %v14169_v10  ;;  %v4850_v50 = vmul.f32 %v13996_v15, %v15095_v58  ;;  %v5594_v58 = vld [vmem:[%s16518_s3 + $0x8] sm:$0xff] }
 0xa63   :  { %13251 = vmatprep.subr.mxu1 %v14169_v10  ;;  %v13749_v5 = vpack.c.bf16 %v5594_v58, %v5593_v57 }
 0xa64   :  { %13239 = vmatmul.mubr.msk.f32.vlgmr.msra.gmra.mrb[60].mxu0 %vm871_vm5, %v4850_v50 }
 0xa65   :  { %13247 = vmatpush3.msk.msra.mxu0 %vm875_vm3, %v5241_v35  ;;  %13248 = vmatprep.mubr.msk.f32.mxu0 %vm14170_vm1, %v14169_v10 }
 0xa66   :  { %13256 = vmatprep.subr.mxu0 %v14169_v10 }
 0xa86   :  { %v4829_v61 = vpop.xlane.xlu1 %4828 }
 0xa87   :  { %13997 = vrcp.f32 %v4829_v61 }
 0xa8a   :  { %v4835_v54 = vpop.xlane.xlu1 %4834 }
 0xa8b   :  { %13999 = vrcp.f32 %v4835_v54  ;;  %v4832_v60 = vpop.xlane.xlu0 %4831 }
 0xa8c   :  { %14001 = vrcp.f32 %v4832_v60 }
 0xa8e   :  { %v5395_v8 = vpop.permute.xlu1 %5394 }
 0xa8f   :  { %v4838_v7 = vpop.xlane.xlu0 %4837 }
 0xa90   :  { %14003 = vrcp.f32 %v4838_v7 }
 0xa91   :  { %v13998_v13 = vpop.eup %13997 }
 0xa92   :  { %v4851_v46 = vmul.f32 %v13998_v13, %v15103_v43  ;;  %v5482_v31 = vpop.permute.xlu1 %5481 }
 0xa93   :  { %v5318_v51 = vpop.permute.xlu0 %5317  ;;  %v5568_v28 = vsel %vm173_vm2, %v14606_v36, %v5482_v31 }
 0xa94   :  { %13244 = vmatmul.mubr.msk.f32.vlgmr.msra.gmra.mrb[62].mxu1 %vm871_vm5, %v4851_v46 }
 0xa95   :  { %v14000_v18 = vpop.eup %13999  ;;  %13252 = vmatpush3.msk.msra.mxu1 %vm875_vm3, %v5318_v51  ;;  %13253 = vmatprep.mubr.msk.f32.mxu1 %vm14170_vm1, %v14169_v10 }
 0xa96   :  { %v4853_v20 = vmul.f32 %v14000_v18, %v15107_v48  ;;  %v14002_v6 = vpop.eup %14001 }
 0xa97   :  { %v4852_v56 = vmul.f32 %v14002_v6, %v15109_v19 }
 0xa98   :  { %13254 = vmatmul.mubr.msk.f32.vlgmr.msra.gmra.mrb[64].mxu1 %vm871_vm5, %v4853_v20 }
 0xa99   :  { %13249 = vmatmul.mubr.msk.f32.vlgmr.msra.gmra.mrb[62].mxu0 %vm871_vm5, %v4852_v56 }
 0xa9a   :  { %v14004_v9 = vpop.eup %14003  ;;  %13257 = vmatpush3.msk.msra.mxu0 %vm875_vm3, %v5395_v8  ;;  %13258 = vmatprep.mubr.msk.f32.mxu0 %vm14170_vm1, %v14169_v10 }
 0xa9b   :  { %v4854_v2 = vmul.f32 %v14004_v9, %v15115_v59  ;;  %13750 = vmatprep.subr.bf16.mxu0 %v13749_v5 }
 0xa9d   :  { %13259 = vmatmul.mubr.msk.f32.vlgmr.msra.gmra.mrb[64].mxu0 %vm871_vm5, %v4854_v2 }
 0xa9e   :  { %13752 = vmatpush3.bf16.msra.mxu0 %v13749_v5 }
 0xa9f   :  { %13754 = vmatprep.subr.bf16.mxu0 %v13753_v0 }
 0xaa2   :  { %13756 = vmatpush3.bf16.msra.mxu0 %v13753_v0 }
 0xb2e   :  { %v4928_v26 = vpop.f32.mrb[58].mxu1 }
 0xb2f   :  { %v13225_v27 = vpop.f32.mrb[59].mxu1  ;;  %5543 = vrot.lane.b32.xlu0 %v4928_v26, %s16543_s19 }
 0xb32   :  { %v5082_v30 = vpop.f32.mrb[60].mxu1 }
 0xb33   :  { %v5005_v24 = vpop.f32.mrb[58].mxu0  ;;  %v13235_v49 = vpop.f32.mrb[61].mxu1  ;;  %5547 = vrot.lane.b32.xlu0 %v5082_v30, %s16543_s19 }
 0xb34   :  { %5545 = vrot.lane.b32.xlu1 %v5005_v24, %s16543_s19  ;;  %v13230_v33 = vpop.f32.mrb[59].mxu0 }
 0xb37   :  { %5519 = vrot.lane.b32.xlu0 %v15057_v45, %s16545_s18  ;;  %v5159_v41 = vpop.f32.mrb[60].mxu0 }
 0xb38   :  { %5549 = vrot.lane.b32.xlu1 %v5159_v41, %s16543_s19  ;;  %v13240_v43 = vpop.f32.mrb[61].mxu0 }
 0xb3b   :  { %5523 = vrot.lane.b32.xlu0 %v15063_v47, %s16545_s18 }
 0xb3c   :  { %5521 = vrot.lane.b32.xlu1 %v15061_v53, %s16545_s18  ;;  %v5480_v53 = vpop.permute.xlu0 %5479 }
 0xb3d   :  { %v5567_v63 = vsel %vm173_vm2, %v14604_v34, %v5480_v53 }
 0xb40   :  { %5525 = vrot.lane.b32.xlu1 %v15065_v37, %s16545_s18  ;;  %v5484_v21 = vpop.permute.xlu0 %5483  ;;  %v5486_v37 = vpop.permute.xlu1 %5485 }
 0xb41   :  { %v5570_v7 = vsel %vm173_vm2, %v14608_v38, %v5486_v37  ;;  %v5569_v36 = vsel %vm173_vm2, %v14610_v40, %v5484_v21 }
 0xb44   :  { %v5512_v23 = vpop.permute.xlu0 %5511  ;;  %v5514_v12 = vpop.permute.xlu1 %5513 }
 0xb45   :  { %v5577_v39 = vsel %vm5575_vm6, %v5568_v28, %v5514_v12  ;;  %v5576_v15 = vsel %vm5575_vm6, %v5567_v63, %v5512_v23  ;;  %v14167_v23 = vld [vmem:[%s16516_s0 + $0x10] sm:$0xff] }
 0xb48   :  { %v5516_v16 = vpop.permute.xlu0 %5515  ;;  %v5518_v62 = vpop.permute.xlu1 %5517 }
 0xb49   :  { %v5579_v34 = vsel %vm5575_vm6, %v5570_v7, %v5518_v62  ;;  %v5578_v13 = vsel %vm5575_vm6, %v5569_v36, %v5516_v16  ;;  %v14168_v16 = vld [vmem:[%s16516_s0 + $0x18] sm:$0xff]  ;;  %v5790_v36 = vld [vmem:[%s16520_s9 + $0x10] sm:$0xff] }
 0xb4c   :  { %v5488_v25 = vpop.permute.xlu0 %5487  ;;  %v5490_v29 = vpop.permute.xlu1 %5489 }
 0xb4d   :  { %v5572_v40 = vsel %vm173_vm2, %v14612_v42, %v5490_v29  ;;  %v5571_v2 = vsel %vm173_vm2, %v14621_v52, %v5488_v25 }
 0xb50   :  { %v5492_v32 = vpop.permute.xlu0 %5491  ;;  %v5494_v4 = vpop.permute.xlu1 %5493 }
 0xb51   :  { %v5574_v27 = vsel %vm173_vm2, %v14614_v44, %v5494_v4  ;;  %v5573_v42 = vsel %vm173_vm2, %v14623_v55, %v5492_v32  ;;  %v12371_v44 = vld [vmem:[%s16519_s4] ss:$0 sm:$0xff] }
 0xb67   :  { %v5236_v22 = vpop.f32.mrb[62].mxu1 }
 0xb68   :  { %5551 = vrot.lane.b32.xlu0 %v5236_v22, %s16543_s19  ;;  %v13245_v48 = vpop.f32.mrb[63].mxu1 }
 0xb6b   :  { %v5390_v19 = vpop.f32.mrb[64].mxu1 }
 0xb6c   :  { %5555 = vrot.lane.b32.xlu0 %v5390_v19, %s16543_s19  ;;  %v13255_v45 = vpop.f32.mrb[65].mxu1  ;;  %v5313_v3 = vpop.f32.mrb[62].mxu0  ;;  %v14165_v19 = vld [vmem:[%s16516_s0 + $0x8] sm:$0xff] }
 0xb6d   :  { %5553 = vrot.lane.b32.xlu1 %v5313_v3, %s16543_s19  ;;  %v13250_v14 = vpop.f32.mrb[63].mxu0  ;;  %v14166_v3 = vld [vmem:[%s16516_s0] sm:$0xff]  ;;  %s16554_s0 = smov 24  }
 0xb70   :  { %v5467_v59 = vpop.f32.mrb[64].mxu0 }
 0xb71   :  { %5557 = vrot.lane.b32.xlu1 %v5467_v59, %s16543_s19  ;;  %v13260_v47 = vpop.f32.mrb[65].mxu0 }
 0xba1   :  { %v5544_v17 = vpop.permute.xlu0 %5543 }
 0xba2   :  { %v5585_v35 = vsel %vm5584_vm7, %v5576_v15, %v5544_v17 }
 0xba5   :  { %v5548_v60 = vpop.permute.xlu0 %5547 }
 0xba6   :  { %v5546_v50 = vpop.permute.xlu1 %5545  ;;  %v5587_v51 = vsel %vm5584_vm7, %v5578_v13, %v5548_v60  ;;  %v5789_v60 = vld [vmem:[%s16520_s9 + $0x8] sm:$0xff] }
 0xba7   :  { %v5586_v61 = vsel %vm5584_vm7, %v5577_v39, %v5546_v50 }
 0xba8   :  { %v5612_v54 = vcombine.low %v5585_v35, %v5586_v61 }
 0xba9   :  { %v5520_v6 = vpop.permute.xlu0 %5519 }
 0xbaa   :  { %13269 = vmatprep.mubr.msk.f32.mxu0 %vm65_vm0, %v5612_v54  ;;  %v5550_v46 = vpop.permute.xlu1 %5549  ;;  %v5580_v57 = vsel %vm5575_vm6, %v5571_v2, %v5520_v6  ;;  %v5788_v54 = vld [vmem:[%s16520_s9] sm:$0xff] }
 0xbab   :  { %v5588_v18 = vsel %vm5584_vm7, %v5579_v34, %v5550_v46  ;;  %v13757_v7 = vpack.c.bf16 %v5789_v60, %v5788_v54  ;;  %v5791_v34 = vld [vmem:[%s16520_s9 + $0x18] sm:$0xff]  ;;  %v5900_v2 = vld [vmem:[%s16521_s11] sm:$0xff] }
 0xbac   :  { %v5613_v20 = vcombine.low %v5587_v51, %v5588_v18  ;;  %v13761_v13 = vpack.c.bf16 %v5791_v34, %v5790_v36  ;;  %v5914_v34 = vld [vmem:[%s16521_s11 + $0x70] sm:$0xff] }
 0xbad   :  { %v5524_v38 = vpop.permute.xlu0 %5523  ;;  %13758 = vmatprep.subr.bf16.mxu0 %v13757_v7 }
 0xbae   :  { %13270 = vmatmul.mubr.msk.f32.vlgmr.msra.gmra.mrb[66].mxu0 %vm65_vm0, %v5613_v20  ;;  %v5522_v56 = vpop.permute.xlu1 %5521  ;;  %v5582_v30 = vsel %vm5575_vm6, %v5573_v42, %v5524_v38  ;;  %v5906_v42 = vld [vmem:[%s16521_s11 + $0x30] sm:$0xff] }
 0xbaf   :  { %v5581_v58 = vsel %vm5575_vm6, %v5572_v40, %v5522_v56  ;;  %13760 = vmatpush3.bf16.msra.mxu0 %v13757_v7 }
 0xbb0   :  { %13762 = vmatprep.subr.bf16.mxu0 %v13761_v13 }
 0xbb2   :  { %v5526_v8 = vpop.permute.xlu1 %5525 }
 0xbb3   :  { %v5583_v52 = vsel %vm5575_vm6, %v5574_v27, %v5526_v8  ;;  %13764 = vmatpush3.bf16.msra.mxu0 %v13761_v13  ;;  %v5915_v13 = vld [vmem:[%s16521_s11 + $0x78] sm:$0xff] }
 0xbda   :  { %v5552_v9 = vpop.permute.xlu0 %5551 }
 0xbdb   :  { %v5589_v11 = vsel %vm5584_vm7, %v5580_v57, %v5552_v9  ;;  %v5901_v57 = vld [vmem:[%s16521_s11 + $0x8] sm:$0xff] }
 0xbde   :  { %v5556_v26 = vpop.permute.xlu0 %5555 }
 0xbdf   :  { %v5554_v5 = vpop.permute.xlu1 %5553  ;;  %v5591_v49 = vsel %vm5584_vm7, %v5582_v30, %v5556_v26  ;;  %v5905_v26 = vld [vmem:[%s16521_s11 + $0x28] sm:$0xff]  ;;  %v5907_v30 = vld [vmem:[%s16521_s11 + $0x38] sm:$0xff] }
 0xbe0   :  { %v5590_v1 = vsel %vm5584_vm7, %v5581_v58, %v5554_v5  ;;  %v5902_v58 = vld [vmem:[%s16521_s11 + $0x10] sm:$0xff]  ;;  %v13765_v5 = vpack.c.bf16 %v5901_v57, %v5900_v2 }
 0xbe1   :  { %v5614_v0 = vcombine.low %v5589_v11, %v5590_v1  ;;  %v5903_v11 = vld [vmem:[%s16521_s11 + $0x18] sm:$0xff] }
 0xbe2   :  { %v13769_v1 = vpack.c.bf16 %v5903_v11, %v5902_v58  ;;  %13766 = vmatprep.subr.bf16.mxu1 %v13765_v5  ;;  %v12383_v11 = vld [vmem:[%s16525_s12] ss:$0 sm:$0xff] }
 0xbe3   :  { %v5558_v24 = vpop.permute.xlu1 %5557  ;;  %13272 = vmatprep.mubr.msk.f32.mxu0 %vm65_vm0, %v5614_v0  ;;  %v5904_v0 = vld [vmem:[%s16521_s11 + $0x20] sm:$0xff]  ;;  %13768 = vmatpush3.bf16.msra.mxu1 %v13765_v5 }
 0xbe4   :  { %v5592_v33 = vsel %vm5584_vm7, %v5583_v52, %v5558_v24  ;;  %13770 = vmatprep.subr.bf16.mxu1 %v13769_v1  ;;  %v13773_v27 = vpack.c.bf16 %v5905_v26, %v5904_v0  ;;  %v13777_v52 = vpack.c.bf16 %v5907_v30, %v5906_v42  ;;  %v5908_v24 = vld [vmem:[%s16521_s11 + $0x40] sm:$0xff] }
 0xbe5   :  { %v5615_v41 = vcombine.low %v5591_v49, %v5592_v33  ;;  %v5909_v49 = vld [vmem:[%s16521_s11 + $0x48] sm:$0xff] }
 0xbe6   :  { %v13781_v33 = vpack.c.bf16 %v5909_v49, %v5908_v24 }
 0xbe7   :  { %13273 = vmatmul.mubr.msk.f32.gmra.mrb[68].mxu0 %vm65_vm0, %v5615_v41  ;;  %13772 = vmatpush3.bf16.msra.mxu1 %v13769_v1  ;;  %v5910_v41 = vld [vmem:[%s16521_s11 + $0x50] sm:$0xff] }
 0xbe8   :  { %13774 = vmatprep.subr.bf16.mxu1 %v13773_v27 }
 0xbeb   :  { %13776 = vmatpush3.bf16.msra.mxu1 %v13773_v27 }
 0xbec   :  { %13778 = vmatprep.subr.bf16.mxu1 %v13777_v52 }
 0xbef   :  { %13780 = vmatpush3.bf16.msra.mxu1 %v13777_v52 }
 0xbf0   :  { %13782 = vmatprep.subr.bf16.mxu1 %v13781_v33 }
 0xbf3   :  { %13784 = vmatpush3.bf16.msra.mxu1 %v13781_v33 }
 0xc81   :  { %v13271_v43 = vpop.f32.mrb[66].mxu0 }
 0xc82   :  { %v5696_v55 = vadd.f32 %v13271_v43, %v12371_v44  ;;  %v5690_v22 = vpop.f32.mrb[67].mxu0 }
 0xc83   :  { %v5691_v48 = vadd.f32 %v12371_v44, %v5690_v22  ;;  %v5913_v22 = vld [vmem:[%s16521_s11 + $0x68] sm:$0xff] }
 0xc84   :  { %v5710_v45 = vadd.f32 %v14165_v19, %v5696_v55  ;;  %v5912_v55 = vld [vmem:[%s16521_s11 + $0x60] sm:$0xff] }
 0xc85   :  { %v5709_v14 = vadd.f32 %v14166_v3, %v5691_v48  ;;  %v13789_v48 = vpack.c.bf16 %v5913_v22, %v5912_v55 }
 0xc86   :  { %v5718_v59 = vsel %vm65_vm0, %v5710_v45, 0.0 }
 0xc87   :  { %5719 = vadd.xlane.f32.xlu1 %v5718_v59  ;;  %v5715_v47 = vsel %vm65_vm0, %v5709_v14, 0.0 }
 0xc88   :  { %5716 = vadd.xlane.f32.xlu0 %v5715_v47 }
 0xcba   :  { %v13274_v53 = vpop.f32.mrb[68].mxu0 }
 0xcbb   :  { %v5700_v31 = vpop.f32.mrb[69].mxu0  ;;  %v5706_v21 = vadd.f32 %v13274_v53, %v12371_v44 }
 0xcbc   :  { %v5701_v37 = vadd.f32 %v12371_v44, %v5700_v31  ;;  %v5911_v44 = vld [vmem:[%s16521_s11 + $0x58] sm:$0xff]  ;;  %v12376_v31 = vld [vmem:[%s16522_s5] ss:$0 sm:$0xff] }
 0xcbd   :  { %v5712_v62 = vadd.f32 %v14168_v16, %v5706_v21  ;;  %v13785_v43 = vpack.c.bf16 %v5911_v44, %v5910_v41 }
 0xcbe   :  { %v5711_v12 = vadd.f32 %v14167_v23, %v5701_v37 }
 0xcbf   :  { %v5724_v29 = vsel %vm65_vm0, %v5712_v62, 0.0  ;;  %13786 = vmatprep.subr.bf16.mxu1 %v13785_v43 }
 0xcc0   :  { %v5721_v25 = vsel %vm65_vm0, %v5711_v12, 0.0  ;;  %13788 = vmatpush3.bf16.msra.mxu1 %v13785_v43 }
 0xcc1   :  { %5722 = vadd.xlane.f32.xlu0 %v5721_v25  ;;  %13790 = vmatprep.subr.bf16.mxu1 %v13789_v48 }
 0xcc4   :  { %13792 = vmatpush3.bf16.msra.mxu1 %v13789_v48 }
 0xcc5   :  { %5725 = vadd.xlane.f32.xlu0 %v5724_v29 }
 0xd14   :  { %v5720_v32 = vpop.xlane.xlu1 %5719 }
 0xd15   :  { %v5729_v4 = vmul.f32 0.03125, %v5720_v32  ;;  %v5717_v17 = vpop.xlane.xlu0 %5716 }
 0xd16   :  { %v5728_v28 = vmul.f32 0.03125, %v5717_v17 }
 0xd17   :  { %v15268_v63 = vsub.f32 %v5710_v45, %v5729_v4 }
 0xd18   :  { %v15270_v39 = vsub.f32 %v5709_v14, %v5728_v28 }
 0xd19   :  { %v5737_v15 = vmul.f32 %v15268_v63, %v15268_v63 }
 0xd1a   :  { %v5736_v50 = vmul.f32 %v15270_v39, %v15270_v39 }
 0xd1b   :  { %v5743_v35 = vsel %vm65_vm0, %v5737_v15, 0.0 }
 0xd1c   :  { %5744 = vadd.xlane.f32.xlu0 %v5743_v35  ;;  %v5740_v61 = vsel %vm65_vm0, %v5736_v50, 0.0 }
 0xd1d   :  { %5741 = vadd.xlane.f32.xlu1 %v5740_v61 }
 0xd4e   :  { %v5723_v46 = vpop.xlane.xlu0 %5722 }
 0xd4f   :  { %v5730_v51 = vmul.f32 0.03125, %v5723_v46  ;;  %v13793_v46 = vpack.c.bf16 %v5915_v13, %v5914_v34 }
 0xd51   :  { %v15290_v18 = vsub.f32 %v5711_v12, %v5730_v51  ;;  %v12377_v12 = vld [vmem:[%s16523_s6] ss:$0 sm:$0xff]  ;;  %13794 = vmatprep.subr.bf16.mxu1 %v13793_v46 }
 0xd52   :  { %v5726_v20 = vpop.xlane.xlu0 %5725  ;;  %13796 = vmatpush3.bf16.msra.mxu1 %v13793_v46  ;;  %v12378_v51 = vld [vmem:[%s16524_s10] ss:$0 sm:$0xff] }
 0xd53   :  { %v5731_v6 = vmul.f32 0.03125, %v5726_v20  ;;  %v5738_v56 = vmul.f32 %v15290_v18, %v15290_v18  ;;  %13371 = vmatprep.subr.mxu1 %v14169_v10 }
 0xd55   :  { %v15294_v38 = vsub.f32 %v5712_v62, %v5731_v6  ;;  %v5746_v8 = vsel %vm65_vm0, %v5738_v56, 0.0 }
 0xd56   :  { %5747 = vadd.xlane.f32.xlu1 %v5746_v8 }
 0xd57   :  { %v5739_v9 = vmul.f32 %v15294_v38, %v15294_v38 }
 0xd59   :  { %v5749_v40 = vsel %vm65_vm0, %v5739_v9, 0.0 }
 0xd5a   :  { %5750 = vadd.xlane.f32.xlu0 %v5749_v40 }
 0xda9   :  { %v5745_v19 = vpop.xlane.xlu0 %5744 }
 0xdaa   :  { %v5753_v45 = vmul.f32 0.03125, %v5745_v19  ;;  %v5742_v3 = vpop.xlane.xlu1 %5741 }
 0xdab   :  { %v5752_v14 = vmul.f32 0.03125, %v5742_v3 }
 0xdac   :  { %v5757_v59 = vadd.f32 1e-05, %v5753_v45 }
 0xdad   :  { %v5756_v47 = vadd.f32 1e-05, %v5752_v14 }
 0xdae   :  { %14005 = vrsqrt.f32 %v5757_v59 }
 0xdaf   :  { %14007 = vrsqrt.f32 %v5756_v47 }
 0xdb8   :  { %v14006_v53 = vpop.eup %14005 }
 0xdb9   :  { %v14008_v21 = vpop.eup %14007  ;;  %v5765_v37 = vmul.f32 %v14006_v53, %v15268_v63 }
 0xdba   :  { %v5764_v23 = vmul.f32 %v14008_v21, %v15270_v39 }
 0xdbb   :  { %v5775_v16 = vmul.f32 %v12376_v31, %v5765_v37 }
 0xdbc   :  { %v5774_v62 = vmul.f32 %v12376_v31, %v5764_v23  ;;  %v12386_v23 = vld [vmem:[%s16515_s1 + $0x20] sm:$0xff] }
 0xdbd   :  { %v5785_v29 = vadd.f32 %v12377_v12, %v5775_v16 }
 0xdbe   :  { %v5784_v25 = vadd.f32 %v12377_v12, %v5774_v62  ;;  %v12388_v62 = vld [vmem:[%s16515_s1 + $0x30] sm:$0xff] }
 0xdc0   :  { %13283 = vmatprep.mubr.msk.f32.mxu0 %vm65_vm0, %v5784_v25 }
 0xdc1   :  { %13284 = vmatmul.mubr.msk.f32.vlgmr.msra.gmra.mrb[70].mxu0 %vm65_vm0, %v5785_v29 }
 0xde3   :  { %v5748_v32 = vpop.xlane.xlu1 %5747 }
 0xde4   :  { %v5754_v4 = vmul.f32 0.03125, %v5748_v32 }
 0xde6   :  { %v5758_v17 = vadd.f32 1e-05, %v5754_v4 }
 0xde7   :  { %v5751_v28 = vpop.xlane.xlu0 %5750 }
 0xde8   :  { %14009 = vrsqrt.f32 %v5758_v17  ;;  %v5755_v63 = vmul.f32 0.03125, %v5751_v28 }
 0xdea   :  { %v5759_v15 = vadd.f32 1e-05, %v5755_v63 }
 0xdec   :  { %14011 = vrsqrt.f32 %v5759_v15 }
 0xdf2   :  { %v14010_v39 = vpop.eup %14009 }
 0xdf3   :  { %v5766_v50 = vmul.f32 %v14010_v39, %v15290_v18 }
 0xdf5   :  { %v5776_v35 = vmul.f32 %v12376_v31, %v5766_v50 }
 0xdf6   :  { %v14012_v61 = vpop.eup %14011 }
 0xdf7   :  { %v5786_v54 = vadd.f32 %v12377_v12, %v5776_v35  ;;  %v5767_v60 = vmul.f32 %v14012_v61, %v15294_v38 }
 0xdf9   :  { %13286 = vmatprep.mubr.msk.f32.mxu0 %vm65_vm0, %v5786_v54  ;;  %v5777_v7 = vmul.f32 %v12376_v31, %v5767_v60 }
 0xdfb   :  { %v5787_v36 = vadd.f32 %v12377_v12, %v5777_v7  ;;  %v12387_v12 = vld [vmem:[%s16515_s1 + $0x28] sm:$0xff] }
 0xdfc   :  { %v13797_v16 = vpack.c.bf16 %v12387_v12, %v12386_v23 }
 0xdfd   :  { %13287 = vmatmul.mubr.msk.f32.gmra.mrb[72].mxu0 %vm65_vm0, %v5787_v36 }
 0xdfe   :  { %13798 = vmatprep.subr.bf16.mxu0 %v13797_v16 }
 0xdff   :  { %13800 = vmatpush3.bf16.msra.mxu0 %v13797_v16 }
 0xe94   :  { %v13285_v18 = vpop.f32.mrb[70].mxu0 }
 0xe95   :  { %v5883_v20 = vadd.f32 %v13285_v18, %v12378_v51  ;;  %v5877_v6 = vpop.f32.mrb[71].mxu0 }
 0xe96   :  { %v5878_v56 = vadd.f32 %v12378_v51, %v5877_v6 }
 0xe97   :  { %v5897_v8 = vmax.f32 %v5883_v20, 0.0 }
 0xe98   :  { %v5896_v38 = vmax.f32 %v5878_v56, 0.0  ;;  %v12385_v56 = vld [vmem:[%s16527_s8] ss:$0 sm:$0xff] }
 0xe9a   :  { %13321 = vmatprep.mubr.f32.mxu1 %v5896_v38 }
 0xe9b   :  { %13322 = vmatmul.mubr.f32.vlgmr.msra.gmra.mrb[66].mxu1 %v5897_v8 }
 0xed0   :  { %v13288_v9 = vpop.f32.mrb[72].mxu0 }
 0xed1   :  { %v5893_v40 = vadd.f32 %v13288_v9, %v12378_v51  ;;  %v5887_v2 = vpop.f32.mrb[73].mxu0 }
 0xed2   :  { %v5888_v57 = vadd.f32 %v12378_v51, %v5887_v2  ;;  %v12384_v51 = vld [vmem:[%s16526_s7] ss:$0 sm:$0xff] }
 0xed3   :  { %v5899_v5 = vmax.f32 %v5893_v40, 0.0 }
 0xed4   :  { %v5898_v58 = vmax.f32 %v5888_v57, 0.0 }
 0xed6   :  { %13324 = vmatprep.mubr.f32.mxu1 %v5898_v58 }
 0xed7   :  { %13325 = vmatmul.mubr.f32.gmra.mrb[68].mxu1 %v5899_v5 }
 0xed8   :  { %13373 = vmatprep.mubr.msk.f32.mxu1 %vm14170_vm1, %v14169_v10 }
 0xf6e   :  { %v13323_v1 = vpop.f32.mrb[66].mxu1 }
 0xf6f   :  { %v5995_v0 = vadd.f32 %v13323_v1, %v12383_v11  ;;  %v5989_v26 = vpop.f32.mrb[67].mxu1 }
 0xf70   :  { %v5990_v27 = vadd.f32 %v12383_v11, %v5989_v26 }
 0xf71   :  { %v6009_v42 = vadd.f32 %v5995_v0, %v5785_v29 }
 0xf72   :  { %v6008_v30 = vadd.f32 %v5990_v27, %v5784_v25  ;;  %v12389_v25 = vld [vmem:[%s16515_s1 + $0x38] sm:$0xff] }
 0xf73   :  { %v6017_v52 = vsel %vm65_vm0, %v6009_v42, 0.0  ;;  %v13801_v29 = vpack.c.bf16 %v12389_v25, %v12388_v62 }
 0xf74   :  { %6018 = vadd.xlane.f32.xlu0 %v6017_v52  ;;  %v6014_v24 = vsel %vm65_vm0, %v6008_v30, 0.0 }
 0xf75   :  { %6015 = vadd.xlane.f32.xlu1 %v6014_v24  ;;  %13802 = vmatprep.subr.bf16.mxu0 %v13801_v29 }
 0xf76   :  { %13804 = vmatpush3.bf16.msra.mxu0 %v13801_v29 }
 0xf77   :  { %13341 = vmatprep.subr.mxu0 %v14169_v10 }
 0xfaa   :  { %v13326_v49 = vpop.f32.mrb[68].mxu1 }
 0xfab   :  { %v6005_v33 = vadd.f32 %v13326_v49, %v12383_v11  ;;  %v5999_v41 = vpop.f32.mrb[69].mxu1 }
 0xfac   :  { %v6000_v44 = vadd.f32 %v12383_v11, %v5999_v41 }
 0xfad   :  { %v6011_v43 = vadd.f32 %v6005_v33, %v5787_v36  ;;  %v12391_v33 = vld [vmem:[%s16517_s2 + $0x1] ss:$0 sm:$0xff]  ;;  %s16547_s2 = smov 112  }
 0xfae   :  { %v6010_v55 = vadd.f32 %v6000_v44, %v5786_v54 }
 0xfaf   :  { %v6023_v22 = vsel %vm65_vm0, %v6011_v43, 0.0 }
 0xfb0   :  { %6024 = vadd.xlane.f32.xlu0 %v6023_v22  ;;  %v6020_v48 = vsel %vm65_vm0, %v6010_v55, 0.0 }
 0xfb1   :  { %6021 = vadd.xlane.f32.xlu1 %v6020_v48 }
0x1001   :  { %v6019_v19 = vpop.xlane.xlu0 %6018 }
0x1002   :  { %v6027_v45 = vmul.f32 0.03125, %v6019_v19  ;;  %v6016_v3 = vpop.xlane.xlu1 %6015 }
0x1003   :  { %v6026_v14 = vmul.f32 0.03125, %v6016_v3 }
0x1004   :  { %v6031_v59 = vsub.f32 %v6009_v42, %v6027_v45 }
0x1005   :  { %v6030_v47 = vsub.f32 %v6008_v30, %v6026_v14 }
0x1006   :  { %v6035_v53 = vmul.f32 %v6031_v59, %v6031_v59 }
0x1007   :  { %v6034_v31 = vmul.f32 %v6030_v47, %v6030_v47 }
0x1008   :  { %v6041_v21 = vsel %vm65_vm0, %v6035_v53, 0.0 }
0x1009   :  { %6042 = vadd.xlane.f32.xlu0 %v6041_v21  ;;  %v6038_v37 = vsel %vm65_vm0, %v6034_v31, 0.0 }
0x100a   :  { %6039 = vadd.xlane.f32.xlu1 %v6038_v37 }
0x103d   :  { %v6025_v32 = vpop.xlane.xlu0 %6024 }
0x103e   :  { %v6029_v4 = vmul.f32 0.03125, %v6025_v32  ;;  %v6022_v17 = vpop.xlane.xlu1 %6021 }
0x103f   :  { %v6028_v28 = vmul.f32 0.03125, %v6022_v17 }
0x1040   :  { %v6033_v63 = vsub.f32 %v6011_v43, %v6029_v4 }
0x1041   :  { %v6032_v15 = vsub.f32 %v6010_v55, %v6028_v28 }
0x1042   :  { %v6037_v39 = vmul.f32 %v6033_v63, %v6033_v63 }
0x1043   :  { %v6036_v50 = vmul.f32 %v6032_v15, %v6032_v15 }
0x1044   :  { %v6047_v35 = vsel %vm65_vm0, %v6037_v39, 0.0 }
0x1045   :  { %6048 = vadd.xlane.f32.xlu0 %v6047_v35  ;;  %v6044_v61 = vsel %vm65_vm0, %v6036_v50, 0.0 }
0x1046   :  { %6045 = vadd.xlane.f32.xlu1 %v6044_v61 }
0x1096   :  { %v6043_v54 = vpop.xlane.xlu0 %6042 }
0x1097   :  { %v6051_v60 = vmul.f32 0.03125, %v6043_v54  ;;  %v6040_v7 = vpop.xlane.xlu1 %6039 }
0x1098   :  { %v6050_v36 = vmul.f32 0.03125, %v6040_v7 }
0x1099   :  { %v6055_v34 = vadd.f32 1e-05, %v6051_v60 }
0x109a   :  { %v6054_v13 = vadd.f32 1e-05, %v6050_v36 }
0x109b   :  { %14013 = vrsqrt.f32 %v6055_v34 }
0x109c   :  { %14015 = vrsqrt.f32 %v6054_v13 }
0x10a5   :  { %v14014_v46 = vpop.eup %14013 }
0x10a6   :  { %v14016_v18 = vpop.eup %14015  ;;  %v6063_v20 = vmul.f32 %v14014_v46, %v6031_v59 }
0x10a7   :  { %v6062_v6 = vmul.f32 %v14016_v18, %v6030_v47 }
0x10a8   :  { %v6073_v38 = vmul.f32 %v12384_v51, %v6063_v20 }
0x10a9   :  { %v6072_v8 = vmul.f32 %v12384_v51, %v6062_v6 }
0x10aa   :  { %v15400_v40 = vadd.f32 %v12385_v56, %v6073_v38 }
0x10ab   :  { %v15398_v9 = vadd.f32 %v12385_v56, %v6072_v8 }
0x10ad   :  { %13335 = vmatprep.mubr.msk.f32.mxu0 %vm65_vm0, %v15398_v9 }
0x10ae   :  { %13336 = vmatmul.mubr.msk.f32.vlgmr.msra.gmra.mrb[74].mxu0 %vm65_vm0, %v15400_v40 }
0x10d2   :  { %v6049_v2 = vpop.xlane.xlu0 %6048 }
0x10d3   :  { %v6053_v57 = vmul.f32 0.03125, %v6049_v2  ;;  %v6046_v58 = vpop.xlane.xlu1 %6045 }
0x10d4   :  { %v6052_v5 = vmul.f32 0.03125, %v6046_v58 }
0x10d5   :  { %v6057_v11 = vadd.f32 1e-05, %v6053_v57 }
0x10d6   :  { %v6056_v1 = vadd.f32 1e-05, %v6052_v5 }
0x10d7   :  { %14017 = vrsqrt.f32 %v6057_v11 }
0x10d8   :  { %14019 = vrsqrt.f32 %v6056_v1 }
0x10e1   :  { %v14018_v0 = vpop.eup %14017 }
0x10e2   :  { %v14020_v26 = vpop.eup %14019  ;;  %v6065_v27 = vmul.f32 %v14018_v0, %v6033_v63 }
0x10e3   :  { %v6064_v42 = vmul.f32 %v14020_v26, %v6032_v15 }
0x10e4   :  { %v6075_v30 = vmul.f32 %v12384_v51, %v6065_v27 }
0x10e5   :  { %v6074_v52 = vmul.f32 %v12384_v51, %v6064_v42 }
0x10e6   :  { %v15408_v49 = vadd.f32 %v12385_v56, %v6075_v30 }
0x10e7   :  { %v15406_v24 = vadd.f32 %v12385_v56, %v6074_v52 }
0x10e9   :  { %13338 = vmatprep.mubr.msk.f32.mxu0 %vm65_vm0, %v15406_v24 }
0x10ea   :  { %13339 = vmatmul.mubr.msk.f32.gmra.mrb[76].mxu0 %vm65_vm0, %v15408_v49 }
0x10eb   :  { %13343 = vmatprep.mubr.msk.f32.mxu0 %vm14170_vm1, %v14169_v10 }
0x1181   :  { %v13337_v41 = vpop.f32.mrb[74].mxu0 }
0x1182   :  { %v6177_v44 = vpop.f32.mrb[75].mxu0  ;;  %v15427_v22 = vadd.f32 %v13337_v41, %v12391_v33 }
0x1183   :  { %v15419_v43 = vadd.f32 %v12391_v33, %v6177_v44 }
0x1184   :  { %v15435_v48 = vcombine.high %v15427_v22, %v15427_v22 }
0x1185   :  { %6204 = vrot.lane.b32.xlu1 %v15419_v43, %s14171_s21  ;;  %v15425_v55 = vcombine.high %v15419_v43, %v15419_v43 }
0x1187   :  { %6280 = vrot.lane.b32.xlu0 %v15425_v55, %s14171_s21 }
0x1189   :  { %6356 = vrot.lane.b32.xlu1 %v15427_v22, %s14171_s21 }
0x118d   :  { %6432 = vrot.lane.b32.xlu1 %v15435_v48, %s14171_s21 }
0x11bd   :  { %v13340_v19 = vpop.f32.mrb[76].mxu0 }
0x11be   :  { %v15439_v45 = vadd.f32 %v13340_v19, %v12391_v33  ;;  %v6187_v3 = vpop.f32.mrb[77].mxu0 }
0x11bf   :  { %v15441_v14 = vadd.f32 %v12391_v33, %v6187_v3 }
0x11c0   :  { %v15455_v47 = vcombine.high %v15439_v45, %v15439_v45 }
0x11c1   :  { %6508 = vrot.lane.b32.xlu0 %v15441_v14, %s14171_s21  ;;  %v15447_v59 = vcombine.high %v15441_v14, %v15441_v14 }
0x11c3   :  { %6584 = vrot.lane.b32.xlu1 %v15447_v59, %s14171_s21 }
0x11c5   :  { %6660 = vrot.lane.b32.xlu0 %v15439_v45, %s14171_s21 }
0x11c7   :  { %6736 = vrot.lane.b32.xlu1 %v15455_v47, %s14171_s21  ;;  %s16548_s21 = smov 48  }
0x11f7   :  { %v6205_v53 = vpop.permute.xlu1 %6204 }
0x11f8   :  { %13342 = vmatpush3.xpose.msk.msra.mxu0 %vm173_vm2, %v6205_v53 }
0x11f9   :  { %13346 = vmatprep.subr.mxu0 %v14169_v10  ;;  %v6281_v31 = vpop.permute.xlu0 %6280 }
0x11fb   :  { %13344 = vmatmul.mubr.msk.f32.vlgmr.msra.gmra.mrb[78].mxu0 %vm173_vm2, %v15419_v43  ;;  %v6357_v21 = vpop.permute.xlu1 %6356 }
0x11fc   :  { %13347 = vmatpush3.xpose.msk.msra.mxu0 %vm173_vm2, %v6281_v31  ;;  %13348 = vmatprep.mubr.msk.f32.mxu0 %vm14170_vm1, %v14169_v10 }
0x11fd   :  { %13351 = vmatprep.subr.mxu0 %v14169_v10 }
0x11ff   :  { %13349 = vmatmul.mubr.msk.f32.vlgmr.msra.gmra.mrb[80].mxu0 %vm173_vm2, %v15425_v55  ;;  %v6433_v37 = vpop.permute.xlu1 %6432 }
0x1200   :  { %13352 = vmatpush3.xpose.msk.msra.mxu0 %vm173_vm2, %v6357_v21  ;;  %13353 = vmatprep.mubr.msk.f32.mxu0 %vm14170_vm1, %v14169_v10 }
0x1201   :  { %13356 = vmatprep.subr.mxu0 %v14169_v10 }
0x1203   :  { %13354 = vmatmul.mubr.msk.f32.vlgmr.msra.gmra.mrb[82].mxu0 %vm173_vm2, %v15427_v22 }
0x1204   :  { %13357 = vmatpush3.xpose.msk.msra.mxu0 %vm173_vm2, %v6433_v37  ;;  %13358 = vmatprep.mubr.msk.f32.mxu0 %vm14170_vm1, %v14169_v10 }
0x1205   :  { %13361 = vmatprep.subr.mxu0 %v14169_v10 }
0x1207   :  { %13359 = vmatmul.mubr.msk.f32.vlgmr.msra.gmra.mrb[84].mxu0 %vm173_vm2, %v15435_v48 }
0x1208   :  { %13363 = vmatprep.mubr.msk.f32.mxu0 %vm14170_vm1, %v14169_v10 }
0x1233   :  { %v6509_v23 = vpop.permute.xlu0 %6508 }
0x1234   :  { %13362 = vmatpush3.xpose.msk.msra.mxu0 %vm173_vm2, %v6509_v23 }
0x1235   :  { %v6585_v12 = vpop.permute.xlu1 %6584  ;;  %13366 = vmatprep.subr.mxu0 %v14169_v10 }
0x1237   :  { %13364 = vmatmul.mubr.msk.f32.vlgmr.msra.gmra.mrb[86].mxu0 %vm173_vm2, %v15441_v14  ;;  %v6661_v16 = vpop.permute.xlu0 %6660 }
0x1238   :  { %13367 = vmatpush3.xpose.msk.msra.mxu0 %vm173_vm2, %v6585_v12  ;;  %13372 = vmatpush3.xpose.msk.msra.mxu1 %vm173_vm2, %v6661_v16 }
0x1239   :  { %13368 = vmatprep.mubr.msk.f32.mxu0 %vm14170_vm1, %v14169_v10  ;;  %13376 = vmatprep.subr.mxu0 %v14169_v10  ;;  %v6737_v62 = vpop.permute.xlu1 %6736 }
0x123a   :  { %13381 = vmatprep.subr.mxu1 %v14169_v10 }
0x123b   :  { %13369 = vmatmul.mubr.msk.f32.vlgmr.msra.gmra.mrb[88].mxu0 %vm173_vm2, %v15447_v59  ;;  %13374 = vmatmul.mubr.msk.f32.vlgmr.msra.gmra.mrb[70].mxu1 %vm173_vm2, %v15439_v45 }
0x123c   :  { %13377 = vmatpush3.xpose.msk.msra.mxu0 %vm173_vm2, %v6737_v62  ;;  %13378 = vmatprep.mubr.msk.f32.mxu0 %vm14170_vm1, %v14169_v10 }
0x123d   :  { %13386 = vmatprep.subr.mxu0 %v14169_v10  ;;  %13383 = vmatprep.mubr.msk.f32.mxu1 %vm14170_vm1, %v14169_v10 }
0x123f   :  { %13379 = vmatmul.mubr.msk.f32.vlgmr.msra.gmra.mrb[90].mxu0 %vm173_vm2, %v15455_v47 }
0x1240   :  { %13388 = vmatprep.mubr.msk.f32.mxu0 %vm14170_vm1, %v14169_v10 }
0x12ce   :  { %v6276_v25 = vpop.f32.mrb[78].mxu0 }
0x12cf   :  { %v13345_v29 = vpop.f32.mrb[79].mxu0  ;;  %v6812_v32 = vsel %vm780_vm4, %v6276_v25, -inf }
0x12d0   :  { %6813 = vmax.xlane.f32.xlu0 %v6812_v32 }
0x12d2   :  { %v6352_v4 = vpop.f32.mrb[80].mxu0 }
0x12d3   :  { %v13350_v17 = vpop.f32.mrb[81].mxu0  ;;  %v6815_v28 = vsel %vm780_vm4, %v6352_v4, -inf }
0x12d4   :  { %6816 = vmax.xlane.f32.xlu1 %v6815_v28 }
0x12d6   :  { %v15509_v63 = vpop.f32.mrb[82].mxu0 }
0x12d7   :  { %v13355_v15 = vpop.f32.mrb[83].mxu0  ;;  %v6818_v39 = vsel %vm780_vm4, %v15509_v63, -inf }
0x12d8   :  { %6819 = vmax.xlane.f32.xlu0 %v6818_v39 }
0x12da   :  { %v6504_v50 = vpop.f32.mrb[84].mxu0 }
0x12db   :  { %v13360_v35 = vpop.f32.mrb[85].mxu0  ;;  %v6821_v61 = vsel %vm780_vm4, %v6504_v50, -inf }
0x12dc   :  { %6822 = vmax.xlane.f32.xlu0 %v6821_v61 }
0x130a   :  { %v15514_v54 = vpop.f32.mrb[86].mxu0 }
0x130b   :  { %v13365_v60 = vpop.f32.mrb[87].mxu0  ;;  %v6824_v7 = vsel %vm780_vm4, %v15514_v54, -inf }
0x130c   :  { %6825 = vmax.xlane.f32.xlu1 %v6824_v7 }
0x130e   :  { %v6656_v36 = vpop.f32.mrb[88].mxu0  ;;  %v6732_v34 = vpop.f32.mrb[70].mxu1 }
0x130f   :  { %v13370_v13 = vpop.f32.mrb[89].mxu0  ;;  %v13375_v46 = vpop.f32.mrb[71].mxu1  ;;  %v6827_v51 = vsel %vm780_vm4, %v6656_v36, -inf  ;;  %v6830_v18 = vsel %vm780_vm4, %v6732_v34, -inf }
0x1310   :  { %6828 = vmax.xlane.f32.xlu0 %v6827_v51  ;;  %6831 = vmax.xlane.f32.xlu1 %v6830_v18 }
0x1312   :  { %v6808_v20 = vpop.f32.mrb[90].mxu0 }
0x1313   :  { %v13380_v6 = vpop.f32.mrb[91].mxu0  ;;  %v6833_v56 = vsel %vm780_vm4, %v6808_v20, -inf }
0x1314   :  { %6834 = vmax.xlane.f32.xlu0 %v6833_v56 }
0x1321   :  { %6900 = vrot.lane.b32.xlu1 %v15419_v43, %s14172_s22 }
0x1325   :  { %7054 = vrot.lane.b32.xlu1 %v15427_v22, %s14172_s22 }
0x1329   :  { %7131 = vrot.lane.b32.xlu1 %v15435_v48, %s14172_s22 }
0x132a   :  { %6977 = vrot.lane.b32.xlu0 %v15425_v55, %s14172_s22 }
0x132d   :  { %7285 = vrot.lane.b32.xlu1 %v15447_v59, %s14172_s22 }
0x132e   :  { %7208 = vrot.lane.b32.xlu0 %v15441_v14, %s14172_s22 }
0x1331   :  { %7439 = vrot.lane.b32.xlu1 %v15455_v47, %s14172_s22 }
0x1332   :  { %7362 = vrot.lane.b32.xlu0 %v15439_v45, %s14172_s22  ;;  %s16549_s22 = smov 72  }
0x1335   :  { %7596 = vrot.lane.b32.xlu1 %v15425_v55, %s14173_s23 }
0x1336   :  { %7518 = vrot.lane.b32.xlu0 %v15419_v43, %s14173_s23 }
0x1339   :  { %7594 = vrot.lane.b32.xlu1 %v15425_v55, %s14174_s24 }
0x133a   :  { %7516 = vrot.lane.b32.xlu0 %v15419_v43, %s14174_s24 }
0x133d   :  { %7752 = vrot.lane.b32.xlu1 %v15435_v48, %s14173_s23 }
0x133e   :  { %7674 = vrot.lane.b32.xlu0 %v15427_v22, %s14173_s23 }
0x135d   :  { %v6814_v38 = vpop.xlane.xlu0 %6813 }
0x135e   :  { %v6836_v8 = vsub.f32 %v6276_v25, %v6814_v38 }
0x1360   :  { %v6844_v2 = vmul.f32 1.442695, %v6836_v8 }
0x1361   :  { %v6817_v57 = vpop.xlane.xlu1 %6816 }
0x1362   :  { %14021 = vpow2.f32 %v6844_v2  ;;  %v6837_v58 = vsub.f32 %v6352_v4, %v6817_v57 }
0x1364   :  { %v6846_v5 = vmul.f32 1.442695, %v6837_v58 }
0x1365   :  { %v6820_v11 = vpop.xlane.xlu0 %6819 }
0x1366   :  { %14023 = vpow2.f32 %v6846_v5  ;;  %v6838_v19 = vsub.f32 %v15509_v63, %v6820_v11 }
0x1368   :  { %v6848_v37 = vmul.f32 1.442695, %v6838_v19 }
0x1369   :  { %v6823_v1 = vpop.xlane.xlu0 %6822 }
0x136a   :  { %v6839_v0 = vsub.f32 %v6504_v50, %v6823_v1 }
0x136c   :  { %v15549_v26 = vpop.eup %14021  ;;  %v6850_v27 = vmul.f32 1.442695, %v6839_v0 }
0x136d   :  { %v6860_v42 = vsel %vm780_vm4, %v15549_v26, 0.0 }
0x136e   :  { %14025 = vpow2.f32 %v6850_v27  ;;  %6861 = vadd.xlane.f32.xlu1 %v6860_v42 }
0x1370   :  { %v15553_v30 = vpop.eup %14023 }
0x1371   :  { %v6863_v52 = vsel %vm780_vm4, %v15553_v30, 0.0 }
0x1372   :  { %6864 = vadd.xlane.f32.xlu0 %v6863_v52 }
0x1378   :  { %v15557_v33 = vpop.eup %14025 }
0x1379   :  { %v6869_v41 = vsel %vm780_vm4, %v15557_v33, 0.0 }
0x137a   :  { %6870 = vadd.xlane.f32.xlu0 %v6869_v41 }
0x1399   :  { %v6826_v44 = vpop.xlane.xlu1 %6825 }
0x139a   :  { %v6840_v23 = vsub.f32 %v15514_v54, %v6826_v44 }
0x139c   :  { %v6852_v32 = vmul.f32 1.442695, %v6840_v23 }
0x139d   :  { %v6832_v3 = vpop.xlane.xlu1 %6831  ;;  %v6829_v53 = vpop.xlane.xlu0 %6828 }
0x139e   :  { %v6842_v31 = vsub.f32 %v6732_v34, %v6832_v3  ;;  %v6841_v21 = vsub.f32 %v6656_v36, %v6829_v53 }
0x13a0   :  { %v6856_v12 = vmul.f32 1.442695, %v6842_v31  ;;  %v6854_v16 = vmul.f32 1.442695, %v6841_v21 }
0x13a1   :  { %v6901_v62 = vpop.permute.xlu1 %6900  ;;  %v6835_v25 = vpop.xlane.xlu0 %6834 }
0x13a2   :  { %14027 = vpow2.f32 %v6856_v12  ;;  %v6843_v29 = vsub.f32 %v6808_v20, %v6835_v25  ;;  %13382 = vmatpush3.msk.msra.mxu1 %vm875_vm3, %v6901_v62 }
0x13a3   :  { %14029 = vpow2.f32 %v6854_v16  ;;  %13391 = vmatprep.subr.mxu1 %v14169_v10 }
0x13a4   :  { %14031 = vpow2.f32 %v6848_v37  ;;  %v6858_v4 = vmul.f32 1.442695, %v6843_v29 }
0x13a5   :  { %v6978_v17 = vpop.permute.xlu0 %6977  ;;  %v7055_v36 = vpop.permute.xlu1 %7054 }
0x13a6   :  { %14033 = vpow2.f32 %v6858_v4  ;;  %13387 = vmatpush3.msk.msra.mxu0 %vm875_vm3, %v6978_v17 }
0x13a7   :  { %13396 = vmatprep.subr.mxu0 %v14169_v10  ;;  %14035 = vpow2.f32 %v6852_v32 }
0x13a9   :  { %v7132_v34 = vpop.permute.xlu1 %7131  ;;  %v7209_v46 = vpop.permute.xlu0 %7208 }
0x13ac   :  { %v15567_v28 = vpop.eup %14027 }
0x13ad   :  { %v15569_v63 = vpop.eup %14029  ;;  %v6878_v15 = vsel %vm780_vm4, %v15567_v28, 0.0  ;;  %v7286_v13 = vpop.permute.xlu1 %7285 }
0x13ae   :  { %v15573_v39 = vpop.eup %14031  ;;  %6879 = vadd.xlane.f32.xlu1 %v6878_v15  ;;  %v6875_v50 = vsel %vm780_vm4, %v15569_v63, 0.0  ;;  %v15607_v18 = vpop.permute.xlu0 %7362 }
0x13af   :  { %6876 = vadd.xlane.f32.xlu0 %v6875_v50  ;;  %v6866_v61 = vsel %vm780_vm4, %v15573_v39, 0.0 }
0x13b0   :  { %v15577_v35 = vpop.eup %14033 }
0x13b1   :  { %v6881_v54 = vsel %vm780_vm4, %v15577_v35, 0.0  ;;  %v15583_v60 = vpop.eup %14035  ;;  %v7440_v51 = vpop.permute.xlu1 %7439 }
0x13b2   :  { %6867 = vadd.xlane.f32.xlu1 %v6866_v61  ;;  %v6872_v7 = vsel %vm780_vm4, %v15583_v60, 0.0  ;;  %v15611_v6 = vpop.permute.xlu0 %7518 }
0x13b3   :  { %6882 = vadd.xlane.f32.xlu0 %v6881_v54 }
0x13b5   :  { %v15609_v20 = vpop.permute.xlu1 %7596 }
0x13b6   :  { %6873 = vadd.xlane.f32.xlu1 %v6872_v7  ;;  %v15615_v38 = vpop.permute.xlu0 %7516 }
0x13b9   :  { %v15613_v56 = vpop.permute.xlu1 %7594 }
0x13ba   :  { %v15619_v2 = vpop.permute.xlu0 %7674 }
0x13bd   :  { %v15617_v8 = vpop.permute.xlu1 %7752 }
0x13c7   :  { %7750 = vrot.lane.b32.xlu1 %v15435_v48, %s14174_s24 }
0x13c9   :  { %7672 = vrot.lane.b32.xlu0 %v15427_v22, %s14174_s24 }
0x13cb   :  { %7908 = vrot.lane.b32.xlu1 %v15447_v59, %s14173_s23 }
0x13cd   :  { %7830 = vrot.lane.b32.xlu0 %v15441_v14, %s14173_s23 }
0x13cf   :  { %7906 = vrot.lane.b32.xlu1 %v15447_v59, %s14174_s24 }
0x13d1   :  { %7828 = vrot.lane.b32.xlu0 %v15441_v14, %s14174_s24 }
0x13d3   :  { %8064 = vrot.lane.b32.xlu1 %v15455_v47, %s14173_s23 }
0x13d5   :  { %7986 = vrot.lane.b32.xlu0 %v15439_v45, %s14173_s23  ;;  %s16550_s23 = smov 104  }
0x13d7   :  { %8062 = vrot.lane.b32.xlu1 %v15455_v47, %s14174_s24 }
0x13d9   :  { %7984 = vrot.lane.b32.xlu0 %v15439_v45, %s14174_s24  ;;  %s16551_s24 = smov 40  }
0x13fb   :  { %v6862_v57 = vpop.xlane.xlu1 %6861 }
0x13fc   :  { %14037 = vrcp.f32 %v6862_v57 }
0x13ff   :  { %v6865_v58 = vpop.xlane.xlu0 %6864 }
0x1400   :  { %14039 = vrcp.f32 %v6865_v58 }
0x1406   :  { %v14038_v5 = vpop.eup %14037 }
0x1407   :  { %v6871_v11 = vpop.xlane.xlu0 %6870  ;;  %v6892_v1 = vmul.f32 %v14038_v5, %v15549_v26 }
0x1408   :  { %14041 = vrcp.f32 %v6871_v11 }
0x1409   :  { %13384 = vmatmul.mubr.msk.f32.vlgmr.msra.gmra.mrb[72].mxu1 %vm871_vm5, %v6892_v1 }
0x140a   :  { %v14040_v0 = vpop.eup %14039  ;;  %13392 = vmatpush3.msk.msra.mxu1 %vm875_vm3, %v7055_v36  ;;  %13393 = vmatprep.mubr.msk.f32.mxu1 %vm14170_vm1, %v14169_v10 }
0x140b   :  { %v6893_v27 = vmul.f32 %v14040_v0, %v15553_v30  ;;  %13401 = vmatprep.subr.mxu1 %v14169_v10 }
0x140d   :  { %13389 = vmatmul.mubr.msk.f32.vlgmr.msra.gmra.mrb[92].mxu0 %vm871_vm5, %v6893_v27 }
0x140e   :  { %13397 = vmatpush3.msk.msra.mxu0 %vm875_vm3, %v7132_v34  ;;  %13398 = vmatprep.mubr.msk.f32.mxu0 %vm14170_vm1, %v14169_v10 }
0x140f   :  { %13406 = vmatprep.subr.mxu0 %v14169_v10 }
0x1412   :  { %v14042_v26 = vpop.eup %14041 }
0x1413   :  { %v6895_v42 = vmul.f32 %v14042_v26, %v15557_v33 }
0x1415   :  { %13399 = vmatmul.mubr.msk.f32.vlgmr.msra.gmra.mrb[94].mxu0 %vm871_vm5, %v6895_v42 }
0x1416   :  { %13407 = vmatpush3.msk.msra.mxu0 %vm875_vm3, %v7286_v13  ;;  %13408 = vmatprep.mubr.msk.f32.mxu0 %vm14170_vm1, %v14169_v10 }
0x1417   :  { %13416 = vmatprep.subr.mxu0 %v14169_v10 }
0x143b   :  { %v6880_v30 = vpop.xlane.xlu1 %6879 }
0x143c   :  { %v6877_v52 = vpop.xlane.xlu0 %6876 }
0x143d   :  { %14043 = vrcp.f32 %v6877_v52 }
0x143f   :  { %v6868_v41 = vpop.xlane.xlu1 %6867 }
0x1440   :  { %14045 = vrcp.f32 %v6868_v41  ;;  %v6883_v44 = vpop.xlane.xlu0 %6882 }
0x1441   :  { %14047 = vrcp.f32 %v6883_v44 }
0x1443   :  { %v6874_v19 = vpop.xlane.xlu1 %6873 }
0x1444   :  { %14049 = vrcp.f32 %v6874_v19  ;;  %v7673_v62 = vpop.permute.xlu0 %7672 }
0x1445   :  { %14051 = vrcp.f32 %v6880_v30 }
0x1447   :  { %v14044_v33 = vpop.eup %14043  ;;  %v7751_v3 = vpop.permute.xlu1 %7750 }
0x1448   :  { %v6897_v53 = vmul.f32 %v14044_v33, %v15569_v63  ;;  %v7831_v17 = vpop.permute.xlu0 %7830 }
0x144a   :  { %v14046_v31 = vpop.eup %14045  ;;  %13409 = vmatmul.mubr.msk.f32.vlgmr.msra.gmra.mrb[96].mxu0 %vm871_vm5, %v6897_v53 }
0x144b   :  { %v14048_v21 = vpop.eup %14047  ;;  %13417 = vmatpush3.msk.msra.mxu0 %vm875_vm3, %v7440_v51  ;;  %13418 = vmatprep.mubr.msk.f32.mxu0 %vm14170_vm1, %v14169_v10  ;;  %v6894_v37 = vmul.f32 %v14046_v31, %v15573_v39  ;;  %v7909_v16 = vpop.permute.xlu1 %7908 }
0x144c   :  { %v6899_v23 = vmul.f32 %v14048_v21, %v15577_v35  ;;  %13426 = vmatprep.subr.mxu0 %v14169_v10  ;;  %v7829_v63 = vpop.permute.xlu0 %7828 }
0x144d   :  { %13394 = vmatmul.mubr.msk.f32.vlgmr.msra.gmra.mrb[74].mxu1 %vm871_vm5, %v6894_v37 }
0x144e   :  { %v14050_v12 = vpop.eup %14049  ;;  %13402 = vmatpush3.msk.msra.mxu1 %vm875_vm3, %v7209_v46  ;;  %13419 = vmatmul.mubr.msk.f32.vlgmr.msra.gmra.mrb[98].mxu0 %vm871_vm5, %v6899_v23 }
0x144f   :  { %13403 = vmatprep.mubr.msk.f32.mxu1 %vm14170_vm1, %v14169_v10  ;;  %13411 = vmatprep.subr.mxu1 %v14169_v10  ;;  %v6896_v25 = vmul.f32 %v14050_v12, %v15583_v60  ;;  %v14052_v29 = vpop.eup %14051  ;;  %v7907_v4 = vpop.permute.xlu1 %7906 }
0x1450   :  { %13428 = vmatprep.mubr.msk.f32.mxu0 %vm14170_vm1, %v14169_v10  ;;  %v6898_v32 = vmul.f32 %v14052_v29, %v15567_v28  ;;  %v7987_v39 = vpop.permute.xlu0 %7986 }
0x1451   :  { %13404 = vmatmul.mubr.msk.f32.vlgmr.msra.gmra.mrb[76].mxu1 %vm871_vm5, %v6896_v25 }
0x1452   :  { %13427 = vmatpush3.xpose.msk.msra.mxu0 %vm173_vm2, %v15609_v20  ;;  %13412 = vmatpush3.msk.msra.mxu1 %vm875_vm3, %v15607_v18 }
0x1453   :  { %13436 = vmatprep.subr.mxu0 %v14169_v10  ;;  %13413 = vmatprep.mubr.msk.f32.mxu1 %vm14170_vm1, %v14169_v10  ;;  %v8065_v28 = vpop.permute.xlu1 %8064 }
0x1454   :  { %13421 = vmatprep.subr.mxu1 %v14169_v10  ;;  %v7985_v50 = vpop.permute.xlu0 %7984 }
0x1455   :  { %13429 = vmatmul.mubr.msk.f32.vlgmr.msra.gmra.mrb[100].mxu0 %vm173_vm2, %v15613_v56  ;;  %13414 = vmatmul.mubr.msk.f32.vlgmr.msra.gmra.mrb[78].mxu1 %vm871_vm5, %v6898_v32 }
0x1456   :  { %13437 = vmatpush3.xpose.msk.msra.mxu0 %vm173_vm2, %v15617_v8  ;;  %13438 = vmatprep.mubr.msk.f32.mxu0 %vm14170_vm1, %v14169_v10 }
0x1457   :  { %13446 = vmatprep.subr.mxu0 %v14169_v10  ;;  %13423 = vmatprep.mubr.msk.f32.mxu1 %vm14170_vm1, %v14169_v10  ;;  %v8063_v15 = vpop.permute.xlu1 %8062 }
0x1459   :  { %13439 = vmatmul.mubr.msk.f32.vlgmr.msra.gmra.mrb[102].mxu0 %vm173_vm2, %v7751_v3  ;;  %13422 = vmatpush3.xpose.msk.msra.mxu1 %vm173_vm2, %v15611_v6 }
0x145a   :  { %13447 = vmatpush3.xpose.msk.msra.mxu0 %vm173_vm2, %v7909_v16  ;;  %13448 = vmatprep.mubr.msk.f32.mxu0 %vm14170_vm1, %v14169_v10 }
0x145b   :  { %13431 = vmatprep.subr.mxu1 %v14169_v10  ;;  %13456 = vmatprep.subr.mxu0 %v14169_v10 }
0x145c   :  { %13424 = vmatmul.mubr.msk.f32.vlgmr.msra.gmra.mrb[80].mxu1 %vm173_vm2, %v15615_v38 }
0x145d   :  { %13449 = vmatmul.mubr.msk.f32.vlgmr.msra.gmra.mrb[104].mxu0 %vm173_vm2, %v7907_v4  ;;  %13432 = vmatpush3.xpose.msk.msra.mxu1 %vm173_vm2, %v15619_v2 }
0x145e   :  { %13457 = vmatpush3.xpose.msk.msra.mxu0 %vm173_vm2, %v8065_v28  ;;  %13433 = vmatprep.mubr.msk.f32.mxu1 %vm14170_vm1, %v14169_v10 }
0x145f   :  { %13458 = vmatprep.mubr.msk.f32.mxu0 %vm14170_vm1, %v14169_v10  ;;  %13441 = vmatprep.subr.mxu1 %v14169_v10 }
0x1460   :  { %13434 = vmatmul.mubr.msk.f32.vlgmr.msra.gmra.mrb[82].mxu1 %vm173_vm2, %v7673_v62  ;;  %13466 = vmatprep.subr.mxu0 %v14169_v10 }
0x1461   :  { %13459 = vmatmul.mubr.msk.f32.vlgmr.msra.gmra.mrb[106].mxu0 %vm173_vm2, %v8063_v15  ;;  %13442 = vmatpush3.xpose.msk.msra.mxu1 %vm173_vm2, %v7831_v17 }
0x1462   :  { %13443 = vmatprep.mubr.msk.f32.mxu1 %vm14170_vm1, %v14169_v10  ;;  %13451 = vmatprep.subr.mxu1 %v14169_v10 }
0x1463   :  { %13468 = vmatprep.mubr.msk.f32.mxu0 %vm14170_vm1, %v14169_v10 }
0x1464   :  { %13444 = vmatmul.mubr.msk.f32.vlgmr.msra.gmra.mrb[84].mxu1 %vm173_vm2, %v7829_v63 }
0x1465   :  { %13452 = vmatpush3.xpose.msk.msra.mxu1 %vm173_vm2, %v7987_v39  ;;  %13453 = vmatprep.mubr.msk.f32.mxu1 %vm14170_vm1, %v14169_v10 }
0x1466   :  { %13461 = vmatprep.subr.mxu1 %v14169_v10 }
0x1468   :  { %13454 = vmatmul.mubr.msk.f32.vlgmr.msra.gmra.mrb[86].mxu1 %vm173_vm2, %v7985_v50 }
0x1469   :  { %13463 = vmatprep.mubr.msk.f32.mxu1 %vm14170_vm1, %v14169_v10 }
0x14dc   :  { %v15712_v35 = vpop.f32.mrb[72].mxu1 }
0x14dd   :  { %v13385_v61 = vpop.f32.mrb[73].mxu1 }
0x14e0   :  { %v15714_v54 = vpop.f32.mrb[92].mxu0 }
0x14e1   :  { %v13390_v60 = vpop.f32.mrb[93].mxu0 }
0x14e8   :  { %v15716_v7 = vpop.f32.mrb[94].mxu0 }
0x14e9   :  { %v13400_v36 = vpop.f32.mrb[95].mxu0 }
0x151d   :  { %v15718_v34 = vpop.f32.mrb[96].mxu0 }
0x151e   :  { %v13410_v13 = vpop.f32.mrb[97].mxu0 }
0x1520   :  { %v15720_v46 = vpop.f32.mrb[74].mxu1 }
0x1521   :  { %v15722_v51 = vpop.f32.mrb[98].mxu0  ;;  %v13395_v18 = vpop.f32.mrb[75].mxu1 }
0x1522   :  { %v13420_v20 = vpop.f32.mrb[99].mxu0 }
0x1524   :  { %v15724_v6 = vpop.f32.mrb[76].mxu1 }
0x1525   :  { %v13405_v56 = vpop.f32.mrb[77].mxu1 }
0x1528   :  { %v7668_v38 = vpop.f32.mrb[100].mxu0  ;;  %v15726_v8 = vpop.f32.mrb[78].mxu1 }
0x1529   :  { %v13430_v2 = vpop.f32.mrb[101].mxu0  ;;  %v8143_v57 = vsel %vm780_vm4, %v7668_v38, -inf  ;;  %v13415_v58 = vpop.f32.mrb[79].mxu1 }
0x152a   :  { %8144 = vmax.xlane.f32.xlu1 %v8143_v57 }
0x152c   :  { %v7824_v5 = vpop.f32.mrb[102].mxu0 }
0x152d   :  { %v13440_v11 = vpop.f32.mrb[103].mxu0  ;;  %v8149_v53 = vsel %vm780_vm4, %v7824_v5, -inf }
0x152f   :  { %v7590_v1 = vpop.f32.mrb[80].mxu1 }
0x1530   :  { %v15729_v0 = vpop.f32.mrb[104].mxu0  ;;  %v13425_v27 = vpop.f32.mrb[81].mxu1  ;;  %v8140_v26 = vsel %vm780_vm4, %v7590_v1, -inf }
0x1531   :  { %v13450_v42 = vpop.f32.mrb[105].mxu0  ;;  %8141 = vmax.xlane.f32.xlu0 %v8140_v26  ;;  %v8155_v23 = vsel %vm780_vm4, %v15729_v0, -inf }
0x1533   :  { %v7746_v30 = vpop.f32.mrb[82].mxu1 }
0x1534   :  { %v15732_v52 = vpop.f32.mrb[106].mxu0  ;;  %v13435_v41 = vpop.f32.mrb[83].mxu1  ;;  %v8146_v44 = vsel %vm780_vm4, %v7746_v30, -inf }
0x1535   :  { %v13460_v19 = vpop.f32.mrb[107].mxu0  ;;  %8147 = vmax.xlane.f32.xlu0 %v8146_v44  ;;  %v8161_v16 = vsel %vm780_vm4, %v15732_v52, -inf }
0x1537   :  { %v7902_v33 = vpop.f32.mrb[84].mxu1 }
0x1538   :  { %v13445_v3 = vpop.f32.mrb[85].mxu1  ;;  %v8152_v31 = vsel %vm780_vm4, %v7902_v33, -inf }
0x1539   :  { %8150 = vmax.xlane.f32.xlu0 %v8149_v53  ;;  %8153 = vmax.xlane.f32.xlu1 %v8152_v31 }
0x153b   :  { %v8058_v21 = vpop.f32.mrb[86].mxu1 }
0x153c   :  { %v13455_v37 = vpop.f32.mrb[87].mxu1  ;;  %v8158_v12 = vsel %vm780_vm4, %v8058_v21, -inf }
0x153d   :  { %8156 = vmax.xlane.f32.xlu0 %v8155_v23  ;;  %8159 = vmax.xlane.f32.xlu1 %v8158_v12 }
0x1541   :  { %8162 = vmax.xlane.f32.xlu0 %v8161_v16 }
0x154e   :  { %8228 = vrot.lane.b32.xlu1 %v15419_v43, %s14175_s25 }
0x1552   :  { %8382 = vrot.lane.b32.xlu1 %v15427_v22, %s14175_s25 }
0x1556   :  { %8459 = vrot.lane.b32.xlu1 %v15435_v48, %s14175_s25 }
0x1557   :  { %8305 = vrot.lane.b32.xlu0 %v15425_v55, %s14175_s25 }
0x155a   :  { %8613 = vrot.lane.b32.xlu1 %v15447_v59, %s14175_s25 }
0x155b   :  { %8536 = vrot.lane.b32.xlu0 %v15441_v14, %s14175_s25 }
0x155e   :  { %8767 = vrot.lane.b32.xlu1 %v15455_v47, %s14175_s25 }
0x155f   :  { %8690 = vrot.lane.b32.xlu0 %v15439_v45, %s14175_s25  ;;  %s16552_s25 = smov 8  }
0x1562   :  { %8924 = vrot.lane.b32.xlu1 %v15425_v55, %s14176_s26 }
0x1563   :  { %8846 = vrot.lane.b32.xlu0 %v15419_v43, %s14176_s26 }
0x1566   :  { %8922 = vrot.lane.b32.xlu1 %v15425_v55, %s16547_s2 }
0x1567   :  { %8844 = vrot.lane.b32.xlu0 %v15419_v43, %s16547_s2 }
0x156a   :  { %9080 = vrot.lane.b32.xlu1 %v15435_v48, %s14176_s26 }
0x156b   :  { %9002 = vrot.lane.b32.xlu0 %v15427_v22, %s14176_s26 }
0x15b7   :  { %v8145_v62 = vpop.xlane.xlu1 %8144 }
0x15b8   :  { %v8165_v25 = vsub.f32 %v7668_v38, %v8145_v62 }
0x15ba   :  { %v8174_v29 = vmul.f32 1.442695, %v8165_v25 }
0x15bc   :  { %14053 = vpow2.f32 %v8174_v29 }
0x15be   :  { %v8142_v32 = vpop.xlane.xlu0 %8141 }
0x15bf   :  { %v8164_v4 = vsub.f32 %v7590_v1, %v8142_v32 }
0x15c1   :  { %v8172_v17 = vmul.f32 1.442695, %v8164_v4 }
0x15c2   :  { %v8148_v28 = vpop.xlane.xlu0 %8147 }
0x15c3   :  { %14055 = vpow2.f32 %v8172_v17  ;;  %v8166_v63 = vsub.f32 %v7746_v30, %v8148_v28 }
0x15c5   :  { %v8176_v15 = vmul.f32 1.442695, %v8166_v63 }
0x15c6   :  { %v15770_v39 = vpop.eup %14053  ;;  %v8154_v50 = vpop.xlane.xlu1 %8153 }
0x15c7   :  { %v8151_v61 = vpop.xlane.xlu0 %8150  ;;  %14057 = vpow2.f32 %v8176_v15  ;;  %v8168_v60 = vsub.f32 %v7902_v33, %v8154_v50  ;;  %v8191_v13 = vsel %vm780_vm4, %v15770_v39, 0.0 }
0x15c8   :  { %v8167_v36 = vsub.f32 %v7824_v5, %v8151_v61  ;;  %8192 = vadd.xlane.f32.xlu0 %v8191_v13 }
0x15c9   :  { %v8180_v18 = vmul.f32 1.442695, %v8168_v60 }
0x15ca   :  { %v8178_v20 = vmul.f32 1.442695, %v8167_v36  ;;  %v8160_v56 = vpop.xlane.xlu1 %8159 }
0x15cb   :  { %v8157_v38 = vpop.xlane.xlu0 %8156  ;;  %14059 = vpow2.f32 %v8180_v18  ;;  %v8170_v2 = vsub.f32 %v8058_v21, %v8160_v56 }
0x15cc   :  { %v8169_v57 = vsub.f32 %v15729_v0, %v8157_v38  ;;  %14061 = vpow2.f32 %v8178_v20 }
0x15cd   :  { %v15775_v58 = vpop.eup %14055  ;;  %v8184_v11 = vmul.f32 1.442695, %v8170_v2 }
0x15ce   :  { %v8182_v1 = vmul.f32 1.442695, %v8169_v57  ;;  %v8229_v27 = vpop.permute.xlu1 %8228  ;;  %v8188_v5 = vsel %vm780_vm4, %v15775_v58, 0.0 }
0x15cf   :  { %v8163_v26 = vpop.xlane.xlu0 %8162  ;;  %14063 = vpow2.f32 %v8184_v11  ;;  %13462 = vmatpush3.msk.msra.mxu1 %vm875_vm3, %v8229_v27  ;;  %8189 = vadd.xlane.f32.xlu1 %v8188_v5 }
0x15d0   :  { %v8171_v42 = vsub.f32 %v15732_v52, %v8163_v26  ;;  %14065 = vpow2.f32 %v8182_v1  ;;  %13471 = vmatprep.subr.mxu1 %v14169_v10 }
0x15d1   :  { %v15782_v0 = vpop.eup %14057 }
0x15d2   :  { %v8186_v30 = vmul.f32 1.442695, %v8171_v42  ;;  %v8194_v44 = vsel %vm780_vm4, %v15782_v0, 0.0  ;;  %v8383_v16 = vpop.permute.xlu1 %8382 }
0x15d3   :  { %v8306_v41 = vpop.permute.xlu0 %8305  ;;  %8195 = vadd.xlane.f32.xlu1 %v8194_v44 }
0x15d4   :  { %14067 = vpow2.f32 %v8186_v30  ;;  %13467 = vmatpush3.msk.msra.mxu0 %vm875_vm3, %v8306_v41 }
0x15d5   :  { %13476 = vmatprep.subr.mxu0 %v14169_v10  ;;  %v15788_v52 = vpop.eup %14059 }
0x15d6   :  { %v15790_v19 = vpop.eup %14061  ;;  %v8200_v33 = vsel %vm780_vm4, %v15788_v52, 0.0  ;;  %v8460_v25 = vpop.permute.xlu1 %8459 }
0x15d7   :  { %8201 = vadd.xlane.f32.xlu1 %v8200_v33  ;;  %v8197_v3 = vsel %vm780_vm4, %v15790_v19, 0.0  ;;  %v8537_v62 = vpop.permute.xlu0 %8536 }
0x15d8   :  { %8198 = vadd.xlane.f32.xlu0 %v8197_v3 }
0x15d9   :  { %v15796_v53 = vpop.eup %14063 }
0x15da   :  { %v15798_v31 = vpop.eup %14065  ;;  %v8206_v21 = vsel %vm780_vm4, %v15796_v53, 0.0  ;;  %v8614_v32 = vpop.permute.xlu1 %8613 }
0x15db   :  { %8207 = vadd.xlane.f32.xlu1 %v8206_v21  ;;  %v8203_v37 = vsel %vm780_vm4, %v15798_v31, 0.0  ;;  %v8691_v29 = vpop.permute.xlu0 %8690 }
0x15dc   :  { %8204 = vadd.xlane.f32.xlu0 %v8203_v37 }
0x15de   :  { %v15804_v23 = vpop.eup %14067  ;;  %v15854_v17 = vpop.permute.xlu1 %8767 }
0x15df   :  { %v8209_v12 = vsel %vm780_vm4, %v15804_v23, 0.0  ;;  %v15852_v4 = vpop.permute.xlu0 %8846 }
0x15e0   :  { %8210 = vadd.xlane.f32.xlu0 %v8209_v12 }
0x15e2   :  { %v15858_v63 = vpop.permute.xlu1 %8924 }
0x15e3   :  { %v15856_v28 = vpop.permute.xlu0 %8844 }
0x15e6   :  { %v15862_v50 = vpop.permute.xlu1 %8922 }
0x15e7   :  { %v15860_v15 = vpop.permute.xlu0 %9002 }
0x15ea   :  { %v15864_v60 = vpop.permute.xlu1 %9080 }
0x15ec   :  { %9078 = vrot.lane.b32.xlu1 %v15435_v48, %s16547_s2 }
0x15f0   :  { %9236 = vrot.lane.b32.xlu1 %v15447_v59, %s14176_s26 }
0x15f4   :  { %9234 = vrot.lane.b32.xlu1 %v15447_v59, %s16547_s2 }
0x15f6   :  { %9000 = vrot.lane.b32.xlu0 %v15427_v22, %s16547_s2 }
0x15f8   :  { %9392 = vrot.lane.b32.xlu1 %v15455_v47, %s14176_s26 }
0x15fa   :  { %9158 = vrot.lane.b32.xlu0 %v15441_v14, %s14176_s26 }
0x15fc   :  { %9390 = vrot.lane.b32.xlu1 %v15455_v47, %s16547_s2 }
0x15fe   :  { %9156 = vrot.lane.b32.xlu0 %v15441_v14, %s16547_s2 }
0x1600   :  { %9556 = vrot.lane.b32.xlu1 %v15419_v43, %s16548_s21 }
0x1602   :  { %9314 = vrot.lane.b32.xlu0 %v15439_v45, %s14176_s26  ;;  %s16553_s26 = smov 16  }
0x1604   :  { %9710 = vrot.lane.b32.xlu1 %v15427_v22, %s16548_s21 }
0x1606   :  { %9312 = vrot.lane.b32.xlu0 %v15439_v45, %s16547_s2 }
0x1608   :  { %9787 = vrot.lane.b32.xlu1 %v15435_v48, %s16548_s21 }
0x160a   :  { %9633 = vrot.lane.b32.xlu0 %v15425_v55, %s16548_s21 }
0x160c   :  { %9941 = vrot.lane.b32.xlu1 %v15447_v59, %s16548_s21 }
0x160e   :  { %9864 = vrot.lane.b32.xlu0 %v15441_v14, %s16548_s21 }
0x1610   :  { %10095 = vrot.lane.b32.xlu1 %v15455_v47, %s16548_s21 }
0x1612   :  { %10018 = vrot.lane.b32.xlu0 %v15439_v45, %s16548_s21 }
0x1614   :  { %10252 = vrot.lane.b32.xlu1 %v15425_v55, %s16549_s22 }
0x1616   :  { %10174 = vrot.lane.b32.xlu0 %v15419_v43, %s16549_s22 }
0x1618   :  { %10250 = vrot.lane.b32.xlu1 %v15425_v55, %s16550_s23 }
0x161a   :  { %10172 = vrot.lane.b32.xlu0 %v15419_v43, %s16550_s23 }
0x1655   :  { %v8193_v61 = vpop.xlane.xlu0 %8192 }
0x1656   :  { %14069 = vrcp.f32 %v8193_v61 }
0x165c   :  { %v8190_v36 = vpop.xlane.xlu1 %8189 }
0x165d   :  { %14071 = vrcp.f32 %v8190_v36 }
0x1660   :  { %v14070_v13 = vpop.eup %14069  ;;  %v8196_v18 = vpop.xlane.xlu1 %8195 }
0x1661   :  { %14073 = vrcp.f32 %v8196_v18  ;;  %v8221_v20 = vmul.f32 %v14070_v13, %v15770_v39 }
0x1663   :  { %13469 = vmatmul.mubr.msk.f32.vlgmr.msra.gmra.mrb[108].mxu0 %vm871_vm5, %v8221_v20 }
0x1664   :  { %13477 = vmatpush3.msk.msra.mxu0 %vm875_vm3, %v8460_v25  ;;  %v8202_v56 = vpop.xlane.xlu1 %8201  ;;  %13478 = vmatprep.mubr.msk.f32.mxu0 %vm14170_vm1, %v14169_v10 }
0x1665   :  { %14075 = vrcp.f32 %v8202_v56  ;;  %v8199_v38 = vpop.xlane.xlu0 %8198  ;;  %13486 = vmatprep.subr.mxu0 %v14169_v10 }
0x1666   :  { %14077 = vrcp.f32 %v8199_v38 }
0x1667   :  { %v14072_v2 = vpop.eup %14071 }
0x1668   :  { %v8208_v57 = vpop.xlane.xlu1 %8207  ;;  %v8220_v11 = vmul.f32 %v14072_v2, %v15775_v58 }
0x1669   :  { %14079 = vrcp.f32 %v8208_v57  ;;  %v8205_v1 = vpop.xlane.xlu0 %8204 }
0x166a   :  { %14081 = vrcp.f32 %v8205_v1  ;;  %13464 = vmatmul.mubr.msk.f32.vlgmr.msra.gmra.mrb[88].mxu1 %vm871_vm5, %v8220_v11 }
0x166b   :  { %v14074_v39 = vpop.eup %14073  ;;  %13472 = vmatpush3.msk.msra.mxu1 %vm875_vm3, %v8383_v16  ;;  %13473 = vmatprep.mubr.msk.f32.mxu1 %vm14170_vm1, %v14169_v10 }
0x166c   :  { %v9079_v27 = vpop.permute.xlu1 %9078  ;;  %13481 = vmatprep.subr.mxu1 %v14169_v10  ;;  %v8222_v26 = vmul.f32 %v14074_v39, %v15782_v0 }
0x166d   :  { %v8211_v5 = vpop.xlane.xlu0 %8210 }
0x166e   :  { %14083 = vrcp.f32 %v8211_v5  ;;  %13474 = vmatmul.mubr.msk.f32.vlgmr.msra.gmra.mrb[90].mxu1 %vm871_vm5, %v8222_v26 }
0x166f   :  { %v14076_v58 = vpop.eup %14075  ;;  %13482 = vmatpush3.msk.msra.mxu1 %vm875_vm3, %v8537_v62  ;;  %13483 = vmatprep.mubr.msk.f32.mxu1 %vm14170_vm1, %v14169_v10 }
0x1670   :  { %v14078_v42 = vpop.eup %14077  ;;  %13491 = vmatprep.subr.mxu1 %v14169_v10  ;;  %v8224_v30 = vmul.f32 %v14076_v58, %v15788_v52  ;;  %v9237_v41 = vpop.permute.xlu1 %9236 }
0x1671   :  { %v9001_v44 = vpop.permute.xlu0 %9000  ;;  %v8223_v33 = vmul.f32 %v14078_v42, %v15790_v19 }
0x1672   :  { %13484 = vmatmul.mubr.msk.f32.vlgmr.msra.gmra.mrb[92].mxu1 %vm871_vm5, %v8224_v30 }
0x1673   :  { %v14080_v0 = vpop.eup %14079  ;;  %13479 = vmatmul.mubr.msk.f32.vlgmr.msra.gmra.mrb[110].mxu0 %vm871_vm5, %v8223_v33  ;;  %13492 = vmatpush3.msk.msra.mxu1 %vm875_vm3, %v8691_v29 }
0x1674   :  { %v14082_v3 = vpop.eup %14081  ;;  %13487 = vmatpush3.msk.msra.mxu0 %vm875_vm3, %v8614_v32  ;;  %13488 = vmatprep.mubr.msk.f32.mxu0 %vm14170_vm1, %v14169_v10  ;;  %v8226_v21 = vmul.f32 %v14080_v0, %v15796_v53  ;;  %v9235_v37 = vpop.permute.xlu1 %9234 }
0x1675   :  { %13493 = vmatprep.mubr.msk.f32.mxu1 %vm14170_vm1, %v14169_v10  ;;  %13496 = vmatprep.subr.mxu0 %v14169_v10  ;;  %v8225_v52 = vmul.f32 %v14082_v3, %v15798_v31  ;;  %v9159_v19 = vpop.permute.xlu0 %9158 }
0x1676   :  { %13494 = vmatmul.mubr.msk.f32.vlgmr.msra.gmra.mrb[94].mxu1 %vm871_vm5, %v8226_v21  ;;  %13501 = vmatprep.subr.mxu1 %v14169_v10 }
0x1677   :  { %13489 = vmatmul.mubr.msk.f32.vlgmr.msra.gmra.mrb[112].mxu0 %vm871_vm5, %v8225_v52  ;;  %13503 = vmatprep.mubr.msk.f32.mxu1 %vm14170_vm1, %v14169_v10 }
0x1678   :  { %v14084_v12 = vpop.eup %14083  ;;  %13497 = vmatpush3.msk.msra.mxu0 %vm875_vm3, %v15854_v17  ;;  %13498 = vmatprep.mubr.msk.f32.mxu0 %vm14170_vm1, %v14169_v10  ;;  %v9393_v16 = vpop.permute.xlu1 %9392 }
0x1679   :  { %v8227_v53 = vmul.f32 %v14084_v12, %v15804_v23  ;;  %13506 = vmatprep.subr.mxu0 %v14169_v10  ;;  %v9157_v31 = vpop.permute.xlu0 %9156 }
0x167a   :  { %13502 = vmatpush3.xpose.msk.msra.mxu1 %vm173_vm2, %v15852_v4 }
0x167b   :  { %13499 = vmatmul.mubr.msk.f32.vlgmr.msra.gmra.mrb[114].mxu0 %vm871_vm5, %v8227_v53  ;;  %13511 = vmatprep.subr.mxu1 %v14169_v10 }
0x167c   :  { %13508 = vmatprep.mubr.msk.f32.mxu0 %vm14170_vm1, %v14169_v10  ;;  %v9391_v62 = vpop.permute.xlu1 %9390 }
0x167d   :  { %13504 = vmatmul.mubr.msk.f32.vlgmr.msra.gmra.mrb[96].mxu1 %vm173_vm2, %v15856_v28  ;;  %v9315_v23 = vpop.permute.xlu0 %9314 }
0x167e   :  { %13512 = vmatpush3.xpose.msk.msra.mxu1 %vm173_vm2, %v15860_v15  ;;  %13513 = vmatprep.mubr.msk.f32.mxu1 %vm14170_vm1, %v14169_v10 }
0x167f   :  { %13507 = vmatpush3.xpose.msk.msra.mxu0 %vm173_vm2, %v15858_v63  ;;  %13521 = vmatprep.subr.mxu1 %v14169_v10 }
0x1680   :  { %13516 = vmatprep.subr.mxu0 %v14169_v10  ;;  %v9557_v29 = vpop.permute.xlu1 %9556 }
0x1681   :  { %13514 = vmatmul.mubr.msk.f32.vlgmr.msra.gmra.mrb[98].mxu1 %vm173_vm2, %v9001_v44  ;;  %v9313_v25 = vpop.permute.xlu0 %9312 }
0x1682   :  { %13509 = vmatmul.mubr.msk.f32.vlgmr.msra.gmra.mrb[116].mxu0 %vm173_vm2, %v15862_v50  ;;  %13522 = vmatpush3.xpose.msk.msra.mxu1 %vm173_vm2, %v9159_v19 }
0x1683   :  { %13517 = vmatpush3.xpose.msk.msra.mxu0 %vm173_vm2, %v15864_v60  ;;  %13518 = vmatprep.mubr.msk.f32.mxu0 %vm14170_vm1, %v14169_v10 }
0x1684   :  { %13523 = vmatprep.mubr.msk.f32.mxu1 %vm14170_vm1, %v14169_v10  ;;  %13526 = vmatprep.subr.mxu0 %v14169_v10 }
0x1685   :  { %13524 = vmatmul.mubr.msk.f32.vlgmr.msra.gmra.mrb[100].mxu1 %vm173_vm2, %v9157_v31  ;;  %13531 = vmatprep.subr.mxu1 %v14169_v10  ;;  %v9634_v32 = vpop.permute.xlu0 %9633 }
0x1686   :  { %13519 = vmatmul.mubr.msk.f32.vlgmr.msra.gmra.mrb[118].mxu0 %vm173_vm2, %v9079_v27  ;;  %13532 = vmatpush3.xpose.msk.msra.mxu1 %vm173_vm2, %v9315_v23 }
0x1687   :  { %13527 = vmatpush3.xpose.msk.msra.mxu0 %vm173_vm2, %v9237_v41  ;;  %13528 = vmatprep.mubr.msk.f32.mxu0 %vm14170_vm1, %v14169_v10 }
0x1688   :  { %13533 = vmatprep.mubr.msk.f32.mxu1 %vm14170_vm1, %v14169_v10  ;;  %13536 = vmatprep.subr.mxu0 %v14169_v10 }
0x1689   :  { %13534 = vmatmul.mubr.msk.f32.vlgmr.msra.gmra.mrb[102].mxu1 %vm173_vm2, %v9313_v25  ;;  %13541 = vmatprep.subr.mxu1 %v14169_v10  ;;  %v15995_v25 = vpop.permute.xlu1 %9710 }
0x168a   :  { %13529 = vmatmul.mubr.msk.f32.vlgmr.msra.gmra.mrb[120].mxu0 %vm173_vm2, %v9235_v37  ;;  %13542 = vmatpush3.msk.msra.mxu1 %vm875_vm3, %v9557_v29 }
0x168b   :  { %13537 = vmatpush3.xpose.msk.msra.mxu0 %vm173_vm2, %v9393_v16  ;;  %13538 = vmatprep.mubr.msk.f32.mxu0 %vm14170_vm1, %v14169_v10 }
0x168c   :  { %13546 = vmatprep.subr.mxu0 %v14169_v10  ;;  %13543 = vmatprep.mubr.msk.f32.mxu1 %vm14170_vm1, %v14169_v10 }
0x168d   :  { %13551 = vmatprep.subr.mxu1 %v14169_v10  ;;  %v15997_v29 = vpop.permute.xlu1 %9787 }
0x168e   :  { %13539 = vmatmul.mubr.msk.f32.vlgmr.msra.gmra.mrb[122].mxu0 %vm173_vm2, %v9391_v62 }
0x168f   :  { %13547 = vmatpush3.msk.msra.mxu0 %vm875_vm3, %v9634_v32  ;;  %13548 = vmatprep.mubr.msk.f32.mxu0 %vm14170_vm1, %v14169_v10  ;;  %v15999_v32 = vpop.permute.xlu0 %9864 }
0x1690   :  { %13556 = vmatprep.subr.mxu0 %v14169_v10 }
0x1736   :  { %v15961_v4 = vpop.f32.mrb[108].mxu0 }
0x1737   :  { %v13470_v17 = vpop.f32.mrb[109].mxu0 }
0x1738   :  { %v16001_v17 = vpop.permute.xlu1 %9941 }
0x173d   :  { %v15963_v28 = vpop.f32.mrb[88].mxu1 }
0x173e   :  { %v13465_v63 = vpop.f32.mrb[89].mxu1 }
0x173f   :  { %v16003_v63 = vpop.permute.xlu0 %10018 }
0x1741   :  { %v15965_v15 = vpop.f32.mrb[90].mxu1 }
0x1742   :  { %v13475_v50 = vpop.f32.mrb[91].mxu1 }
0x1743   :  { %v16005_v50 = vpop.permute.xlu1 %10095 }
0x1745   :  { %v15967_v61 = vpop.f32.mrb[92].mxu1 }
0x1746   :  { %v15969_v60 = vpop.f32.mrb[110].mxu0  ;;  %v13485_v36 = vpop.f32.mrb[93].mxu1 }
0x1747   :  { %v13480_v13 = vpop.f32.mrb[111].mxu0  ;;  %v16007_v36 = vpop.permute.xlu0 %10174 }
0x1748   :  { %v16009_v13 = vpop.permute.xlu1 %10252 }
0x1749   :  { %v15971_v18 = vpop.f32.mrb[94].mxu1 }
0x174a   :  { %v15973_v20 = vpop.f32.mrb[112].mxu0  ;;  %v13495_v56 = vpop.f32.mrb[95].mxu1 }
0x174b   :  { %v13490_v38 = vpop.f32.mrb[113].mxu0  ;;  %v16011_v56 = vpop.permute.xlu0 %10172 }
0x174e   :  { %v15975_v2 = vpop.f32.mrb[114].mxu0 }
0x174f   :  { %v13500_v57 = vpop.f32.mrb[115].mxu0 }
0x1750   :  { %v8918_v11 = vpop.f32.mrb[96].mxu1  ;;  %v16013_v57 = vpop.permute.xlu1 %10250 }
0x1751   :  { %v13505_v1 = vpop.f32.mrb[97].mxu1  ;;  %v9468_v39 = vsel %vm780_vm4, %v8918_v11, -inf }
0x1752   :  { %9469 = vmax.xlane.f32.xlu0 %v9468_v39 }
0x1754   :  { %v9074_v27 = vpop.f32.mrb[98].mxu1 }
0x1755   :  { %v8996_v26 = vpop.f32.mrb[116].mxu0  ;;  %v13515_v5 = vpop.f32.mrb[99].mxu1  ;;  %v9474_v58 = vsel %vm780_vm4, %v9074_v27, -inf }
0x1756   :  { %v13510_v42 = vpop.f32.mrb[117].mxu0  ;;  %v9471_v30 = vsel %vm780_vm4, %v8996_v26, -inf  ;;  %9475 = vmax.xlane.f32.xlu0 %v9474_v58 }
0x1757   :  { %9472 = vmax.xlane.f32.xlu1 %v9471_v30 }
0x1758   :  { %v9230_v41 = vpop.f32.mrb[100].mxu1 }
0x1759   :  { %v9152_v44 = vpop.f32.mrb[118].mxu0  ;;  %v13525_v33 = vpop.f32.mrb[101].mxu1  ;;  %v9480_v0 = vsel %vm780_vm4, %v9230_v41, -inf }
0x175a   :  { %v13520_v3 = vpop.f32.mrb[119].mxu0  ;;  %v9477_v21 = vsel %vm780_vm4, %v9152_v44, -inf }
0x175b   :  { %9478 = vmax.xlane.f32.xlu0 %v9477_v21  ;;  %9481 = vmax.xlane.f32.xlu1 %v9480_v0 }
0x175c   :  { %v15982_v52 = vpop.f32.mrb[102].mxu1 }
0x175d   :  { %v9308_v19 = vpop.f32.mrb[120].mxu0  ;;  %v13535_v37 = vpop.f32.mrb[103].mxu1  ;;  %v9486_v12 = vsel %vm780_vm4, %v15982_v52, -inf }
0x175e   :  { %v13530_v53 = vpop.f32.mrb[121].mxu0  ;;  %v9483_v31 = vsel %vm780_vm4, %v9308_v19, -inf }
0x175f   :  { %9484 = vmax.xlane.f32.xlu0 %v9483_v31  ;;  %9487 = vmax.xlane.f32.xlu1 %v9486_v12 }
0x1761   :  { %v15987_v16 = vpop.f32.mrb[122].mxu0 }
0x1762   :  { %v13540_v23 = vpop.f32.mrb[123].mxu0  ;;  %v9489_v62 = vsel %vm780_vm4, %v15987_v16, -inf }
0x1763   :  { %9490 = vmax.xlane.f32.xlu0 %v9489_v62 }
0x1770   :  { %10408 = vrot.lane.b32.xlu1 %v15435_v48, %s16549_s22 }
0x1779   :  { %10330 = vrot.lane.b32.xlu0 %v15427_v22, %s16549_s22 }
0x17df   :  { %v9470_v38 = vpop.xlane.xlu0 %9469 }
0x17e0   :  { %v9492_v1 = vsub.f32 %v8918_v11, %v9470_v38 }
0x17e2   :  { %v9500_v39 = vmul.f32 1.442695, %v9492_v1 }
0x17e3   :  { %v9476_v5 = vpop.xlane.xlu0 %9475 }
0x17e4   :  { %14085 = vpow2.f32 %v9500_v39  ;;  %v9473_v58 = vpop.xlane.xlu1 %9472  ;;  %v9494_v42 = vsub.f32 %v9074_v27, %v9476_v5 }
0x17e5   :  { %v9493_v30 = vsub.f32 %v8996_v26, %v9473_v58 }
0x17e6   :  { %v9504_v33 = vmul.f32 1.442695, %v9494_v42 }
0x17e7   :  { %v9502_v0 = vmul.f32 1.442695, %v9493_v30 }
0x17e8   :  { %14087 = vpow2.f32 %v9504_v33  ;;  %v9482_v3 = vpop.xlane.xlu1 %9481  ;;  %v9479_v21 = vpop.xlane.xlu0 %9478 }
0x17e9   :  { %14089 = vpow2.f32 %v9502_v0  ;;  %v9496_v37 = vsub.f32 %v9230_v41, %v9482_v3  ;;  %v9495_v12 = vsub.f32 %v9152_v44, %v9479_v21 }
0x17eb   :  { %v9508_v53 = vmul.f32 1.442695, %v9496_v37  ;;  %v9506_v31 = vmul.f32 1.442695, %v9495_v12 }
0x17ec   :  { %v9485_v23 = vpop.xlane.xlu0 %9484  ;;  %v9488_v33 = vpop.xlane.xlu1 %9487 }
0x17ed   :  { %14091 = vpow2.f32 %v9508_v53  ;;  %v9497_v62 = vsub.f32 %v9308_v19, %v9485_v23  ;;  %v9498_v0 = vsub.f32 %v15982_v52, %v9488_v33 }
0x17ee   :  { %v14086_v11 = vpop.eup %14085  ;;  %14093 = vpow2.f32 %v9506_v31 }
0x17ef   :  { %v9510_v38 = vmul.f32 1.442695, %v9497_v62  ;;  %v9516_v1 = vsel %vm780_vm4, %v14086_v11, 0.0  ;;  %v9512_v21 = vmul.f32 1.442695, %v9498_v0 }
0x17f0   :  { %9517 = vadd.xlane.f32.xlu1 %v9516_v1  ;;  %v9491_v3 = vpop.xlane.xlu0 %9490  ;;  %v16060_v52 = vpop.permute.xlu1 %10408 }
0x17f1   :  { %14095 = vpow2.f32 %v9510_v38  ;;  %v9499_v37 = vsub.f32 %v15987_v16, %v9491_v3 }
0x17f2   :  { %v14088_v27 = vpop.eup %14087  ;;  %14097 = vpow2.f32 %v9512_v21 }
0x17f3   :  { %v14090_v26 = vpop.eup %14089  ;;  %v9522_v39 = vsel %vm780_vm4, %v14088_v27, 0.0  ;;  %v9514_v12 = vmul.f32 1.442695, %v9499_v37 }
0x17f4   :  { %v9519_v5 = vsel %vm780_vm4, %v14090_v26, 0.0  ;;  %9523 = vadd.xlane.f32.xlu1 %v9522_v39  ;;  %v16062_v38 = vpop.permute.xlu0 %10330 }
0x17f5   :  { %9520 = vadd.xlane.f32.xlu0 %v9519_v5  ;;  %14099 = vpow2.f32 %v9514_v12 }
0x17f7   :  { %v16018_v41 = vpop.eup %14091 }
0x17f8   :  { %v16020_v44 = vpop.eup %14093  ;;  %v9528_v19 = vsel %vm780_vm4, %v16018_v41, 0.0 }
0x17f9   :  { %9529 = vadd.xlane.f32.xlu1 %v9528_v19  ;;  %v9525_v58 = vsel %vm780_vm4, %v16020_v44, 0.0 }
0x17fa   :  { %9526 = vadd.xlane.f32.xlu0 %v9525_v58 }
0x17fb   :  { %v16026_v42 = vpop.eup %14095 }
0x17fc   :  { %v9531_v30 = vsel %vm780_vm4, %v16026_v42, 0.0  ;;  %v16036_v53 = vpop.eup %14097 }
0x17fd   :  { %v9534_v31 = vsel %vm780_vm4, %v16036_v53, 0.0 }
0x17fe   :  { %9532 = vadd.xlane.f32.xlu0 %v9531_v30 }
0x17ff   :  { %v16040_v23 = vpop.eup %14099 }
0x1800   :  { %v9537_v62 = vsel %vm780_vm4, %v16040_v23, 0.0 }
0x180a   :  { %10406 = vrot.lane.b32.xlu1 %v15435_v48, %s16550_s23 }
0x1814   :  { %10328 = vrot.lane.b32.xlu0 %v15427_v22, %s16550_s23 }
0x182e   :  { %9535 = vadd.xlane.f32.xlu1 %v9534_v31 }
0x1833   :  { %9538 = vadd.xlane.f32.xlu0 %v9537_v62 }
0x183f   :  { %10564 = vrot.lane.b32.xlu1 %v15447_v59, %s16549_s22 }
0x1843   :  { %10562 = vrot.lane.b32.xlu1 %v15447_v59, %s16550_s23 }
0x1847   :  { %10720 = vrot.lane.b32.xlu1 %v15455_v47, %s16549_s22 }
0x1849   :  { %10486 = vrot.lane.b32.xlu0 %v15441_v14, %s16549_s22 }
0x184b   :  { %10718 = vrot.lane.b32.xlu1 %v15455_v47, %s16550_s23 }
0x184d   :  { %10484 = vrot.lane.b32.xlu0 %v15441_v14, %s16550_s23 }
0x1851   :  { %10642 = vrot.lane.b32.xlu0 %v15439_v45, %s16549_s22 }
0x1855   :  { %10640 = vrot.lane.b32.xlu0 %v15439_v45, %s16550_s23 }
0x187d   :  { %v9518_v16 = vpop.xlane.xlu1 %9517 }
0x187e   :  { %14101 = vrcp.f32 %v9518_v16 }
0x1881   :  { %v9524_v1 = vpop.xlane.xlu1 %9523 }
0x1882   :  { %14103 = vrcp.f32 %v9524_v1  ;;  %v9521_v39 = vpop.xlane.xlu0 %9520 }
0x1883   :  { %14105 = vrcp.f32 %v9521_v39 }
0x1886   :  { %v9530_v5 = vpop.xlane.xlu1 %9529 }
0x1887   :  { %14107 = vrcp.f32 %v9530_v5  ;;  %v9527_v19 = vpop.xlane.xlu0 %9526 }
0x1888   :  { %v14102_v58 = vpop.eup %14101  ;;  %14109 = vrcp.f32 %v9527_v19 }
0x1889   :  { %v9548_v30 = vmul.f32 %v14102_v58, %v14086_v11 }
0x188b   :  { %v9533_v33 = vpop.xlane.xlu0 %9532  ;;  %13544 = vmatmul.mubr.msk.f32.vlgmr.msra.gmra.mrb[104].mxu1 %vm871_vm5, %v9548_v30 }
0x188c   :  { %v14104_v0 = vpop.eup %14103  ;;  %14111 = vrcp.f32 %v9533_v33  ;;  %13552 = vmatpush3.msk.msra.mxu1 %vm875_vm3, %v15995_v25  ;;  %13553 = vmatprep.mubr.msk.f32.mxu1 %vm14170_vm1, %v14169_v10 }
0x188d   :  { %v14106_v3 = vpop.eup %14105  ;;  %v9550_v21 = vmul.f32 %v14104_v0, %v14088_v27  ;;  %13561 = vmatprep.subr.mxu1 %v14169_v10 }
0x188e   :  { %v9549_v37 = vmul.f32 %v14106_v3, %v14090_v26 }
0x188f   :  { %13554 = vmatmul.mubr.msk.f32.vlgmr.msra.gmra.mrb[106].mxu1 %vm871_vm5, %v9550_v21 }
0x1890   :  { %13549 = vmatmul.mubr.msk.f32.vlgmr.msra.gmra.mrb[124].mxu0 %vm871_vm5, %v9549_v37  ;;  %13562 = vmatpush3.msk.msra.mxu1 %vm875_vm3, %v15999_v32 }
0x1891   :  { %v14108_v11 = vpop.eup %14107  ;;  %13557 = vmatpush3.msk.msra.mxu0 %vm875_vm3, %v15997_v29  ;;  %13558 = vmatprep.mubr.msk.f32.mxu0 %vm14170_vm1, %v14169_v10 }
0x1892   :  { %v14110_v25 = vpop.eup %14109  ;;  %v9552_v27 = vmul.f32 %v14108_v11, %v16018_v41  ;;  %13563 = vmatprep.mubr.msk.f32.mxu1 %vm14170_vm1, %v14169_v10  ;;  %13566 = vmatprep.subr.mxu0 %v14169_v10  ;;  %v10329_v41 = vpop.permute.xlu0 %10328 }
0x1893   :  { %v9551_v26 = vmul.f32 %v14110_v25, %v16020_v44  ;;  %13571 = vmatprep.subr.mxu1 %v14169_v10 }
0x1894   :  { %13564 = vmatmul.mubr.msk.f32.vlgmr.msra.gmra.mrb[108].mxu1 %vm871_vm5, %v9552_v27 }
0x1895   :  { %13559 = vmatmul.mubr.msk.f32.vlgmr.msra.gmra.mrb[126].mxu0 %vm871_vm5, %v9551_v26  ;;  %13572 = vmatpush3.msk.msra.mxu1 %vm875_vm3, %v16003_v63 }
0x1896   :  { %v14112_v29 = vpop.eup %14111  ;;  %13567 = vmatpush3.msk.msra.mxu0 %vm875_vm3, %v16001_v17  ;;  %13568 = vmatprep.mubr.msk.f32.mxu0 %vm14170_vm1, %v14169_v10  ;;  %v10407_v17 = vpop.permute.xlu1 %10406 }
0x1897   :  { %v9553_v32 = vmul.f32 %v14112_v29, %v16026_v42  ;;  %13576 = vmatprep.subr.mxu0 %v14169_v10  ;;  %13573 = vmatprep.mubr.msk.f32.mxu1 %vm14170_vm1, %v14169_v10 }
0x1898   :  { %13581 = vmatprep.subr.mxu1 %v14169_v10 }
0x1899   :  { %13569 = vmatmul.mubr.msk.f32.vlgmr.msra.gmra.mrb[128].mxu0 %vm871_vm5, %v9553_v32 }
0x189a   :  { %13577 = vmatpush3.msk.msra.mxu0 %vm875_vm3, %v16005_v50  ;;  %13578 = vmatprep.mubr.msk.f32.mxu0 %vm14170_vm1, %v14169_v10 }
0x189b   :  { %13586 = vmatprep.subr.mxu0 %v14169_v10 }
0x18bb   :  { %v9536_v63 = vpop.xlane.xlu1 %9535 }
0x18bc   :  { %14113 = vrcp.f32 %v9536_v63 }
0x18bf   :  { %v10565_v62 = vpop.permute.xlu1 %10564 }
0x18c0   :  { %v9539_v44 = vpop.xlane.xlu0 %9538 }
0x18c1   :  { %14115 = vrcp.f32 %v9539_v44 }
0x18c4   :  { %v10487_v12 = vpop.permute.xlu0 %10486 }
0x18c6   :  { %v14114_v42 = vpop.eup %14113 }
0x18c7   :  { %v9554_v31 = vmul.f32 %v14114_v42, %v16036_v53 }
0x18c8   :  { %v10485_v1 = vpop.permute.xlu0 %10484 }
0x18c9   :  { %13574 = vmatmul.mubr.msk.f32.vlgmr.msra.gmra.mrb[110].mxu1 %vm871_vm5, %v9554_v31 }
0x18ca   :  { %13582 = vmatpush3.xpose.msk.msra.mxu1 %vm173_vm2, %v16007_v36  ;;  %13583 = vmatprep.mubr.msk.f32.mxu1 %vm14170_vm1, %v14169_v10  ;;  %v10563_v36 = vpop.permute.xlu1 %10562 }
0x18cb   :  { %v14116_v50 = vpop.eup %14115  ;;  %13591 = vmatprep.subr.mxu1 %v14169_v10 }
0x18cc   :  { %v9555_v16 = vmul.f32 %v14116_v50, %v16040_v23 }
0x18cd   :  { %13584 = vmatmul.mubr.msk.f32.vlgmr.msra.gmra.mrb[112].mxu1 %vm173_vm2, %v16011_v56  ;;  %v10643_v56 = vpop.permute.xlu0 %10642 }
0x18ce   :  { %13579 = vmatmul.mubr.msk.f32.vlgmr.msra.gmra.mrb[130].mxu0 %vm871_vm5, %v9555_v16  ;;  %13592 = vmatpush3.xpose.msk.msra.mxu1 %vm173_vm2, %v16062_v38 }
0x18cf   :  { %13587 = vmatpush3.xpose.msk.msra.mxu0 %vm173_vm2, %v16009_v13  ;;  %13588 = vmatprep.mubr.msk.f32.mxu0 %vm14170_vm1, %v14169_v10  ;;  %v10721_v13 = vpop.permute.xlu1 %10720 }
0x18d0   :  { %13593 = vmatprep.mubr.msk.f32.mxu1 %vm14170_vm1, %v14169_v10  ;;  %13596 = vmatprep.subr.mxu0 %v14169_v10 }
0x18d1   :  { %13601 = vmatprep.subr.mxu1 %v14169_v10  ;;  %13594 = vmatmul.mubr.msk.f32.vlgmr.msra.gmra.mrb[114].mxu1 %vm173_vm2, %v10329_v41 }
0x18d2   :  { %13589 = vmatmul.mubr.msk.f32.vlgmr.msra.gmra.mrb[132].mxu0 %vm173_vm2, %v16013_v57  ;;  %13602 = vmatpush3.xpose.msk.msra.mxu1 %vm173_vm2, %v10487_v12  ;;  %v10641_v57 = vpop.permute.xlu0 %10640 }
0x18d3   :  { %13597 = vmatpush3.xpose.msk.msra.mxu0 %vm173_vm2, %v16060_v52  ;;  %13598 = vmatprep.mubr.msk.f32.mxu0 %vm14170_vm1, %v14169_v10  ;;  %v10719_v53 = vpop.permute.xlu1 %10718 }
0x18d4   :  { %13603 = vmatprep.mubr.msk.f32.mxu1 %vm14170_vm1, %v14169_v10  ;;  %13606 = vmatprep.subr.mxu0 %v14169_v10 }
0x18d5   :  { %13611 = vmatprep.subr.mxu1 %v14169_v10  ;;  %13604 = vmatmul.mubr.msk.f32.vlgmr.msra.gmra.mrb[116].mxu1 %vm173_vm2, %v10485_v1 }
0x18d6   :  { %13599 = vmatmul.mubr.msk.f32.vlgmr.msra.gmra.mrb[134].mxu0 %vm173_vm2, %v10407_v17  ;;  %13612 = vmatpush3.xpose.msk.msra.mxu1 %vm173_vm2, %v10643_v56 }
0x18d7   :  { %13607 = vmatpush3.xpose.msk.msra.mxu0 %vm173_vm2, %v10565_v62  ;;  %13608 = vmatprep.mubr.msk.f32.mxu0 %vm14170_vm1, %v14169_v10 }
0x18d8   :  { %13613 = vmatprep.mubr.msk.f32.mxu1 %vm14170_vm1, %v14169_v10  ;;  %13616 = vmatprep.subr.mxu0 %v14169_v10 }
0x18d9   :  { %13614 = vmatmul.mubr.msk.f32.vlgmr.msra.gmra.mrb[118].mxu1 %vm173_vm2, %v10641_v57  ;;  %13621 = vmatprep.subr.mxu1 %v14169_v10 }
0x18da   :  { %13609 = vmatmul.mubr.msk.f32.vlgmr.msra.gmra.mrb[136].mxu0 %vm173_vm2, %v10563_v36  ;;  %13623 = vmatprep.mubr.msk.f32.mxu1 %vm14170_vm1, %v14169_v10 }
0x18db   :  { %13617 = vmatpush3.xpose.msk.msra.mxu0 %vm173_vm2, %v10721_v13  ;;  %13618 = vmatprep.mubr.msk.f32.mxu0 %vm14170_vm1, %v14169_v10 }
0x18dc   :  { %13626 = vmatprep.subr.mxu0 %v14169_v10 }
0x18de   :  { %13619 = vmatmul.mubr.msk.f32.vlgmr.msra.gmra.mrb[138].mxu0 %vm173_vm2, %v10719_v53 }
0x18df   :  { %13628 = vmatprep.mubr.msk.f32.mxu0 %vm14170_vm1, %v14169_v10 }
0x195e   :  { %v16157_v23 = vpop.f32.mrb[104].mxu1 }
0x195f   :  { %v13545_v52 = vpop.f32.mrb[105].mxu1 }
0x1962   :  { %v16159_v38 = vpop.f32.mrb[106].mxu1 }
0x1963   :  { %v16161_v39 = vpop.f32.mrb[124].mxu0  ;;  %v13555_v5 = vpop.f32.mrb[107].mxu1 }
0x1964   :  { %v13550_v19 = vpop.f32.mrb[125].mxu0 }
0x1967   :  { %v16163_v58 = vpop.f32.mrb[108].mxu1 }
0x1968   :  { %v16165_v30 = vpop.f32.mrb[126].mxu0  ;;  %v13565_v33 = vpop.f32.mrb[109].mxu1 }
0x1969   :  { %v13560_v0 = vpop.f32.mrb[127].mxu0 }
0x196c   :  { %v16167_v3 = vpop.f32.mrb[128].mxu0 }
0x196d   :  { %v13570_v21 = vpop.f32.mrb[129].mxu0 }
0x199c   :  { %v16169_v37 = vpop.f32.mrb[110].mxu1 }
0x199d   :  { %v13575_v11 = vpop.f32.mrb[111].mxu1 }
0x19a0   :  { %v10246_v25 = vpop.f32.mrb[112].mxu1 }
0x19a1   :  { %v16171_v27 = vpop.f32.mrb[130].mxu0  ;;  %v13585_v26 = vpop.f32.mrb[113].mxu1  ;;  %v10796_v29 = vsel %vm780_vm4, %v10246_v25, -inf }
0x19a2   :  { %v13580_v32 = vpop.f32.mrb[131].mxu0  ;;  %10797 = vmax.xlane.f32.xlu0 %v10796_v29 }
0x19a4   :  { %v10402_v17 = vpop.f32.mrb[114].mxu1 }
0x19a5   :  { %v10324_v63 = vpop.f32.mrb[132].mxu0  ;;  %v13595_v41 = vpop.f32.mrb[115].mxu1  ;;  %v10802_v44 = vsel %vm780_vm4, %v10402_v17, -inf }
0x19a6   :  { %v13590_v42 = vpop.f32.mrb[133].mxu0  ;;  %10803 = vmax.xlane.f32.xlu0 %v10802_v44  ;;  %v10799_v12 = vsel %vm780_vm4, %v10324_v63, -inf }
0x19a7   :  { %10800 = vmax.xlane.f32.xlu1 %v10799_v12 }
0x19a8   :  { %v10558_v31 = vpop.f32.mrb[116].mxu1 }
0x19a9   :  { %v10480_v50 = vpop.f32.mrb[134].mxu0  ;;  %v13605_v62 = vpop.f32.mrb[117].mxu1  ;;  %v10808_v16 = vsel %vm780_vm4, %v10558_v31, -inf }
0x19aa   :  { %v13600_v1 = vpop.f32.mrb[135].mxu0  ;;  %v10805_v36 = vsel %vm780_vm4, %v10480_v50, -inf }
0x19ab   :  { %10806 = vmax.xlane.f32.xlu0 %v10805_v36  ;;  %10809 = vmax.xlane.f32.xlu1 %v10808_v16 }
0x19ac   :  { %v10714_v56 = vpop.f32.mrb[118].mxu1 }
0x19ad   :  { %v10636_v13 = vpop.f32.mrb[136].mxu0  ;;  %v13615_v57 = vpop.f32.mrb[119].mxu1  ;;  %v10814_v53 = vsel %vm780_vm4, %v10714_v56, -inf }
0x19ae   :  { %v13610_v52 = vpop.f32.mrb[137].mxu0  ;;  %v10811_v5 = vsel %vm780_vm4, %v10636_v13, -inf }
0x19af   :  { %10812 = vmax.xlane.f32.xlu0 %v10811_v5  ;;  %10815 = vmax.xlane.f32.xlu1 %v10814_v53 }
0x19b1   :  { %v10792_v19 = vpop.f32.mrb[138].mxu0 }
0x19b2   :  { %v13620_v33 = vpop.f32.mrb[139].mxu0  ;;  %v10817_v0 = vsel %vm780_vm4, %v10792_v19, -inf }
0x19b3   :  { %10818 = vmax.xlane.f32.xlu0 %v10817_v0 }
0x19c0   :  { %10884 = vrot.lane.b32.xlu1 %v15419_v43, %s16551_s24 }
0x19c4   :  { %11038 = vrot.lane.b32.xlu1 %v15427_v22, %s16551_s24 }
0x19c8   :  { %11115 = vrot.lane.b32.xlu1 %v15435_v48, %s16551_s24 }
0x19c9   :  { %10961 = vrot.lane.b32.xlu0 %v15425_v55, %s16551_s24 }
0x19cc   :  { %11269 = vrot.lane.b32.xlu1 %v15447_v59, %s16551_s24 }
0x19cd   :  { %11192 = vrot.lane.b32.xlu0 %v15441_v14, %s16551_s24 }
0x1a2f   :  { %v10798_v21 = vpop.xlane.xlu0 %10797 }
0x1a30   :  { %v10820_v11 = vsub.f32 %v10246_v25, %v10798_v21 }
0x1a32   :  { %v10828_v26 = vmul.f32 1.442695, %v10820_v11 }
0x1a33   :  { %v10804_v29 = vpop.xlane.xlu0 %10803 }
0x1a34   :  { %14117 = vpow2.f32 %v10828_v26  ;;  %v10801_v43 = vpop.xlane.xlu1 %10800  ;;  %v10822_v32 = vsub.f32 %v10402_v17, %v10804_v29 }
0x1a35   :  { %v10821_v22 = vsub.f32 %v10324_v63, %v10801_v43 }
0x1a36   :  { %v10832_v41 = vmul.f32 1.442695, %v10822_v32 }
0x1a37   :  { %v10830_v44 = vmul.f32 1.442695, %v10821_v22 }
0x1a38   :  { %14119 = vpow2.f32 %v10832_v41  ;;  %v10810_v48 = vpop.xlane.xlu1 %10809  ;;  %v10807_v42 = vpop.xlane.xlu0 %10806 }
0x1a39   :  { %14121 = vpow2.f32 %v10830_v44  ;;  %v10824_v55 = vsub.f32 %v10558_v31, %v10810_v48  ;;  %v10823_v12 = vsub.f32 %v10480_v50, %v10807_v42 }
0x1a3b   :  { %v10836_v59 = vmul.f32 1.442695, %v10824_v55  ;;  %v10834_v62 = vmul.f32 1.442695, %v10823_v12 }
0x1a3c   :  { %v10816_v16 = vpop.xlane.xlu1 %10815  ;;  %v10813_v14 = vpop.xlane.xlu0 %10812 }
0x1a3d   :  { %14123 = vpow2.f32 %v10836_v59  ;;  %v10826_v25 = vsub.f32 %v10714_v56, %v10816_v16  ;;  %v10825_v1 = vsub.f32 %v10636_v13, %v10813_v14 }
0x1a3e   :  { %v16193_v36 = vpop.eup %14117  ;;  %14125 = vpow2.f32 %v10834_v62 }
0x1a3f   :  { %v10840_v17 = vmul.f32 1.442695, %v10826_v25  ;;  %v10838_v63 = vmul.f32 1.442695, %v10825_v1  ;;  %v10844_v57 = vsel %vm780_vm4, %v16193_v36, 0.0 }
0x1a40   :  { %v10885_v53 = vpop.permute.xlu1 %10884  ;;  %v10819_v52 = vpop.xlane.xlu0 %10818  ;;  %10845 = vadd.xlane.f32.xlu1 %v10844_v57  ;;  %v12525_v57 = vld [vmem:[%s16518_s3 + $0x28] sm:$0xff] }
0x1a41   :  { %14127 = vpow2.f32 %v10840_v17  ;;  %v10827_v31 = vsub.f32 %v10792_v19, %v10819_v52  ;;  %13622 = vmatpush3.msk.msra.mxu1 %vm875_vm3, %v10885_v53  ;;  %v12526_v52 = vld [vmem:[%s16518_s3 + $0x30] sm:$0xff] }
0x1a42   :  { %v16198_v50 = vpop.eup %14119  ;;  %14129 = vpow2.f32 %v10838_v63  ;;  %13631 = vmatprep.subr.mxu1 %v14169_v10  ;;  %v12524_v63 = vld [vmem:[%s16518_s3 + $0x20] sm:$0xff] }
0x1a43   :  { %v16201_v56 = vpop.eup %14121  ;;  %v10842_v13 = vmul.f32 1.442695, %v10827_v31  ;;  %v10850_v5 = vsel %vm780_vm4, %v16198_v50, 0.0  ;;  %v13805_v53 = vpack.c.bf16 %v12525_v57, %v12524_v63 }
0x1a44   :  { %v10962_v33 = vpop.permute.xlu0 %10961  ;;  %v10847_v0 = vsel %vm780_vm4, %v16201_v56, 0.0  ;;  %10851 = vadd.xlane.f32.xlu1 %v10850_v5 }
0x1a45   :  { %14131 = vpow2.f32 %v10842_v13  ;;  %10848 = vadd.xlane.f32.xlu0 %v10847_v0  ;;  %13627 = vmatpush3.msk.msra.mxu0 %vm875_vm3, %v10962_v33 }
0x1a46   :  { %13636 = vmatprep.subr.mxu0 %v14169_v10 }
0x1a47   :  { %v16209_v19 = vpop.eup %14123 }
0x1a48   :  { %v16211_v21 = vpop.eup %14125  ;;  %v10856_v11 = vsel %vm780_vm4, %v16209_v19, 0.0 }
0x1a49   :  { %10857 = vadd.xlane.f32.xlu1 %v10856_v11  ;;  %v10853_v26 = vsel %vm780_vm4, %v16211_v21, 0.0 }
0x1a4a   :  { %10854 = vadd.xlane.f32.xlu0 %v10853_v26 }
0x1a4b   :  { %v16217_v29 = vpop.eup %14127 }
0x1a4c   :  { %v16219_v43 = vpop.eup %14129  ;;  %v10862_v32 = vsel %vm780_vm4, %v16217_v29, 0.0 }
0x1a4d   :  { %10863 = vadd.xlane.f32.xlu1 %v10862_v32  ;;  %v10859_v22 = vsel %vm780_vm4, %v16219_v43, 0.0 }
0x1a4e   :  { %10860 = vadd.xlane.f32.xlu0 %v10859_v22 }
0x1a4f   :  { %v16225_v41 = vpop.eup %14131 }
0x1a50   :  { %v10865_v44 = vsel %vm780_vm4, %v16225_v41, 0.0 }
0x1a52   :  { %10866 = vadd.xlane.f32.xlu0 %v10865_v44 }
0x1a5e   :  { %11423 = vrot.lane.b32.xlu1 %v15455_v47, %s16551_s24 }
0x1a62   :  { %11510 = vrot.lane.b32.xlu1 %v15961_v4, %s16552_s25 }
0x1a66   :  { %11514 = vrot.lane.b32.xlu1 %v15969_v60, %s16552_s25 }
0x1a68   :  { %11346 = vrot.lane.b32.xlu0 %v15439_v45, %s16551_s24  ;;  %v11039_v45 = vpop.permute.xlu1 %11038 }
0x1a6a   :  { %11542 = vrot.lane.b32.xlu1 %v16161_v39, %s16553_s26 }
0x1a6c   :  { %11508 = vrot.lane.b32.xlu0 %v15963_v28, %s16552_s25  ;;  %v11116_v47 = vpop.permute.xlu1 %11115 }
0x1a6e   :  { %11546 = vrot.lane.b32.xlu1 %v16165_v30, %s16553_s26 }
0x1a70   :  { %11512 = vrot.lane.b32.xlu0 %v15965_v15, %s16552_s25  ;;  %v11270_v4 = vpop.permute.xlu1 %11269  ;;  %v11193_v15 = vpop.permute.xlu0 %11192 }
0x1a72   :  { %11518 = vrot.lane.b32.xlu1 %v15973_v20, %s16552_s25 }
0x1a74   :  { %11540 = vrot.lane.b32.xlu0 %v16157_v23, %s16553_s26 }
0x1a76   :  { %11522 = vrot.lane.b32.xlu1 %v15975_v2, %s16552_s25 }
0x1a78   :  { %11544 = vrot.lane.b32.xlu0 %v16159_v38, %s16553_s26 }
0x1a7a   :  { %11550 = vrot.lane.b32.xlu1 %v16167_v3, %s16553_s26 }
0x1a7c   :  { %11516 = vrot.lane.b32.xlu0 %v15967_v61, %s16552_s25 }
0x1a7e   :  { %11554 = vrot.lane.b32.xlu1 %v16171_v27, %s16553_s26 }
0x1a80   :  { %11520 = vrot.lane.b32.xlu0 %v15971_v18, %s16552_s25 }
0x1a84   :  { %11548 = vrot.lane.b32.xlu0 %v16163_v58, %s16553_s26 }
0x1a88   :  { %11552 = vrot.lane.b32.xlu0 %v16169_v37, %s16553_s26 }
0x1acd   :  { %v10846_v28 = vpop.xlane.xlu1 %10845 }
0x1ace   :  { %14133 = vrcp.f32 %v10846_v28 }
0x1ad1   :  { %v10852_v60 = vpop.xlane.xlu1 %10851 }
0x1ad2   :  { %14135 = vrcp.f32 %v10852_v60  ;;  %v10849_v61 = vpop.xlane.xlu0 %10848 }
0x1ad3   :  { %14137 = vrcp.f32 %v10849_v61 }
0x1ad6   :  { %v10858_v20 = vpop.xlane.xlu1 %10857 }
0x1ad7   :  { %14139 = vrcp.f32 %v10858_v20  ;;  %v10855_v2 = vpop.xlane.xlu0 %10854 }
0x1ad8   :  { %v14134_v18 = vpop.eup %14133  ;;  %14141 = vrcp.f32 %v10855_v2 }
0x1ad9   :  { %v10876_v23 = vmul.f32 %v14134_v18, %v16193_v36 }
0x1ada   :  { %v10864_v38 = vpop.xlane.xlu1 %10863 }
0x1adb   :  { %14143 = vrcp.f32 %v10864_v38  ;;  %v10861_v39 = vpop.xlane.xlu0 %10860  ;;  %13624 = vmatmul.mubr.msk.f32.vlgmr.msra.gmra.mrb[120].mxu1 %vm871_vm5, %v10876_v23 }
0x1adc   :  { %v14136_v58 = vpop.eup %14135  ;;  %14145 = vrcp.f32 %v10861_v39  ;;  %13632 = vmatpush3.msk.msra.mxu1 %vm875_vm3, %v11039_v45  ;;  %13633 = vmatprep.mubr.msk.f32.mxu1 %vm14170_vm1, %v14169_v10 }
0x1add   :  { %v14138_v30 = vpop.eup %14137  ;;  %v10878_v3 = vmul.f32 %v14136_v58, %v16198_v50  ;;  %13641 = vmatprep.subr.mxu1 %v14169_v10 }
0x1ade   :  { %v10877_v37 = vmul.f32 %v14138_v30, %v16201_v56  ;;  %v11424_v1 = vpop.permute.xlu1 %11423 }
0x1adf   :  { %v10867_v27 = vpop.xlane.xlu0 %10866  ;;  %13634 = vmatmul.mubr.msk.f32.vlgmr.msra.gmra.mrb[122].mxu1 %vm871_vm5, %v10878_v3 }
0x1ae0   :  { %14147 = vrcp.f32 %v10867_v27  ;;  %13629 = vmatmul.mubr.msk.f32.vlgmr.msra.gmra.mrb[140].mxu0 %vm871_vm5, %v10877_v37  ;;  %13642 = vmatpush3.msk.msra.mxu1 %vm875_vm3, %v11193_v15 }
0x1ae1   :  { %v14140_v48 = vpop.eup %14139  ;;  %13637 = vmatpush3.msk.msra.mxu0 %vm875_vm3, %v11116_v47  ;;  %13638 = vmatprep.mubr.msk.f32.mxu0 %vm14170_vm1, %v14169_v10 }
0x1ae2   :  { %v14142_v42 = vpop.eup %14141  ;;  %v10880_v55 = vmul.f32 %v14140_v48, %v16209_v19  ;;  %13643 = vmatprep.mubr.msk.f32.mxu1 %vm14170_vm1, %v14169_v10  ;;  %13646 = vmatprep.subr.mxu0 %v14169_v10  ;;  %v11511_v47 = vpop.permute.xlu1 %11510 }
0x1ae3   :  { %v10879_v12 = vmul.f32 %v14142_v42, %v16211_v21  ;;  %v11347_v59 = vpop.permute.xlu0 %11346  ;;  %13651 = vmatprep.subr.mxu1 %v14169_v10  ;;  %v11597_v27 = vsel %vm173_vm2, %v15714_v54, %v11511_v47 }
0x1ae4   :  { %13644 = vmatmul.mubr.msk.f32.vlgmr.msra.gmra.mrb[124].mxu1 %vm871_vm5, %v10880_v55 }
0x1ae5   :  { %v14144_v62 = vpop.eup %14143  ;;  %13639 = vmatmul.mubr.msk.f32.vlgmr.msra.gmra.mrb[142].mxu0 %vm871_vm5, %v10879_v12  ;;  %13652 = vmatpush3.msk.msra.mxu1 %vm875_vm3, %v11347_v59 }
0x1ae6   :  { %v14146_v16 = vpop.eup %14145  ;;  %v10882_v14 = vmul.f32 %v14144_v62, %v16217_v29  ;;  %13647 = vmatpush3.msk.msra.mxu0 %vm875_vm3, %v11270_v4  ;;  %13648 = vmatprep.mubr.msk.f32.mxu0 %vm14170_vm1, %v14169_v10  ;;  %v11515_v28 = vpop.permute.xlu1 %11514 }
0x1ae7   :  { %v10881_v25 = vmul.f32 %v14146_v16, %v16219_v43  ;;  %13653 = vmatprep.mubr.msk.f32.mxu1 %vm14170_vm1, %v14169_v10  ;;  %13656 = vmatprep.subr.mxu0 %v14169_v10  ;;  %v11509_v45 = vpop.permute.xlu0 %11508 }
0x1ae8   :  { %13654 = vmatmul.mubr.msk.f32.vlgmr.msra.gmra.mrb[126].mxu1 %vm871_vm5, %v10882_v14  ;;  %13806 = vmatprep.subr.bf16.mxu1 %v13805_v53  ;;  %v11596_v48 = vsel %vm173_vm2, %v15712_v35, %v11509_v45 }
0x1ae9   :  { %13649 = vmatmul.mubr.msk.f32.vlgmr.msra.gmra.mrb[144].mxu0 %vm871_vm5, %v10881_v25  ;;  %13808 = vmatpush3.bf16.msra.mxu1 %v13805_v53  ;;  %v11599_v25 = vsel %vm173_vm2, %v15716_v7, %v11515_v28 }
0x1aea   :  { %v14148_v36 = vpop.eup %14147  ;;  %13657 = vmatpush3.msk.msra.mxu0 %vm875_vm3, %v11424_v1  ;;  %13658 = vmatprep.mubr.msk.f32.mxu0 %vm14170_vm1, %v14169_v10  ;;  %v12527_v10 = vld [vmem:[%s16518_s3 + $0x38] sm:$0xff]  ;;  %v11543_v60 = vpop.permute.xlu1 %11542 }
0x1aeb   :  { %v10883_v17 = vmul.f32 %v14148_v36, %v16225_v41  ;;  %v13809_v31 = vpack.c.bf16 %v12527_v10, %v12526_v52  ;;  %v11513_v4 = vpop.permute.xlu0 %11512  ;;  %v11605_v55 = vsel %vm5575_vm6, %v11597_v27, %v11543_v60 }
0x1aec   :  { %v11598_v54 = vsel %vm173_vm2, %v15720_v46, %v11513_v4 }
0x1aed   :  { %13659 = vmatmul.mubr.msk.f32.vlgmr.msra.gmra.mrb[146].mxu0 %vm871_vm5, %v10883_v17  ;;  %13810 = vmatprep.subr.bf16.mxu1 %v13809_v31 }
0x1aee   :  { %13812 = vmatpush3.bf16.msra.mxu1 %v13809_v31  ;;  %v11547_v20 = vpop.permute.xlu1 %11546 }
0x1aef   :  { %v11541_v15 = vpop.permute.xlu0 %11540  ;;  %v11607_v35 = vsel %vm5575_vm6, %v11599_v25, %v11547_v20  ;;  %v12539_v25 = vld [vmem:[%s16520_s9 + $0x28] sm:$0xff] }
0x1af0   :  { %v11604_v12 = vsel %vm5575_vm6, %v11596_v48, %v11541_v15 }
0x1af2   :  { %v11519_v18 = vpop.permute.xlu1 %11518 }
0x1af3   :  { %v11545_v61 = vpop.permute.xlu0 %11544  ;;  %v11601_v52 = vsel %vm173_vm2, %v15718_v34, %v11519_v18 }
0x1af4   :  { %v11606_v1 = vsel %vm5575_vm6, %v11598_v54, %v11545_v61 }
0x1af6   :  { %v11523_v38 = vpop.permute.xlu1 %11522 }
0x1af7   :  { %v11517_v2 = vpop.permute.xlu0 %11516 }
0x1af8   :  { %v11600_v7 = vsel %vm173_vm2, %v15724_v6, %v11517_v2 }
0x1afa   :  { %v11551_v58 = vpop.permute.xlu1 %11550 }
0x1afb   :  { %v11521_v23 = vpop.permute.xlu0 %11520  ;;  %v11609_v46 = vsel %vm5575_vm6, %v11601_v52, %v11551_v58  ;;  %v12551_v52 = vld [vmem:[%s16521_s11 + $0x98] sm:$0xff] }
0x1afc   :  { %v11602_v34 = vsel %vm173_vm2, %v15726_v8, %v11521_v23 }
0x1afe   :  { %v11555_v37 = vpop.permute.xlu1 %11554 }
0x1aff   :  { %v11549_v39 = vpop.permute.xlu0 %11548 }
0x1b00   :  { %v11608_v10 = vsel %vm5575_vm6, %v11600_v7, %v11549_v39 }
0x1b03   :  { %v11553_v30 = vpop.permute.xlu0 %11552 }
0x1bae   :  { %v10957_v50 = vpop.f32.mrb[120].mxu1 }
0x1baf   :  { %v13625_v56 = vpop.f32.mrb[121].mxu1  ;;  %11572 = vrot.lane.b32.xlu0 %v10957_v50, %s16554_s0 }
0x1bb2   :  { %v11111_v13 = vpop.f32.mrb[122].mxu1 }
0x1bb3   :  { %v11034_v5 = vpop.f32.mrb[140].mxu0  ;;  %v13635_v33 = vpop.f32.mrb[123].mxu1  ;;  %11576 = vrot.lane.b32.xlu0 %v11111_v13, %s16554_s0 }
0x1bb4   :  { %11574 = vrot.lane.b32.xlu1 %v11034_v5, %s16554_s0  ;;  %v13630_v0 = vpop.f32.mrb[141].mxu0  ;;  %v11603_v33 = vsel %vm173_vm2, %v15722_v51, %v11523_v38  ;;  %v12529_v51 = vld [vmem:[%s16519_s4 + $0x1] ss:$0 sm:$0xff] }
0x1bb5   :  { %v11611_v6 = vsel %vm5575_vm6, %v11603_v33, %v11555_v37  ;;  %v11610_v0 = vsel %vm5575_vm6, %v11602_v34, %v11553_v30  ;;  %v12557_v33 = vld [vmem:[%s16521_s11 + $0xc8] sm:$0xff] }
0x1bb7   :  { %v11265_v19 = vpop.f32.mrb[124].mxu1 }
0x1bb8   :  { %v11188_v21 = vpop.f32.mrb[142].mxu0  ;;  %11580 = vrot.lane.b32.xlu0 %v11265_v19, %s16554_s0  ;;  %v13645_v11 = vpop.f32.mrb[125].mxu1 }
0x1bb9   :  { %11578 = vrot.lane.b32.xlu1 %v11188_v21, %s16554_s0  ;;  %v13640_v26 = vpop.f32.mrb[143].mxu0 }
0x1bbb   :  { %v11419_v29 = vpop.f32.mrb[126].mxu1 }
0x1bbc   :  { %v11342_v43 = vpop.f32.mrb[144].mxu0  ;;  %11584 = vrot.lane.b32.xlu0 %v11419_v29, %s16554_s0  ;;  %v13655_v32 = vpop.f32.mrb[127].mxu1 }
0x1bbd   :  { %11582 = vrot.lane.b32.xlu1 %v11342_v43, %s16554_s0  ;;  %v13650_v22 = vpop.f32.mrb[145].mxu0 }
0x1bc0   :  { %v11496_v41 = vpop.f32.mrb[146].mxu0 }
0x1bc1   :  { %11586 = vrot.lane.b32.xlu1 %v11496_v41, %s16554_s0  ;;  %v13660_v44 = vpop.f32.mrb[147].mxu0 }
0x1c21   :  { %v11573_v3 = vpop.permute.xlu0 %11572 }
0x1c22   :  { %v11612_v62 = vsel %vm5584_vm7, %v11604_v12, %v11573_v3 }
0x1c25   :  { %v11577_v42 = vpop.permute.xlu0 %11576 }
0x1c26   :  { %v11575_v59 = vpop.permute.xlu1 %11574  ;;  %v11614_v63 = vsel %vm5584_vm7, %v11606_v1, %v11577_v42  ;;  %v12541_v1 = vld [vmem:[%s16520_s9 + $0x38] sm:$0xff] }
0x1c27   :  { %v11613_v16 = vsel %vm5584_vm7, %v11605_v55, %v11575_v59 }
0x1c28   :  { %v11641_v14 = vcombine.low %v11612_v62, %v11613_v16 }
0x1c2a   :  { %13669 = vmatprep.mubr.msk.f32.mxu1 %vm65_vm0, %v11641_v14  ;;  %v11581_v17 = vpop.permute.xlu0 %11580  ;;  %v12538_v14 = vld [vmem:[%s16520_s9 + $0x20] sm:$0xff] }
0x1c2b   :  { %v11579_v36 = vpop.permute.xlu1 %11578  ;;  %v11616_v50 = vsel %vm5584_vm7, %v11608_v10, %v11581_v17  ;;  %v13813_v54 = vpack.c.bf16 %v12539_v25, %v12538_v14  ;;  %v12548_v17 = vld [vmem:[%s16521_s11 + $0x80] sm:$0xff]  ;;  %v12553_v10 = vld [vmem:[%s16521_s11 + $0xa8] sm:$0xff] }
0x1c2c   :  { %v11615_v57 = vsel %vm5584_vm7, %v11607_v35, %v11579_v36  ;;  %v12540_v35 = vld [vmem:[%s16520_s9 + $0x30] sm:$0xff] }
0x1c2d   :  { %v11642_v53 = vcombine.low %v11614_v63, %v11615_v57  ;;  %13814 = vmatprep.subr.bf16.mxu0 %v13813_v54  ;;  %v13817_v36 = vpack.c.bf16 %v12541_v1, %v12540_v35  ;;  %v12549_v63 = vld [vmem:[%s16521_s11 + $0x88] sm:$0xff]  ;;  %v12550_v57 = vld [vmem:[%s16521_s11 + $0x90] sm:$0xff] }
0x1c2e   :  { %v11585_v5 = vpop.permute.xlu0 %11584  ;;  %13816 = vmatpush3.bf16.msra.mxu0 %v13813_v54  ;;  %v13825_v7 = vpack.c.bf16 %v12551_v52, %v12550_v57 }
0x1c2f   :  { %v11583_v31 = vpop.permute.xlu1 %11582  ;;  %13670 = vmatmul.mubr.msk.f32.vlgmr.msra.gmra.mrb[128].mxu1 %vm65_vm0, %v11642_v53  ;;  %v11618_v21 = vsel %vm5584_vm7, %v11610_v0, %v11585_v5  ;;  %13818 = vmatprep.subr.bf16.mxu0 %v13817_v36  ;;  %v13821_v53 = vpack.c.bf16 %v12549_v63, %v12548_v17  ;;  %v12556_v5 = vld [vmem:[%s16521_s11 + $0xc0] sm:$0xff]  ;;  %v12559_v0 = vld [vmem:[%s16521_s11 + $0xd8] sm:$0xff] }
0x1c30   :  { %v11617_v56 = vsel %vm5584_vm7, %v11609_v46, %v11583_v31  ;;  %v12552_v46 = vld [vmem:[%s16521_s11 + $0xa0] sm:$0xff]  ;;  %v13837_v34 = vpack.c.bf16 %v12557_v33, %v12556_v5 }
0x1c31   :  { %v11643_v13 = vcombine.low %v11616_v50, %v11617_v56  ;;  %13822 = vmatprep.subr.bf16.mxu1 %v13821_v53  ;;  %v13829_v31 = vpack.c.bf16 %v12553_v10, %v12552_v46  ;;  %v12554_v50 = vld [vmem:[%s16521_s11 + $0xb0] sm:$0xff]  ;;  %v12555_v56 = vld [vmem:[%s16521_s11 + $0xb8] sm:$0xff] }
0x1c32   :  { %13820 = vmatpush3.bf16.msra.mxu0 %v13817_v36  ;;  %13824 = vmatpush3.bf16.msra.mxu1 %v13821_v53  ;;  %v12565_v53 = vld [vmem:[%s16525_s12 + $0x1] ss:$0 sm:$0xff] }
0x1c33   :  { %v11587_v19 = vpop.permute.xlu1 %11586  ;;  %13672 = vmatprep.mubr.msk.f32.mxu1 %vm65_vm0, %v11643_v13  ;;  %13826 = vmatprep.subr.bf16.mxu1 %v13825_v7  ;;  %v13833_v13 = vpack.c.bf16 %v12555_v56, %v12554_v50 }
0x1c34   :  { %v11619_v11 = vsel %vm5584_vm7, %v11611_v6, %v11587_v19  ;;  %v12558_v6 = vld [vmem:[%s16521_s11 + $0xd0] sm:$0xff] }
0x1c35   :  { %v11644_v26 = vcombine.low %v11618_v21, %v11619_v11  ;;  %v13841_v19 = vpack.c.bf16 %v12559_v0, %v12558_v6  ;;  %v12560_v21 = vld [vmem:[%s16521_s11 + $0xe0] sm:$0xff]  ;;  %v12561_v11 = vld [vmem:[%s16521_s11 + $0xe8] sm:$0xff] }
0x1c36   :  { %13828 = vmatpush3.bf16.msra.mxu1 %v13825_v7 }
0x1c37   :  { %13673 = vmatmul.mubr.msk.f32.gmra.mrb[130].mxu1 %vm65_vm0, %v11644_v26  ;;  %13830 = vmatprep.subr.bf16.mxu1 %v13829_v31  ;;  %v13845_v26 = vpack.c.bf16 %v12561_v11, %v12560_v21 }
0x1c3a   :  { %13832 = vmatpush3.bf16.msra.mxu1 %v13829_v31 }
0x1c3b   :  { %13834 = vmatprep.subr.bf16.mxu1 %v13833_v13 }
0x1c3e   :  { %13836 = vmatpush3.bf16.msra.mxu1 %v13833_v13 }
0x1c3f   :  { %13838 = vmatprep.subr.bf16.mxu1 %v13837_v34 }
0x1c42   :  { %13840 = vmatpush3.bf16.msra.mxu1 %v13837_v34 }
0x1c43   :  { %13842 = vmatprep.subr.bf16.mxu1 %v13841_v19 }
0x1c46   :  { %13844 = vmatpush3.bf16.msra.mxu1 %v13841_v19 }
0x1c47   :  { %13846 = vmatprep.subr.bf16.mxu1 %v13845_v26 }
0x1c4a   :  { %13848 = vmatpush3.bf16.msra.mxu1 %v13845_v26 }
0x1d02   :  { %v13671_v29 = vpop.f32.mrb[128].mxu1 }
0x1d03   :  { %v11725_v8 = vadd.f32 %v13671_v29, %v12529_v51  ;;  %v11719_v43 = vpop.f32.mrb[129].mxu1 }
0x1d04   :  { %v11720_v32 = vadd.f32 %v12529_v51, %v11719_v43 }
0x1d05   :  { %v11739_v22 = vadd.f32 %v11725_v8, %v15400_v40 }
0x1d06   :  { %v11738_v41 = vadd.f32 %v11720_v32, %v15398_v9 }
0x1d07   :  { %v11749_v44 = vsel %vm65_vm0, %v11739_v22, 0.0 }
0x1d08   :  { %11750 = vadd.xlane.f32.xlu1 %v11749_v44  ;;  %v11746_v45 = vsel %vm65_vm0, %v11738_v41, 0.0 }
0x1d09   :  { %11747 = vadd.xlane.f32.xlu0 %v11746_v45 }
0x1d0a   :  { %v13674_v47 = vpop.f32.mrb[130].mxu1 }
0x1d0b   :  { %v11729_v4 = vpop.f32.mrb[131].mxu1  ;;  %v11735_v28 = vadd.f32 %v13674_v47, %v12529_v51 }
0x1d0c   :  { %v11730_v15 = vadd.f32 %v12529_v51, %v11729_v4 }
0x1d0d   :  { %v11741_v61 = vadd.f32 %v11735_v28, %v15408_v49 }
0x1d0e   :  { %v11740_v60 = vadd.f32 %v11730_v15, %v15406_v24  ;;  %v12536_v15 = vld [vmem:[%s16522_s5 + $0x1] ss:$0 sm:$0xff] }
0x1d0f   :  { %v11755_v40 = vsel %vm65_vm0, %v11741_v61, 0.0 }
0x1d10   :  { %v11752_v20 = vsel %vm65_vm0, %v11740_v60, 0.0 }
0x1d11   :  { %11753 = vadd.xlane.f32.xlu0 %v11752_v20 }
0x1d15   :  { %11756 = vadd.xlane.f32.xlu0 %v11755_v40 }
0x1d95   :  { %v11751_v9 = vpop.xlane.xlu1 %11750 }
0x1d96   :  { %v11759_v2 = vmul.f32 0.03125, %v11751_v9  ;;  %v11748_v18 = vpop.xlane.xlu0 %11747  ;;  %v12537_v9 = vld [vmem:[%s16523_s6 + $0x1] ss:$0 sm:$0xff] }
0x1d97   :  { %v11758_v23 = vmul.f32 0.03125, %v11748_v18 }
0x1d98   :  { %v16370_v38 = vsub.f32 %v11739_v22, %v11759_v2 }
0x1d99   :  { %v16372_v39 = vsub.f32 %v11738_v41, %v11758_v23 }
0x1d9a   :  { %v11767_v58 = vmul.f32 %v16370_v38, %v16370_v38 }
0x1d9b   :  { %v11766_v24 = vmul.f32 %v16372_v39, %v16372_v39 }
0x1d9c   :  { %v11773_v49 = vsel %vm65_vm0, %v11767_v58, 0.0 }
0x1d9d   :  { %11774 = vadd.xlane.f32.xlu0 %v11773_v49  ;;  %v11770_v30 = vsel %vm65_vm0, %v11766_v24, 0.0 }
0x1d9e   :  { %11771 = vadd.xlane.f32.xlu1 %v11770_v30  ;;  %v11754_v3 = vpop.xlane.xlu0 %11753 }
0x1d9f   :  { %v11760_v37 = vmul.f32 0.03125, %v11754_v3 }
0x1da1   :  { %v16380_v27 = vsub.f32 %v11740_v60, %v11760_v37 }
0x1da2   :  { %v11757_v48 = vpop.xlane.xlu0 %11756 }
0x1da3   :  { %v11761_v42 = vmul.f32 0.03125, %v11757_v48  ;;  %v11768_v55 = vmul.f32 %v16380_v27, %v16380_v27 }
0x1da5   :  { %v16384_v12 = vsub.f32 %v11741_v61, %v11761_v42  ;;  %v11776_v59 = vsel %vm65_vm0, %v11768_v55, 0.0  ;;  %v12562_v42 = vld [vmem:[%s16521_s11 + $0xf0] sm:$0xff]  ;;  %v12563_v55 = vld [vmem:[%s16521_s11 + $0xf8] sm:$0xff] }
0x1da6   :  { %11777 = vadd.xlane.f32.xlu1 %v11776_v59 }
0x1da7   :  { %v11769_v62 = vmul.f32 %v16384_v12, %v16384_v12 }
0x1da9   :  { %v11779_v16 = vsel %vm65_vm0, %v11769_v62, 0.0 }
0x1daa   :  { %11780 = vadd.xlane.f32.xlu0 %v11779_v16 }
0x1e2a   :  { %v11775_v51 = vpop.xlane.xlu0 %11774 }
0x1e2b   :  { %v11783_v29 = vmul.f32 0.03125, %v11775_v51  ;;  %v11772_v8 = vpop.xlane.xlu1 %11771 }
0x1e2c   :  { %v11782_v43 = vmul.f32 0.03125, %v11772_v8 }
0x1e2d   :  { %v11787_v32 = vadd.f32 1e-05, %v11783_v29 }
0x1e2e   :  { %v11786_v22 = vadd.f32 1e-05, %v11782_v43 }
0x1e2f   :  { %14149 = vrsqrt.f32 %v11787_v32 }
0x1e30   :  { %14151 = vrsqrt.f32 %v11786_v22 }
0x1e33   :  { %v11778_v41 = vpop.xlane.xlu1 %11777 }
0x1e34   :  { %v11784_v44 = vmul.f32 0.03125, %v11778_v41 }
0x1e36   :  { %v11788_v45 = vadd.f32 1e-05, %v11784_v44 }
0x1e37   :  { %v11781_v47 = vpop.xlane.xlu0 %11780 }
0x1e38   :  { %14153 = vrsqrt.f32 %v11788_v45  ;;  %v11785_v4 = vmul.f32 0.03125, %v11781_v47 }
0x1e39   :  { %v14150_v28 = vpop.eup %14149 }
0x1e3a   :  { %v14152_v60 = vpop.eup %14151  ;;  %v11795_v61 = vmul.f32 %v14150_v28, %v16370_v38  ;;  %v11789_v20 = vadd.f32 1e-05, %v11785_v4 }
0x1e3b   :  { %v11794_v40 = vmul.f32 %v14152_v60, %v16372_v39 }
0x1e3c   :  { %14155 = vrsqrt.f32 %v11789_v20  ;;  %v11805_v2 = vmul.f32 %v12536_v15, %v11795_v61 }
0x1e3d   :  { %v11804_v18 = vmul.f32 %v12536_v15, %v11794_v40 }
0x1e3e   :  { %v11815_v58 = vadd.f32 %v12537_v9, %v11805_v2 }
0x1e3f   :  { %v11814_v23 = vadd.f32 %v12537_v9, %v11804_v18  ;;  %v12122_v18 = vld [vmem:[%s16528_s13] sm:$0xff] }
0x1e41   :  { %13683 = vmatprep.mubr.msk.f32.mxu0 %vm65_vm0, %v11814_v23 }
0x1e42   :  { %v14154_v24 = vpop.eup %14153  ;;  %13684 = vmatmul.mubr.msk.f32.vlgmr.msra.gmra.mrb[148].mxu0 %vm65_vm0, %v11815_v58 }
0x1e43   :  { %v11796_v49 = vmul.f32 %v14154_v24, %v16380_v27  ;;  %v13849_v27 = vpack.c.bf16 %v12563_v55, %v12562_v42  ;;  %v12124_v24 = vld [vmem:[%s16528_s13 + $0x10] sm:$0xff] }
0x1e45   :  { %v11806_v38 = vmul.f32 %v12536_v15, %v11796_v49  ;;  %13850 = vmatprep.subr.bf16.mxu1 %v13849_v27  ;;  %v12125_v49 = vld [vmem:[%s16528_s13 + $0x18] sm:$0xff] }
0x1e46   :  { %v14156_v30 = vpop.eup %14155  ;;  %13852 = vmatpush3.bf16.msra.mxu1 %v13849_v27 }
0x1e47   :  { %v11816_v3 = vadd.f32 %v12537_v9, %v11806_v38  ;;  %v11797_v39 = vmul.f32 %v14156_v30, %v16384_v12  ;;  %v12543_v12 = vld [vmem:[%s16524_s10 + $0x1] ss:$0 sm:$0xff]  ;;  %v13857_v38 = vpack.c.bf16 %v12125_v49, %v12124_v24 }
0x1e49   :  { %13686 = vmatprep.mubr.msk.f32.mxu0 %vm65_vm0, %v11816_v3  ;;  %v11807_v37 = vmul.f32 %v12536_v15, %v11797_v39 }
0x1e4b   :  { %v11817_v48 = vadd.f32 %v12537_v9, %v11807_v37 }
0x1e4d   :  { %13687 = vmatmul.mubr.msk.f32.gmra.mrb[150].mxu0 %vm65_vm0, %v11817_v48 }
0x1f15   :  { %v13685_v59 = vpop.f32.mrb[148].mxu0 }
0x1f16   :  { %v11915_v62 = vadd.f32 %v13685_v59, %v12543_v12  ;;  %v11909_v16 = vpop.f32.mrb[149].mxu0 }
0x1f17   :  { %v11910_v14 = vadd.f32 %v12543_v12, %v11909_v16 }
0x1f18   :  { %v11929_v54 = vmax.f32 %v11915_v62, 0.0 }
0x1f19   :  { %v11928_v25 = vmax.f32 %v11910_v14, 0.0 }
0x1f1b   :  { %13721 = vmatprep.mubr.f32.mxu1 %v11928_v25  ;;  %v12568_v25 = vld [vmem:[%s16526_s7 + $0x1] ss:$0 sm:$0xff] }
0x1f1c   :  { %13722 = vmatmul.mubr.f32.vlgmr.msra.gmra.mrb[132].mxu1 %v11929_v54 }
0x1f20   :  { %v13688_v35 = vpop.f32.mrb[150].mxu0 }
0x1f21   :  { %v11925_v1 = vadd.f32 %v13688_v35, %v12543_v12  ;;  %v11919_v36 = vpop.f32.mrb[151].mxu0 }
0x1f22   :  { %v11920_v17 = vadd.f32 %v12543_v12, %v11919_v36  ;;  %v12569_v36 = vld [vmem:[%s16527_s8 + $0x1] ss:$0 sm:$0xff] }
0x1f23   :  { %v11931_v57 = vmax.f32 %v11925_v1, 0.0 }
0x1f24   :  { %v11930_v63 = vmax.f32 %v11920_v17, 0.0 }
0x1f26   :  { %13724 = vmatprep.mubr.f32.mxu1 %v11930_v63 }
0x1f27   :  { %13725 = vmatmul.mubr.f32.gmra.mrb[134].mxu1 %v11931_v57 }
0x1fef   :  { %v13723_v52 = vpop.f32.mrb[132].mxu1 }
0x1ff0   :  { %v12029_v7 = vadd.f32 %v13723_v52, %v12565_v53  ;;  %v12023_v46 = vpop.f32.mrb[133].mxu1 }
0x1ff1   :  { %v12024_v10 = vadd.f32 %v12565_v53, %v12023_v46 }
0x1ff2   :  { %v12043_v31 = vadd.f32 %v12029_v7, %v11815_v58 }
0x1ff3   :  { %v12042_v50 = vadd.f32 %v12024_v10, %v11814_v23  ;;  %v12123_v23 = vld [vmem:[%s16528_s13 + $0x8] sm:$0xff] }
0x1ff4   :  { %v12053_v56 = vsel %vm65_vm0, %v12043_v31, 0.0  ;;  %v13853_v58 = vpack.c.bf16 %v12123_v23, %v12122_v18 }
0x1ff5   :  { %12054 = vadd.xlane.f32.xlu0 %v12053_v56  ;;  %v12050_v13 = vsel %vm65_vm0, %v12042_v50, 0.0 }
0x1ff6   :  { %12051 = vadd.xlane.f32.xlu1 %v12050_v13  ;;  %13854 = vmatprep.subr.bf16.mxu0 %v13853_v58 }
0x1ff7   :  { %13856 = vmatpush3.bf16.msra.mxu0 %v13853_v58 }
0x1ff8   :  { %13858 = vmatprep.subr.bf16.mxu0 %v13857_v38 }
0x1ffa   :  { %v13726_v5 = vpop.f32.mrb[134].mxu1 }
0x1ffb   :  { %v12039_v33 = vadd.f32 %v13726_v5, %v12565_v53  ;;  %v12033_v34 = vpop.f32.mrb[135].mxu1  ;;  %13860 = vmatpush3.bf16.msra.mxu0 %v13857_v38  ;;  %v12570_v5 = vld [vmem:[%s16529_s14] ss:$0 sm:$0xff] }
0x1ffc   :  { %v12034_v6 = vadd.f32 %v12565_v53, %v12033_v34 }
0x1ffd   :  { %v12045_v0 = vadd.f32 %v12039_v33, %v11817_v48 }
0x1ffe   :  { %v12044_v19 = vadd.f32 %v12034_v6, %v11816_v3 }
0x1fff   :  { %v12059_v21 = vsel %vm65_vm0, %v12045_v0, 0.0 }
0x2000   :  { %12060 = vadd.xlane.f32.xlu0 %v12059_v21  ;;  %v12056_v11 = vsel %vm65_vm0, %v12044_v19, 0.0 }
0x2001   :  { %12057 = vadd.xlane.f32.xlu1 %v12056_v11 }
0x2082   :  { %v12055_v26 = vpop.xlane.xlu0 %12054 }
0x2083   :  { %v12063_v51 = vmul.f32 0.03125, %v12055_v26  ;;  %v12052_v29 = vpop.xlane.xlu1 %12051 }
0x2084   :  { %v12062_v8 = vmul.f32 0.03125, %v12052_v29 }
0x2085   :  { %v12067_v43 = vsub.f32 %v12043_v31, %v12063_v51 }
0x2086   :  { %v12066_v32 = vsub.f32 %v12042_v50, %v12062_v8 }
0x2087   :  { %v12071_v22 = vmul.f32 %v12067_v43, %v12067_v43 }
0x2088   :  { %v12070_v41 = vmul.f32 %v12066_v32, %v12066_v32 }
0x2089   :  { %v12077_v44 = vsel %vm65_vm0, %v12071_v22, 0.0 }
0x208a   :  { %12078 = vadd.xlane.f32.xlu0 %v12077_v44  ;;  %v12074_v45 = vsel %vm65_vm0, %v12070_v41, 0.0 }
0x208b   :  { %12075 = vadd.xlane.f32.xlu1 %v12074_v45 }
0x208d   :  { %v12061_v47 = vpop.xlane.xlu0 %12060 }
0x208e   :  { %v12065_v4 = vmul.f32 0.03125, %v12061_v47  ;;  %v12058_v28 = vpop.xlane.xlu1 %12057 }
0x208f   :  { %v12064_v15 = vmul.f32 0.03125, %v12058_v28 }
0x2090   :  { %v12069_v60 = vsub.f32 %v12045_v0, %v12065_v4 }
0x2091   :  { %v12068_v61 = vsub.f32 %v12044_v19, %v12064_v15 }
0x2092   :  { %v12073_v20 = vmul.f32 %v12069_v60, %v12069_v60 }
0x2093   :  { %v12072_v40 = vmul.f32 %v12068_v61, %v12068_v61 }
0x2094   :  { %v12083_v9 = vsel %vm65_vm0, %v12073_v20, 0.0 }
0x2095   :  { %12084 = vadd.xlane.f32.xlu0 %v12083_v9  ;;  %v12080_v2 = vsel %vm65_vm0, %v12072_v40, 0.0 }
0x2096   :  { %12081 = vadd.xlane.f32.xlu1 %v12080_v2 }
0x2117   :  { %v12079_v30 = vpop.xlane.xlu0 %12078 }
0x2118   :  { %v12087_v3 = vmul.f32 0.03125, %v12079_v30  ;;  %v12076_v39 = vpop.xlane.xlu1 %12075 }
0x2119   :  { %v12086_v37 = vmul.f32 0.03125, %v12076_v39 }
0x211a   :  { %v12091_v48 = vadd.f32 1e-05, %v12087_v3 }
0x211b   :  { %v12090_v42 = vadd.f32 1e-05, %v12086_v37 }
0x211c   :  { %14157 = vrsqrt.f32 %v12091_v48 }
0x211d   :  { %14159 = vrsqrt.f32 %v12090_v42 }
0x2122   :  { %v12085_v55 = vpop.xlane.xlu0 %12084 }
0x2123   :  { %v12089_v27 = vmul.f32 0.03125, %v12085_v55  ;;  %v12082_v12 = vpop.xlane.xlu1 %12081 }
0x2124   :  { %v12088_v59 = vmul.f32 0.03125, %v12082_v12 }
0x2125   :  { %v12093_v62 = vadd.f32 1e-05, %v12089_v27 }
0x2126   :  { %v14158_v16 = vpop.eup %14157  ;;  %v12092_v14 = vadd.f32 1e-05, %v12088_v59 }
0x2127   :  { %v14160_v54 = vpop.eup %14159  ;;  %v12099_v35 = vmul.f32 %v14158_v16, %v12067_v43  ;;  %14161 = vrsqrt.f32 %v12093_v62 }
0x2128   :  { %14163 = vrsqrt.f32 %v12092_v14  ;;  %v12098_v1 = vmul.f32 %v14160_v54, %v12066_v32 }
0x2129   :  { %v12109_v17 = vmul.f32 %v12568_v25, %v12099_v35 }
0x212a   :  { %v12108_v63 = vmul.f32 %v12568_v25, %v12098_v1 }
0x212b   :  { %v12119_v53 = vadd.f32 %v12569_v36, %v12109_v17 }
0x212c   :  { %v12118_v57 = vadd.f32 %v12569_v36, %v12108_v63 }
0x212e   :  { %13735 = vmatprep.mubr.msk.f32.mxu0 %vm65_vm0, %v12118_v57 }
0x212f   :  { %13736 = vmatmul.mubr.msk.f32.vlgmr.msra.gmra.mrb[152].mxu0 %vm65_vm0, %v12119_v53 }
0x2131   :  { %v14162_v52 = vpop.eup %14161 }
0x2132   :  { %v14164_v7 = vpop.eup %14163  ;;  %v12101_v46 = vmul.f32 %v14162_v52, %v12069_v60 }
0x2133   :  { %v12100_v10 = vmul.f32 %v14164_v7, %v12068_v61 }
0x2134   :  { %v12111_v31 = vmul.f32 %v12568_v25, %v12101_v46 }
0x2135   :  { %v12110_v50 = vmul.f32 %v12568_v25, %v12100_v10 }
0x2136   :  { %v12121_v13 = vadd.f32 %v12569_v36, %v12111_v31 }
0x2137   :  { %v12120_v56 = vadd.f32 %v12569_v36, %v12110_v50 }
0x2139   :  { %13738 = vmatprep.mubr.msk.f32.mxu0 %vm65_vm0, %v12120_v56 }
0x213a   :  { %13739 = vmatmul.mubr.msk.f32.gmra.mrb[154].mxu0 %vm65_vm0, %v12121_v13 }
0x2202   :  { %v13737_v33 = vpop.f32.mrb[152].mxu0 }
0x2203   :  { %v12217_v34 = vadd.f32 %v13737_v33, %v12570_v5  ;;  %v12211_v6 = vpop.f32.mrb[153].mxu0 }
0x2204   :  { %v12212_v0 = vadd.f32 %v12570_v5, %v12211_v6 }
0x2205   :  { %12231 = vst [vmem:[%s16530_s15 + $0x8] sm:$0xff] %v12217_v34 }
0x2206   :  { %12230 = vst [vmem:[%s16530_s15] sm:$0xff] %v12212_v0 }
0x220d   :  { %v13740_v19 = vpop.f32.mrb[154].mxu0 }
0x220e   :  { %v12227_v21 = vadd.f32 %v13740_v19, %v12570_v5  ;;  %v12221_v11 = vpop.f32.mrb[155].mxu0 }
0x220f   :  { %v12222_v26 = vadd.f32 %v12570_v5, %v12221_v11 }
0x2210   :  { %12233 = vst [vmem:[%s16530_s15 + $0x18] sm:$0xff] %v12227_v21 }
0x2211   :  { %12232 = vst [vmem:[%s16530_s15 + $0x10] sm:$0xff] %v12222_v26 }

</bundles_post_ra>
